<compile_context>
chip_gen: v5e
topology: v5e:2x2
jax: 0.10.0
libtpu: 0.0.40
codegen_flags: <defaults>
</compile_context>

<pallas_src>
import functools

import jax
import jax.numpy as jnp
from jax.experimental import pallas as pl
from jax.experimental.pallas import tpu as pltpu

_SQRT1_2 = 0.7071067811865476
_LN_EPS = 1e-6
_GRN_EPS = 1e-6


# --------------------------------------------------------------------------
# In-kernel math helpers
# --------------------------------------------------------------------------
def _recip(x, approx):
    # approx=True -> EUP vrcp (free bundle slot); approx=False -> exact divide.
    return pl.reciprocal(x, approx=True) if approx else 1.0 / x


def _erf_f32(x, approx):
    """erf via Abramowitz & Stegun 7.1.26 (|err| <= 1.5e-7).

    Keeps exact-GELU semantics (nn.GELU() default) with primitives guaranteed
    to lower in Mosaic.  The divide goes to the EUP on the fast path.
    """
    p = 0.3275911
    a1, a2, a3, a4, a5 = (0.254829592, -0.284496736, 1.421413741,
                          -1.453152027, 1.061405429)
    ax = jnp.abs(x)
    t = _recip(1.0 + p * ax, approx)
    poly = ((((a5 * t + a4) * t + a3) * t + a2) * t + a1) * t
    y = 1.0 - poly * jnp.exp(-ax * ax)
    return jnp.where(x >= 0, y, -y)


def _gelu_exact(x, approx):
    return 0.5 * x * (1.0 + _erf_f32(x * _SQRT1_2, approx))


def _layernorm_lastdim(x, w, b):
    mu = jnp.mean(x, axis=-1, keepdims=True)
    xc = x - mu
    var = jnp.mean(xc * xc, axis=-1, keepdims=True)
    return xc * jax.lax.rsqrt(var + _LN_EPS) * w + b


# --------------------------------------------------------------------------
# Kernels
# --------------------------------------------------------------------------
def _fused_kernel(xres_ref, xdw_ref, w1_ref, w2_ref, cpar_ref, epar_ref, o_ref,
                  *, precise):
    """One grid step = one image: full LN->pwconv1->GELU->GRN->pwconv2->res."""
    f32 = jnp.float32
    approx = not precise
    cpar = cpar_ref[...].astype(f32)                 # (3, C):  ln_w, ln_b, b2
    epar = epar_ref[...].astype(f32)                 # (3, 4C): b1, gamma, beta

    x = xdw_ref[...].astype(f32)                     # (HW, C)  dwconv output
    xn = _layernorm_lastdim(x, cpar[0:1, :], cpar[1:2, :])

    # pwconv1 (C -> 4C) + exact GELU; bf16 MXU operands on the fast path.
    h = jnp.dot(xn.astype(w1_ref.dtype), w1_ref[...],
                preferred_element_type=f32) + epar[0:1, :]
    h = _gelu_exact(h, approx)                       # (HW, 4C)

    # GRN: per-image L2 over the spatial plane, normalised by channel mean.
    gx = jnp.sqrt(jnp.sum(h * h, axis=0, keepdims=True))            # (1, 4C)
    nx = gx * _recip(jnp.mean(gx, axis=-1, keepdims=True) + _GRN_EPS, approx)
    # gamma*(h*nx) + beta + h  ==  h * (gamma*nx + 1) + beta
    h = h * (epar[1:2, :] * nx + 1.0) + epar[2:3, :]

    # pwconv2 (4C -> C) + residual.
    y = jnp.dot(h.astype(w2_ref.dtype), w2_ref[...],
                preferred_element_type=f32) + cpar[2:3, :]
    o_ref[...] = (xres_ref[...].astype(f32) + y).astype(o_ref.dtype)


def _grn_stats_kernel(xdw_ref, w1_ref, cpar_ref, epar_ref, ssq_ref, *, precise):
    """Pass 1 of the HW-tiled path: accumulate per-(image, channel) sum(h*h)."""
    f32 = jnp.float32
    approx = not precise
    cpar = cpar_ref[...].astype(f32)
    epar = epar_ref[...].astype(f32)

    x = xdw_ref[...].astype(f32)                     # (hw_tile, C)
    xn = _layernorm_lastdim(x, cpar[0:1, :], cpar[1:2, :])
    h = jnp.dot(xn.astype(w1_ref.dtype), w1_ref[...],
                preferred_element_type=f32) + epar[0:1, :]
    h = _gelu_exact(h, approx)
    part = jnp.sum(h * h, axis=0, keepdims=True)     # (1, 4C)

    @pl.when(pl.program_id(1) == 0)
    def _():
        ssq_ref[...] = part

    @pl.when(pl.program_id(1) != 0)
    def _():
        ssq_ref[...] += part


def _grn_apply_kernel(xres_ref, xdw_ref, ssq_ref, w1_ref, w2_ref,
                      cpar_ref, epar_ref, o_ref, *, precise):
    """Pass 2 of the HW-tiled path: recompute h, apply GRN scale + pwconv2."""
    f32 = jnp.float32
    approx = not precise
    cpar = cpar_ref[...].astype(f32)
    epar = epar_ref[...].astype(f32)

    x = xdw_ref[...].astype(f32)                     # (hw_tile, C)
    xn = _layernorm_lastdim(x, cpar[0:1, :], cpar[1:2, :])
    h = jnp.dot(xn.astype(w1_ref.dtype), w1_ref[...],
                preferred_element_type=f32) + epar[0:1, :]
    h = _gelu_exact(h, approx)

    gx = jnp.sqrt(ssq_ref[...])                      # (1, 4C) full-plane stats
    nx = gx * _recip(jnp.mean(gx, axis=-1, keepdims=True) + _GRN_EPS, approx)
    h = h * (epar[1:2, :] * nx + 1.0) + epar[2:3, :]

    y = jnp.dot(h.astype(w2_ref.dtype), w2_ref[...],
                preferred_element_type=f32) + cpar[2:3, :]
    o_ref[...] = (xres_ref[...].astype(f32) + y).astype(o_ref.dtype)


# --------------------------------------------------------------------------
# Wrapper-side helpers
# --------------------------------------------------------------------------
_SINGLE_BUFFER_OK = None


def _probe_kernel(x_ref, o_ref):
    o_ref[...] = x_ref[...] + 1.0


def _single_buffer_weights_supported():
    """Probe once whether pipeline_mode=pl.Buffered(1) lowers/runs correctly."""
    global _SINGLE_BUFFER_OK
    if _SINGLE_BUFFER_OK is None:
        try:
            spec = pl.BlockSpec((8, 128), lambda i: (0, 0),
                                pipeline_mode=pl.Buffered(1))
            out = pl.pallas_call(
                _probe_kernel,
                out_shape=jax.ShapeDtypeStruct((8, 128), jnp.float32),
                grid=(2,),
                in_specs=[spec],
                out_specs=pl.BlockSpec((8, 128), lambda i: (0, 0)),
            )(jnp.zeros((8, 128), jnp.float32))
            _SINGLE_BUFFER_OK = bool(jnp.all(jax.block_until_ready(out) == 1.0))
        except Exception:
            _SINGLE_BUFFER_OK = False
    return _SINGLE_BUFFER_OK


def _const_spec(shape, grid_rank, single_buffer):
    """BlockSpec for a grid-constant operand (weights / packed params)."""
    zeros = (0,) * len(shape)
    index_map = (lambda i: zeros) if grid_rank == 1 else (lambda b, t: zeros)
    if single_buffer:
        # No point double-buffering a block whose index never changes.
        return pl.BlockSpec(shape, index_map, pipeline_mode=pl.Buffered(1))
    return pl.BlockSpec(shape, index_map)


def _pick_vmem_limit():
    """~3/4 of physical VMEM: ~96 MiB on v5e/v6e, ~48 MiB on v7x."""
    try:
        cap = int(pltpu.get_tpu_info().vmem_capacity_bytes)
        if cap >= 32 * 1024 * 1024:
            return min(cap * 3 // 4, 100 * 1024 * 1024)
    except Exception:
        pass
    return 48 * 1024 * 1024


def _auto_hw_tile(HW, C, vmem_limit):
    """None -> fused single kernel; int -> spatial tile for the 2-pass path."""
    def step_bytes(rows):
        # in/out activation blocks (x2 pipeline buffers) + f32 (rows,4C) h +
        # LN temporaries, in f32-equivalent bytes.
        return rows * C * 4 * 14
    budget = int(vmem_limit * 0.6)
    if step_bytes(HW) <= budget:
        return None
    tiles = [t for t in range(8, HW, 8) if HW % t == 0]
    fitting = [t for t in tiles if step_bytes(t) <= budget]
    if fitting:
        return max(fitting)
    return min(tiles) if tiles else None


def _dwconv_nhwc(x_nhwc, w_hwio, b):
    # nn.Conv2d(dim, dim, kernel_size=7, padding=3, groups=dim) on NHWC data.
    c = x_nhwc.shape[-1]
    out = jax.lax.conv_general_dilated(
        x_nhwc, w_hwio,
        window_strides=(1, 1), padding=((3, 3), (3, 3)),
        dimension_numbers=("NHWC", "HWIO", "NHWC"),
        feature_group_count=c,
        precision=jax.lax.Precision.HIGHEST)
    return out + b


# --------------------------------------------------------------------------
# Pallas call paths
# --------------------------------------------------------------------------
def _fused_path(x_res, xdw, w1, w2, cpar, epar, *, precise, vmem_limit,
                single_buffer):
    N, HW, C = xdw.shape
    C4 = epar.shape[-1]
    call = pl.pallas_call(
        functools.partial(_fused_kernel, precise=precise),
        out_shape=jax.ShapeDtypeStruct((N, HW, C), x_res.dtype),
        grid_spec=pltpu.PrefetchScalarGridSpec(
            num_scalar_prefetch=0,
            grid=(N,),
            in_specs=[
                pl.BlockSpec((None, HW, C), lambda i: (i, 0, 0)),   # residual
                pl.BlockSpec((None, HW, C), lambda i: (i, 0, 0)),   # dwconv out
                _const_spec((C, C4), 1, single_buffer),             # w1
                _const_spec((C4, C), 1, single_buffer),             # w2
                _const_spec((3, C), 1, single_buffer),              # ln_w/ln_b/b2
                _const_spec((3, C4), 1, single_buffer),             # b1/gamma/beta
            ],
            out_specs=pl.BlockSpec((None, HW, C), lambda i: (i, 0, 0)),
        ),
        input_output_aliases={0: 0},     # residual buffer reused for the output
        compiler_params=pltpu.CompilerParams(
            dimension_semantics=("parallel",),
            vmem_limit_bytes=vmem_limit,
        ),
    )
    return call(x_res, xdw, w1, w2, cpar, epar)


def _tiled_path(x_res, xdw, w1, w2, cpar, epar, *, precise, hw_tile,
                vmem_limit, single_buffer):
    N, HW, C = xdw.shape
    C4 = epar.shape[-1]
    nt = HW // hw_tile

    # Pass 1: per-(image, channel) sum of squares of h = GELU(LN(x)@w1 + b1),
    # accumulated across spatial tiles into a (N, 1, 4C) f32 output.
    ssq = pl.pallas_call(
        functools.partial(_grn_stats_kernel, precise=precise),
        out_shape=jax.ShapeDtypeStruct((N, 1, C4), jnp.float32),
        grid_spec=pltpu.PrefetchScalarGridSpec(
            num_scalar_prefetch=0,
            grid=(N, nt),
            in_specs=[
                pl.BlockSpec((None, hw_tile, C), lambda b, t: (b, t, 0)),
                _const_spec((C, C4), 2, single_buffer),
                _const_spec((3, C), 2, single_buffer),
                _const_spec((3, C4), 2, single_buffer),
            ],
            out_specs=pl.BlockSpec((None, 1, C4), lambda b, t: (b, 0, 0)),
        ),
        compiler_params=pltpu.CompilerParams(
            dimension_semantics=("parallel", "arbitrary"),
            vmem_limit_bytes=vmem_limit,
        ),
    )(xdw, w1, cpar, epar)

    # Pass 2: recompute h per tile, apply the GRN scale, pwconv2, residual.
    out = pl.pallas_call(
        functools.partial(_grn_apply_kernel, precise=precise),
        out_shape=jax.ShapeDtypeStruct((N, HW, C), x_res.dtype),
        grid_spec=pltpu.PrefetchScalarGridSpec(
            num_scalar_prefetch=0,
            grid=(N, nt),
            in_specs=[
                pl.BlockSpec((None, hw_tile, C), lambda b, t: (b, t, 0)),  # res
                pl.BlockSpec((None, hw_tile, C), lambda b, t: (b, t, 0)),  # dw
                pl.BlockSpec((None, 1, C4), lambda b, t: (b, 0, 0)),       # ssq
                _const_spec((C, C4), 2, single_buffer),
                _const_spec((C4, C), 2, single_buffer),
                _const_spec((3, C), 2, single_buffer),
                _const_spec((3, C4), 2, single_buffer),
            ],
            out_specs=pl.BlockSpec((None, hw_tile, C), lambda b, t: (b, t, 0)),
        ),
        input_output_aliases={0: 0},
        compiler_params=pltpu.CompilerParams(
            dimension_semantics=("parallel", "parallel"),
            vmem_limit_bytes=vmem_limit,
        ),
    )(x_res, xdw, ssq, w1, w2, cpar, epar)
    return out


# --------------------------------------------------------------------------
# Public entry points
# --------------------------------------------------------------------------
def convnextv2_block_nhwc(x_nhwc, params, *, precise=False, hw_tile=None,
                          vmem_limit_bytes=None):
    """ConvNeXtV2Block forward on channels-last input (N, H, W, C).

    precise=False (default): bf16 MXU operands + EUP-approx reciprocals.
    precise=True: f32 matmuls + exact divides (validation path).
    hw_tile: None -> auto (single fused kernel when the per-image activation
      fits VMEM, else the 2-pass HW-tiled path); an int forces the tiled path.
    """
    N, H, W, C = x_nhwc.shape
    HW = H * W
    C4 = 4 * C

    vmem_limit = vmem_limit_bytes or _pick_vmem_limit()
    single_buffer = _single_buffer_weights_supported()

    # TODO(synk): the depthwise 7x7 conv (spatial halos) stays in XLA; the
    # LayerNorm -> pwconv1 -> GELU -> GRN -> pwconv2 -> residual chain is the
    # fused Pallas part (the 4*dim activation never round-trips HBM).
    xdw = _dwconv_nhwc(x_nhwc, params["dw_w"], params["dw_b"])

    x_res = x_nhwc.reshape(N, HW, C)
    xdw = xdw.reshape(N, HW, C)

    # bf16 MXU operands on the fast path; f32 for validation.
    wdt = jnp.float32 if precise else jnp.bfloat16
    w1 = params["w1"].astype(wdt)
    w2 = params["w2"].astype(wdt)
    # Per-channel vectors packed -> 2 small constant blocks instead of 6.
    cpar = jnp.stack([params["ln_w"], params["ln_b"], params["b2"]]
                     ).astype(jnp.float32)                     # (3, C)
    epar = jnp.stack([params["b1"], params["gamma"], params["beta"]]
                     ).astype(jnp.float32)                     # (3, 4C)

    if hw_tile is None:
        hw_tile = _auto_hw_tile(HW, C, vmem_limit)
    elif hw_tile >= HW:
        hw_tile = None
    elif HW % hw_tile or hw_tile % 8:
        raise ValueError("hw_tile must divide H*W and be a multiple of 8 "
                         "(GRN reduces over the full spatial plane)")

    if hw_tile is None:
        out = _fused_path(x_res, xdw, w1, w2, cpar, epar, precise=precise,
                          vmem_limit=vmem_limit, single_buffer=single_buffer)
    else:
        out = _tiled_path(x_res, xdw, w1, w2, cpar, epar, precise=precise,
                          hw_tile=hw_tile, vmem_limit=vmem_limit,
                          single_buffer=single_buffer)
    return out.reshape(N, H, W, C)


def convnextv2_block_pallas(x_nchw, params, **kwargs):
    """PyTorch-layout entry point (N, C, H, W).

    Note: these two transposes are a full HBM read+write of the activation
    each; prefer convnextv2_block_nhwc end-to-end if the surrounding model
    is (or can be made) channels-last.
    """
    x_nhwc = jnp.transpose(x_nchw, (0, 2, 3, 1))
    out = convnextv2_block_nhwc(x_nhwc, params, **kwargs)
    return jnp.transpose(out, (0, 3, 1, 2))


# --------------------------------------------------------------------------
# Pure-JAX reference (matches the PyTorch forward, f32 + exact erf)
# --------------------------------------------------------------------------
def convnextv2_block_reference(x_nchw, params):
    f32 = jnp.float32
    hp = jax.lax.Precision.HIGHEST
    xr = jnp.transpose(x_nchw, (0, 2, 3, 1)).astype(f32)               # NHWC
    x = _dwconv_nhwc(xr, params["dw_w"].astype(f32), params["dw_b"].astype(f32))

    mu = jnp.mean(x, axis=-1, keepdims=True)
    xc = x - mu
    var = jnp.mean(xc * xc, axis=-1, keepdims=True)
    x = xc * jax.lax.rsqrt(var + _LN_EPS) * params["ln_w"] + params["ln_b"]

    h = jnp.einsum("nhwc,cd->nhwd", x, params["w1"].astype(f32),
                   precision=hp) + params["b1"]
    h = 0.5 * h * (1.0 + jax.lax.erf(h * _SQRT1_2))                    # GELU

    gx = jnp.sqrt(jnp.sum(h * h, axis=(1, 2), keepdims=True))
    nx = gx / (jnp.mean(gx, axis=-1, keepdims=True) + _GRN_EPS)
    h = params["gamma"] * (h * nx) + params["beta"] + h

    y = jnp.einsum("nhwd,dc->nhwc", h, params["w2"].astype(f32),
                   precision=hp) + params["b2"]
    return jnp.transpose(xr + y, (0, 3, 1, 2))


# --------------------------------------------------------------------------
# Demo / self-test
# --------------------------------------------------------------------------
if __name__ == "__main__":
    N, dim, H, W = 2, 32, 16, 16          # 4*dim = 128 -> lane-aligned expansion
    C4 = 4 * dim

    key = jax.random.PRNGKey(0)
    ks = jax.random.split(key, 11)
    dt = jnp.float32

    x = jax.random.normal(ks[0], (N, dim, H, W), dtype=dt)

    params = {
        # depthwise 7x7 kernel in HWIO layout (torch (dim,1,7,7) -> (7,7,1,dim))
        "dw_w": 0.05 * jax.random.normal(ks[1], (7, 7, 1, dim), dtype=dt),
        "dw_b": 0.02 * jax.random.normal(ks[2], (dim,), dtype=dt),
        "ln_w": 1.0 + 0.1 * jax.random.normal(ks[3], (dim,), dtype=dt),
        "ln_b": 0.05 * jax.random.normal(ks[4], (dim,), dtype=dt),
        # pwconv1 / pwconv2 stored pre-transposed: y = x @ w + b
        "w1": jax.random.normal(ks[5], (dim, C4), dtype=dt) / (dim ** 0.5),
        "b1": 0.05 * jax.random.normal(ks[6], (C4,), dtype=dt),
        # GRN gamma/beta are zero-init in the module (identity); use small
        # nonzero values so the GRN math is actually exercised.
        "gamma": 0.1 * jax.random.normal(ks[7], (C4,), dtype=dt),
        "beta": 0.05 * jax.random.normal(ks[8], (C4,), dtype=dt),
        "w2": jax.random.normal(ks[9], (C4, dim), dtype=dt) / (C4 ** 0.5),
        "b2": 0.05 * jax.random.normal(ks[10], (dim,), dtype=dt),
    }

    ref = convnextv2_block_reference(x, params)

    # 1) Fast path (default): bf16 MXU operands + EUP-approx reciprocals.
    out = jax.block_until_ready(convnextv2_block_pallas(x, params))
    assert out.shape == x.shape and out.dtype == x.dtype
    err_fast = float(jnp.max(jnp.abs(out.astype(jnp.float32) - ref)))
    assert err_fast < 8e-2, f"fast path max abs err {err_fast} vs reference"

    # 2) Precise path (f32 matmuls, exact divides) through the fused kernel.
    out_p = jax.block_until_ready(
        convnextv2_block_pallas(x, params, precise=True))
    err_p = float(jnp.max(jnp.abs(out_p.astype(jnp.float32) - ref)))
    assert err_p < 1e-4, f"precise fused path max abs err {err_p} vs reference"

    # 3) Precise path through the HW-tiled two-pass GRN pipeline.
    out_t = jax.block_until_ready(
        convnextv2_block_pallas(x, params, precise=True, hw_tile=64))
    err_t = float(jnp.max(jnp.abs(out_t.astype(jnp.float32) - ref)))
    assert err_t < 1e-4, f"precise tiled path max abs err {err_t} vs reference"

    print("KERNEL_OK")
</pallas_src>

<mosaic_0001>
module attributes {stable_mosaic.version = 11 : i64} {
  func.func @_probe_kernel(%arg0: i32, %arg1: memref<8x128xf32, #tpu.memory_space<vmem>>, %arg2: memref<8x128xf32, #tpu.memory_space<vmem>>) attributes {dimension_semantics = [#tpu.dimension_semantics<arbitrary>], iteration_bounds = array<i64: 2>, scalar_prefetch = 0 : i64, scratch_operands = 0 : i64, tpu.core_type = #tpu.core_type<tc>, window_params = [{pipeline_mode = #tpu.pipeline_mode<synchronous>, transform_indices = @transform_0, window_bounds = array<i64: 8, 128>}, {pipeline_mode = #tpu.pipeline_mode<synchronous>, transform_indices = @transform_1, window_bounds = array<i64: 8, 128>}]} {
    %c0 = arith.constant 0 : index
    %c0_0 = arith.constant 0 : index
    %0 = vector.load %arg1[%c0, %c0_0] : memref<8x128xf32, #tpu.memory_space<vmem>>, vector<8x128xf32>
    %cst = arith.constant 1.000000e+00 : f32
    %1 = vector.broadcast %cst : f32 to vector<8x128xf32>
    %2 = arith.addf %0, %1 : vector<8x128xf32>
    %c0_1 = arith.constant 0 : index
    %c0_2 = arith.constant 0 : index
    %3 = vector.load %arg2[%c0_1, %c0_2] : memref<8x128xf32, #tpu.memory_space<vmem>>, vector<8x128xf32>
    tpu.vector_store %arg2[%c0_1, %c0_2], %2 {strides = array<i32>} : memref<8x128xf32, #tpu.memory_space<vmem>>, vector<8x128xf32>,
    return
  }
  func.func @transform_0(%arg0: i32) -> (i32, i32) {
    %c0_i32 = arith.constant 0 : i32
    %c0_i32_0 = arith.constant 0 : i32
    %c0_i32_1 = arith.constant 0 : i32
    return %c0_i32, %c0_i32_0 : i32, i32
  }
  func.func @transform_1(%arg0: i32) -> (i32, i32) {
    %c0_i32 = arith.constant 0 : i32
    %c0_i32_0 = arith.constant 0 : i32
    %c0_i32_1 = arith.constant 0 : i32
    return %c0_i32, %c0_i32_0 : i32, i32
  }
}

module attributes {stable_mosaic.version = 11 : i64} {
  func.func @_fused_kernel(%arg0: i32, %arg1: memref<1x256x32xf32, #tpu.memory_space<vmem>>, %arg2: memref<1x256x32xf32, #tpu.memory_space<vmem>>, %arg3: memref<32x128xbf16, #tpu.memory_space<vmem>>, %arg4: memref<128x32xbf16, #tpu.memory_space<vmem>>, %arg5: memref<3x32xf32, #tpu.memory_space<vmem>>, %arg6: memref<3x128xf32, #tpu.memory_space<vmem>>, %arg7: memref<1x256x32xf32, #tpu.memory_space<vmem>>) attributes {dimension_semantics = [#tpu.dimension_semantics<parallel>], iteration_bounds = array<i64: 2>, scalar_prefetch = 0 : i64, scratch_operands = 0 : i64, tpu.core_type = #tpu.core_type<tc>, window_params = [{transform_indices = @transform_0, window_bounds = array<i64: 1, 256, 32>}, {transform_indices = @transform_1, window_bounds = array<i64: 1, 256, 32>}, {pipeline_mode = #tpu.pipeline_mode<synchronous>, transform_indices = @transform_2, window_bounds = array<i64: 32, 128>}, {pipeline_mode = #tpu.pipeline_mode<synchronous>, transform_indices = @transform_3, window_bounds = array<i64: 128, 32>}, {pipeline_mode = #tpu.pipeline_mode<synchronous>, transform_indices = @transform_4, window_bounds = array<i64: 3, 32>}, {pipeline_mode = #tpu.pipeline_mode<synchronous>, transform_indices = @transform_5, window_bounds = array<i64: 3, 128>}, {transform_indices = @transform_6, window_bounds = array<i64: 1, 256, 32>}]} {
    %c0 = arith.constant 0 : index
    %c0_0 = arith.constant 0 : index
    %0 = vector.load %arg5[%c0, %c0_0] : memref<3x32xf32, #tpu.memory_space<vmem>>, vector<3x32xf32>
    %c0_1 = arith.constant 0 : index
    %c0_2 = arith.constant 0 : index
    %1 = vector.load %arg6[%c0_1, %c0_2] : memref<3x128xf32, #tpu.memory_space<vmem>>, vector<3x128xf32>
    %c0_3 = arith.constant 0 : index
    %c0_4 = arith.constant 0 : index
    %c0_5 = arith.constant 0 : index
    %2 = vector.load %arg2[%c0_3, %c0_4, %c0_5] : memref<1x256x32xf32, #tpu.memory_space<vmem>>, vector<1x256x32xf32>
    %3 = vector.shape_cast %2 : vector<1x256x32xf32> to vector<256x32xf32>
    %4 = vector.extract_strided_slice %0 {offsets = [0, 0], sizes = [1, 32], strides = [1, 1]} : vector<3x32xf32> to vector<1x32xf32>
    %5 = vector.extract_strided_slice %0 {offsets = [1, 0], sizes = [1, 32], strides = [1, 1]} : vector<3x32xf32> to vector<1x32xf32>
    %cst = arith.constant dense<0.000000e+00> : vector<256xf32>
    %6 = vector.multi_reduction <add>, %3, %cst [1] : vector<256x32xf32> to vector<256xf32>
    %7 = vector.shape_cast %6 : vector<256xf32> to vector<256x1xf32>
    %cst_6 = arith.constant 3.200000e+01 : f32
    %8 = vector.broadcast %cst_6 : f32 to vector<256x1xf32>
    %9 = arith.divf %7, %8 : vector<256x1xf32>
    %10 = vector.broadcast %9 : vector<256x1xf32> to vector<256x32xf32>
    %11 = arith.subf %3, %10 : vector<256x32xf32>
    %12 = arith.mulf %11, %11 : vector<256x32xf32>
    %cst_7 = arith.constant dense<0.000000e+00> : vector<256xf32>
    %13 = vector.multi_reduction <add>, %12, %cst_7 [1] : vector<256x32xf32> to vector<256xf32>
    %14 = vector.shape_cast %13 : vector<256xf32> to vector<256x1xf32>
    %cst_8 = arith.constant 3.200000e+01 : f32
    %15 = vector.broadcast %cst_8 : f32 to vector<256x1xf32>
    %16 = arith.divf %14, %15 : vector<256x1xf32>
    %cst_9 = arith.constant 9.99999997E-7 : f32
    %17 = vector.broadcast %cst_9 : f32 to vector<256x1xf32>
    %18 = arith.addf %16, %17 : vector<256x1xf32>
    %19 = math.rsqrt %18 : vector<256x1xf32>
    %20 = vector.broadcast %19 : vector<256x1xf32> to vector<256x32xf32>
    %21 = arith.mulf %11, %20 : vector<256x32xf32>
    %22 = vector.broadcast %4 : vector<1x32xf32> to vector<256x32xf32>
    %23 = arith.mulf %21, %22 : vector<256x32xf32>
    %24 = vector.broadcast %5 : vector<1x32xf32> to vector<256x32xf32>
    %25 = arith.addf %23, %24 : vector<256x32xf32>
    %26 = arith.truncf %25 : vector<256x32xf32> to vector<256x32xbf16>
    %c0_10 = arith.constant 0 : index
    %c0_11 = arith.constant 0 : index
    %27 = vector.load %arg3[%c0_10, %c0_11] : memref<32x128xbf16, #tpu.memory_space<vmem>>, vector<32x128xbf16>
    %cst_12 = arith.constant dense<0.000000e+00> : vector<256x128xf32>
    %28 = tpu.matmul %26, %27, %cst_12 {dimension_numbers = #tpu.dot_dimension_numbers<[1], [0], [0], [1], [0, 0, 1, 1], [], []>} : vector<256x32xbf16>, vector<32x128xbf16>, vector<256x128xf32> -> vector<256x128xf32>
    %29 = vector.extract_strided_slice %1 {offsets = [0, 0], sizes = [1, 128], strides = [1, 1]} : vector<3x128xf32> to vector<1x128xf32>
    %30 = vector.broadcast %29 : vector<1x128xf32> to vector<256x128xf32>
    %31 = arith.addf %28, %30 : vector<256x128xf32>
    %cst_13 = arith.constant 5.000000e-01 : f32
    %32 = vector.broadcast %cst_13 : f32 to vector<256x128xf32>
    %33 = arith.mulf %32, %31 : vector<256x128xf32>
    %cst_14 = arith.constant 0.707106769 : f32
    %34 = vector.broadcast %cst_14 : f32 to vector<256x128xf32>
    %35 = arith.mulf %31, %34 : vector<256x128xf32>
    %36 = math.absf %35 : vector<256x128xf32>
    %cst_15 = arith.constant 0.327591091 : f32
    %37 = vector.broadcast %cst_15 : f32 to vector<256x128xf32>
    %38 = arith.mulf %37, %36 : vector<256x128xf32>
    %cst_16 = arith.constant 1.000000e+00 : f32
    %39 = vector.broadcast %cst_16 : f32 to vector<256x128xf32>
    %40 = arith.addf %39, %38 : vector<256x128xf32>
    %41 = tpu.reciprocal %40 {approx = true} : vector<256x128xf32> -> vector<256x128xf32>
    %cst_17 = arith.constant 1.06140542 : f32
    %42 = vector.broadcast %cst_17 : f32 to vector<256x128xf32>
    %43 = arith.mulf %42, %41 : vector<256x128xf32>
    %cst_18 = arith.constant -1.45315206 : f32
    %44 = vector.broadcast %cst_18 : f32 to vector<256x128xf32>
    %45 = arith.addf %43, %44 : vector<256x128xf32>
    %46 = arith.mulf %45, %41 : vector<256x128xf32>
    %cst_19 = arith.constant 1.42141378 : f32
    %47 = vector.broadcast %cst_19 : f32 to vector<256x128xf32>
    %48 = arith.addf %46, %47 : vector<256x128xf32>
    %49 = arith.mulf %48, %41 : vector<256x128xf32>
    %cst_20 = arith.constant -0.284496725 : f32
    %50 = vector.broadcast %cst_20 : f32 to vector<256x128xf32>
    %51 = arith.addf %49, %50 : vector<256x128xf32>
    %52 = arith.mulf %51, %41 : vector<256x128xf32>
    %cst_21 = arith.constant 0.254829586 : f32
    %53 = vector.broadcast %cst_21 : f32 to vector<256x128xf32>
    %54 = arith.addf %52, %53 : vector<256x128xf32>
    %55 = arith.mulf %54, %41 : vector<256x128xf32>
    %cst_22 = arith.constant 0.000000e+00 : f32
    %56 = vector.broadcast %cst_22 : f32 to vector<256x128xf32>
    %57 = arith.subf %56, %36 : vector<256x128xf32>
    %58 = arith.mulf %57, %36 : vector<256x128xf32>
    %59 = math.exp %58 : vector<256x128xf32>
    %60 = arith.mulf %55, %59 : vector<256x128xf32>
    %cst_23 = arith.constant 1.000000e+00 : f32
    %61 = vector.broadcast %cst_23 : f32 to vector<256x128xf32>
    %62 = arith.subf %61, %60 : vector<256x128xf32>
    %cst_24 = arith.constant 0.000000e+00 : f32
    %63 = vector.broadcast %cst_24 : f32 to vector<256x128xf32>
    %64 = arith.cmpf oge, %35, %63 : vector<256x128xf32>
    %cst_25 = arith.constant 0.000000e+00 : f32
    %65 = vector.broadcast %cst_25 : f32 to vector<256x128xf32>
    %66 = arith.subf %65, %62 : vector<256x128xf32>
    %67 = arith.select %64, %62, %66 : vector<256x128xi1>, vector<256x128xf32>
    %cst_26 = arith.constant 1.000000e+00 : f32
    %68 = vector.broadcast %cst_26 : f32 to vector<256x128xf32>
    %69 = arith.addf %68, %67 : vector<256x128xf32>
    %70 = arith.mulf %33, %69 : vector<256x128xf32>
    %71 = arith.mulf %70, %70 : vector<256x128xf32>
    %cst_27 = arith.constant dense<0.000000e+00> : vector<128xf32>
    %72 = vector.multi_reduction <add>, %71, %cst_27 [0] : vector<256x128xf32> to vector<128xf32>
    %73 = vector.shape_cast %72 : vector<128xf32> to vector<1x128xf32>
    %74 = math.sqrt %73 : vector<1x128xf32>
    %cst_28 = arith.constant dense<0.000000e+00> : vector<1xf32>
    %75 = vector.multi_reduction <add>, %74, %cst_28 [1] : vector<1x128xf32> to vector<1xf32>
    %76 = vector.shape_cast %75 : vector<1xf32> to vector<1x1xf32>
    %cst_29 = arith.constant 1.280000e+02 : f32
    %77 = vector.broadcast %cst_29 : f32 to vector<1x1xf32>
    %78 = arith.divf %76, %77 : vector<1x1xf32>
    %cst_30 = arith.constant 9.99999997E-7 : f32
    %79 = vector.broadcast %cst_30 : f32 to vector<1x1xf32>
    %80 = arith.addf %78, %79 : vector<1x1xf32>
    %81 = tpu.reciprocal %80 {approx = true} : vector<1x1xf32> -> vector<1x1xf32>
    %82 = vector.broadcast %81 : vector<1x1xf32> to vector<1x128xf32>
    %83 = arith.mulf %74, %82 : vector<1x128xf32>
    %84 = vector.extract_strided_slice %1 {offsets = [1, 0], sizes = [1, 128], strides = [1, 1]} : vector<3x128xf32> to vector<1x128xf32>
    %85 = arith.mulf %84, %83 : vector<1x128xf32>
    %cst_31 = arith.constant 1.000000e+00 : f32
    %86 = vector.broadcast %cst_31 : f32 to vector<1x128xf32>
    %87 = arith.addf %85, %86 : vector<1x128xf32>
    %88 = vector.broadcast %87 : vector<1x128xf32> to vector<256x128xf32>
    %89 = arith.mulf %70, %88 : vector<256x128xf32>
    %90 = vector.extract_strided_slice %1 {offsets = [2, 0], sizes = [1, 128], strides = [1, 1]} : vector<3x128xf32> to vector<1x128xf32>
    %91 = vector.broadcast %90 : vector<1x128xf32> to vector<256x128xf32>
    %92 = arith.addf %89, %91 : vector<256x128xf32>
    %93 = arith.truncf %92 : vector<256x128xf32> to vector<256x128xbf16>
    %c0_32 = arith.constant 0 : index
    %c0_33 = arith.constant 0 : index
    %94 = vector.load %arg4[%c0_32, %c0_33] : memref<128x32xbf16, #tpu.memory_space<vmem>>, vector<128x32xbf16>
    %cst_34 = arith.constant dense<0.000000e+00> : vector<256x32xf32>
    %95 = tpu.matmul %93, %94, %cst_34 {dimension_numbers = #tpu.dot_dimension_numbers<[1], [0], [0], [1], [0, 0, 1, 1], [], []>} : vector<256x128xbf16>, vector<128x32xbf16>, vector<256x32xf32> -> vector<256x32xf32>
    %96 = vector.extract_strided_slice %0 {offsets = [2, 0], sizes = [1, 32], strides = [1, 1]} : vector<3x32xf32> to vector<1x32xf32>
    %97 = vector.broadcast %96 : vector<1x32xf32> to vector<256x32xf32>
    %98 = arith.addf %95, %97 : vector<256x32xf32>
    %c0_35 = arith.constant 0 : index
    %c0_36 = arith.constant 0 : index
    %c0_37 = arith.constant 0 : index
    %99 = vector.load %arg1[%c0_35, %c0_36, %c0_37] : memref<1x256x32xf32, #tpu.memory_space<vmem>>, vector<1x256x32xf32>
    %100 = vector.shape_cast %99 : vector<1x256x32xf32> to vector<256x32xf32>
    %101 = arith.addf %100, %98 : vector<256x32xf32>
    %c0_38 = arith.constant 0 : index
    %c0_39 = arith.constant 0 : index
    %c0_40 = arith.constant 0 : index
    %102 = vector.load %arg7[%c0_38, %c0_39, %c0_40] : memref<1x256x32xf32, #tpu.memory_space<vmem>>, vector<1x256x32xf32>
    %103 = vector.shape_cast %102 : vector<1x256x32xf32> to vector<256x32xf32>
    %104 = vector.shape_cast %101 : vector<256x32xf32> to vector<1x256x32xf32>
    tpu.vector_store %arg7[%c0_38, %c0_39, %c0_40], %104 {strides = array<i32>} : memref<1x256x32xf32, #tpu.memory_space<vmem>>, vector<1x256x32xf32>,
    return
  }
  func.func @transform_0(%arg0: i32) -> (i32, i32, i32) {
    %c0_i32 = arith.constant 0 : i32
    %c0_i32_0 = arith.constant 0 : i32
    %c0_i32_1 = arith.constant 0 : i32
    return %arg0, %c0_i32, %c0_i32_0 : i32, i32, i32
  }
  func.func @transform_1(%arg0: i32) -> (i32, i32, i32) {
    %c0_i32 = arith.constant 0 : i32
    %c0_i32_0 = arith.constant 0 : i32
    %c0_i32_1 = arith.constant 0 : i32
    return %arg0, %c0_i32, %c0_i32_0 : i32, i32, i32
  }
  func.func @transform_2(%arg0: i32) -> (i32, i32) {
    %c0_i32 = arith.constant 0 : i32
    %c0_i32_0 = arith.constant 0 : i32
    %c0_i32_1 = arith.constant 0 : i32
    return %c0_i32, %c0_i32_0 : i32, i32
  }
  func.func @transform_3(%arg0: i32) -> (i32, i32) {
    %c0_i32 = arith.constant 0 : i32
    %c0_i32_0 = arith.constant 0 : i32
    %c0_i32_1 = arith.constant 0 : i32
    return %c0_i32, %c0_i32_0 : i32, i32
  }
  func.func @transform_4(%arg0: i32) -> (i32, i32) {
    %c0_i32 = arith.constant 0 : i32
    %c0_i32_0 = arith.constant 0 : i32
    %c0_i32_1 = arith.constant 0 : i32
    return %c0_i32, %c0_i32_0 : i32, i32
  }
  func.func @transform_5(%arg0: i32) -> (i32, i32) {
    %c0_i32 = arith.constant 0 : i32
    %c0_i32_0 = arith.constant 0 : i32
    %c0_i32_1 = arith.constant 0 : i32
    return %c0_i32, %c0_i32_0 : i32, i32
  }
  func.func @transform_6(%arg0: i32) -> (i32, i32, i32) {
    %c0_i32 = arith.constant 0 : i32
    %c0_i32_0 = arith.constant 0 : i32
    %c0_i32_1 = arith.constant 0 : i32
    return %arg0, %c0_i32, %c0_i32_0 : i32, i32, i32
  }
}

</mosaic_0001>

<bundles_post_ra>
// kernel: tpu_custom_call.1
= control target key start
LH: loop header
LB: loop body
LE: loop exit
PB: predicated region body
PF: predicated region fallthrough
CT: control target
= control target key end

     0   :  { %6 = vsyncpa [#allocation3], 0  ;;  %s287_s0 = inlined_call_operand.hbm [shape: f32[8,128], index: 0, kind: input, shape index: {}]   ;;  %s288_s1 = inlined_call_operand.hbm [shape: f32[8,128], index: 1, kind: output, shape index: {}]  }
   0x1   :  { %7 = vsyncpa [#allocation4], 0  ;;  %s270_s6 = smov 0  }
   0x2 LB: > { %s149_s7 = sadd.s32 4294967295, %s256_s6   ;;  %p150_p0 = scmp.ge.s32.totalorder %s256_s6, 1  ;;  %s256_s6 = sphi %s270_s6, %s13_s6  }
   0x3   : > { %p60_p1 = scmp.lt.s32.totalorder %s256_s6, 3  ;;  %s72_s10 = sshll.u32 %s287_s0, 4  ;;  %s73_s10 = int_to_ptr.hbm [resolvable:$true] %s72_s10 }
   0x4   : > { %p170_p3 = scmp.eq.s32.totalorder %s149_s7, 0  ;;  %s258_s11 = smov [#allocation2]  }
   0x5   : > { %p61_p2 = pnand %p150_p0, %p60_p1  ;;  %s74_s12 = sshll.u32 %s258_s11, 4  ;;  %s75_s12 = int_to_ptr.vmem [resolvable:$true] %s74_s12 }
   0x7   : > { %p166_p4 = pneg %p61_p2  ;;  %87 = sbr.rel (%p61_p2) target bundleno = 20 (0x14), region = 24 }
   0x9   : > { %p167_p5 = pnand %p170_p3, %p166_p4 }
   0xb   : > { %169 = dma.hbm_to_vmem [thread:$0]  (!%p167_p5), %s73_s10, 128, %s75_s12, [#allocation3]  }
   0xc   : > { %247 = dma.done.wait (%p170_p3), [#allocation3], 128  }
   0xd   : > { %249 = vsyncadd (%p170_p3), [#allocation3], 4294967168  ;;  %s259_s13 = smov [#allocation5]   ;;  %s109_s17 = sshll.u32 %s288_s1, 4  ;;  %v98_v0 = vld [vmem:[#allocation2] sm:$0xff]  ;;  %s110_s17 = int_to_ptr.hbm [resolvable:$true] %s109_s17 }
   0xe   : > { %s107_s14 = sshll.u32 %s259_s13, 4  ;;  %p172_p6 = scmp.eq.s32.totalorder %s149_s7, 1  ;;  %v99_v1 = vadd.f32 1.0, %v98_v0  ;;  %s108_s14 = int_to_ptr.vmem [resolvable:$true] %s107_s14 }
  0x10   : > { %100 = vst [vmem:[#allocation5] sm:$0xff] %v99_v1 }
  0x11   : > { %163 = dma.vmem_to_hbm [thread:$0]  (%p172_p6), %s108_s14, 128, %s110_s17, [#allocation4]  }
  0x12   : > { %251 = dma.done.wait (%p172_p6), [#allocation4], 128  }
  0x13   : > { %253 = vsyncadd (%p172_p6), [#allocation4], 4294967168 }
  0x14 PF: > { %s13_s6 = sadd.s32 1, %s256_s6  }
  0x15   : > { %p10_p7 = scmp.ge.s32.totalorder %s13_s6, 4  }
  0x17   :  { %12 = sbr.rel (!%p10_p7) target bundleno = 2 (0x2), region = 53 }
  0x1c   :  { %123 = vsyncpa [#allocation3], 1 }
  0x1d   :  { %125 = vsyncpa [#allocation3 + $0x1], 1 }
  0x1e   :  { %126 = vsyncpa [#allocation4], 1 }
  0x1f   :  { %128 = vsyncpa [#allocation4 + $0x1], 1 }

// kernel: tpu_custom_call.1
= control target key start
LH: loop header
LB: loop body
LE: loop exit
PB: predicated region body
PF: predicated region fallthrough
CT: control target
= control target key end

     0   :  { %s2931_s21 = smov 0   ;;  %s5061_s0 = inlined_call_operand.vmem [shape: f32[2,256,32], index: 0, kind: input, shape index: {}, may-alias: {0,6}]   ;;  %s5062_s1 = inlined_call_operand.vmem [shape: f32[2,256,32], index: 1, kind: input, shape index: {}]   ;;  %s5063_s2 = inlined_call_operand.vmem [shape: bf16[32,128], index: 2, kind: input, shape index: {}]   ;;  %s5064_s3 = inlined_call_operand.vmem [shape: bf16[128,32], index: 3, kind: input, shape index: {}]   ;;  %s5065_s4 = inlined_call_operand.vmem [shape: f32[3,32], index: 4, kind: input, shape index: {}]   ;;  %s5066_s5 = inlined_call_operand.vmem [shape: f32[3,128], index: 5, kind: input, shape index: {}]   ;;  %s5067_s6 = inlined_call_operand.vmem [shape: f32[2,256,32], index: 6, kind: output, shape index: {}, may-alias: {0,6}]  }
   0x1 LB: > { %s2582_s22 = sadd.s32 4294967295, %s2892_s21   ;;  %p2586_p0 = scmp.ge.s32.totalorder %s2892_s21, 1  ;;  %s2892_s21 = sphi %s2931_s21, %s16_s21  }
   0x2   : > { %p222_p1 = scmp.lt.s32.totalorder %s2892_s21, 3 }
   0x4   : > { %p223_p2 = pnand %p2586_p0, %p222_p1 }
   0x6   : > { %226 = sbr.rel (%p223_p2) target bundleno = 1203 (0x4b3), region = 44 }
   0xb   : > { %p257_p3 = scmp.lt.s32.totalorder %s2582_s22, 1  ;;  %vm307_vm0 = vcmask 261120   ;;  %v2894_v34 = vmov 32.0  }
   0xc   : > { %2684 = vrcp.f32 %v2894_v34 }
   0xd   : > { %s5190_s22 = smov (!%p257_p3, %s2582_s22), 1 }
   0xe   : > { %s2939_s23 = sshll.u32 %s5190_s22, 8 }
   0xf   : > { %s2945_s26 = scalar_lea.vmem %s5062_s1, %s2939_s23  ;;  %s4859_s11 = scalar_lea.vmem %s5061_s0, %s2939_s23 }
  0x10   : > { %v2948_v0 = vld [vmem:[%s2945_s26 + $0x20] sm:$0xff]  ;;  %v2958_v4 = vld [vmem:[%s2945_s26 + $0x10] sm:$0xff]  ;;  %v2963_v6 = vld [vmem:[%s2945_s26 + $0x28] sm:$0xff]  ;;  %s4917_s14 = scalar_lea.vmem %s5067_s6, %s2939_s23 }
  0x11   : > { %v2951_v1 = vld [vmem:[%s2945_s26] sm:$0xff]  ;;  %v320_v2 = vsel %vm307_vm0, %v2948_v0, 0.0  ;;  %v314_v5 = vsel %vm307_vm0, %v2958_v4, 0.0  ;;  %v2966_v7 = vld [vmem:[%s2945_s26 + $0x8] sm:$0xff]  ;;  %v2969_v8 = vld [vmem:[%s2945_s26 + $0x18] sm:$0xff]  ;;  %v323_v9 = vsel %vm307_vm0, %v2963_v6, 0.0 }
  0x12   : > { %v308_v3 = vsel %vm307_vm0, %v2951_v1, 0.0  ;;  %321 = vadd.xlane.f32.xlu2 %v320_v2  ;;  %315 = vadd.xlane.f32.xlu1 %v314_v5  ;;  %v311_v10 = vsel %vm307_vm0, %v2966_v7, 0.0  ;;  %v317_v11 = vsel %vm307_vm0, %v2969_v8, 0.0  ;;  %v2978_v12 = vld [vmem:[%s2945_s26 + $0x30] sm:$0xff]  ;;  %v2981_v13 = vld [vmem:[%s2945_s26 + $0x38] sm:$0xff]  ;;  %v2996_v19 = vld [vmem:[%s2945_s26 + $0x48] sm:$0xff]  ;;  %v2685_v35 = vpop.eup %2684 }
  0x13   : > { %309 = vadd.xlane.f32.xlu0 %v308_v3  ;;  %v2984_v14 = vld [vmem:[%s2945_s26 + $0x90] sm:$0xff]  ;;  %v326_v15 = vsel %vm307_vm0, %v2978_v12, 0.0  ;;  %v329_v16 = vsel %vm307_vm0, %v2981_v13, 0.0  ;;  %v2993_v18 = vld [vmem:[%s2945_s26 + $0x98] sm:$0xff]  ;;  %v2999_v20 = vld [vmem:[%s2945_s26 + $0xa0] sm:$0xff]  ;;  %v335_v22 = vsel %vm307_vm0, %v2996_v19, 0.0  ;;  %vm409_vm1 = vweird.f32 %v2685_v35 }
  0x14   : > { %v362_v17 = vsel %vm307_vm0, %v2984_v14, 0.0  ;;  %v365_v21 = vsel %vm307_vm0, %v2993_v18, 0.0  ;;  %v368_v23 = vsel %vm307_vm0, %v2999_v20, 0.0  ;;  %v3008_v24 = vld [vmem:[%s2945_s26 + $0x40] sm:$0xff]  ;;  %v3013_v26 = vld [vmem:[%s2945_s26 + $0xa8] sm:$0xff]  ;;  %v3018_v28 = vld [vmem:[%s2945_s26 + $0x50] sm:$0xff] }
  0x15   : > { %v332_v25 = vsel %vm307_vm0, %v3008_v24, 0.0  ;;  %v371_v27 = vsel %vm307_vm0, %v3013_v26, 0.0  ;;  %v338_v29 = vsel %vm307_vm0, %v3018_v28, 0.0  ;;  %v3023_v30 = vld [vmem:[%s2945_s26 + $0xb8] sm:$0xff]  ;;  %v3028_v32 = vld [vmem:[%s2945_s26 + $0x60] sm:$0xff]  ;;  %v405_v36 = vmul.f32 32.0, %v2685_v35 }
  0x16   : > { %v377_v31 = vsel %vm307_vm0, %v3023_v30, 0.0  ;;  %v344_v33 = vsel %vm307_vm0, %v3028_v32, 0.0  ;;  %v3033_v38 = vld [vmem:[%s2945_s26 + $0x78] sm:$0xff] }
  0x17   : > { %v406_v37 = vsub.f32 1.0, %v405_v36  ;;  %v353_v39 = vsel %vm307_vm0, %v3033_v38, 0.0  ;;  %v3049_v54 = vld [vmem:[%s2945_s26 + $0x58] sm:$0xff] }
  0x18   : > { %v341_v57 = vsel %vm307_vm0, %v3049_v54, 0.0 }
  0x19   : > { %v407_v40 = vmul.f32 %v2685_v35, %v406_v37 }
  0x1a   : > { %324 = vadd.xlane.f32.xlu2 %v323_v9  ;;  %318 = vadd.xlane.f32.xlu1 %v317_v11 }
  0x1b   : > { %312 = vadd.xlane.f32.xlu0 %v311_v10  ;;  %v408_v41 = vadd.f32 %v2685_v35, %v407_v40  ;;  %v3077_v10 = vld [vmem:[%s2945_s26 + $0x68] sm:$0xff] }
  0x1d   : > { %v3037_v42 = vsel %vm409_vm1, %v2685_v35, %v408_v41  ;;  %v3118_v41 = vld [vmem:[%s2945_s26 + $0xc0] sm:$0xff] }
  0x22   : > { %327 = vadd.xlane.f32.xlu2 %v326_v15  ;;  %363 = vadd.xlane.f32.xlu1 %v362_v17  ;;  %v347_v17 = vsel %vm307_vm0, %v3077_v10, 0.0 }
  0x23   : > { %330 = vadd.xlane.f32.xlu0 %v329_v16 }
  0x2a   : > { %366 = vadd.xlane.f32.xlu2 %v365_v21  ;;  %369 = vadd.xlane.f32.xlu1 %v368_v23 }
  0x2b   : > { %336 = vadd.xlane.f32.xlu0 %v335_v22 }
  0x32   : > { %333 = vadd.xlane.f32.xlu2 %v332_v25 }
  0x3a   : > { %372 = vadd.xlane.f32.xlu2 %v371_v27  ;;  %v3098_v27 = vld [vmem:[%s2945_s26 + $0xd0] sm:$0xff] }
  0x42   : > { %339 = vadd.xlane.f32.xlu2 %v338_v29  ;;  %v3101_v29 = vld [vmem:[%s2945_s26 + $0xc8] sm:$0xff] }
  0x43   : > { %v383_v36 = vsel %vm307_vm0, %v3101_v29, 0.0 }
  0x4a   : > { %378 = vadd.xlane.f32.xlu2 %v377_v31  ;;  %v386_v31 = vsel %vm307_vm0, %v3098_v27, 0.0 }
  0x52   : > { %345 = vadd.xlane.f32.xlu2 %v344_v33 }
  0x5a   : > { %354 = vadd.xlane.f32.xlu2 %v353_v39 }
  0x85   : > { %v322_v43 = vpop.xlane.xlu2 %321  ;;  %v316_v48 = vpop.xlane.xlu1 %315 }
  0x86   : > { %v310_v44 = vpop.xlane.xlu0 %309  ;;  %v413_v53 = vmul.f32 %v3037_v42, %v316_v48 }
  0x87   : > { %v411_v45 = vmul.f32 %v3037_v42, %v310_v44 }
  0x88   : > { %v3055_v56 = vsub.f32 %v2958_v4, %v413_v53 }
  0x89   : > { %v3041_v46 = vsub.f32 %v2951_v1, %v411_v45  ;;  %v3066_v1 = vld [vmem:[%s2945_s26 + $0xb0] sm:$0xff]  ;;  %v380_v45 = vsel %vm307_vm0, %v3118_v41, 0.0 }
  0x8a   : > { %v477_v62 = vmul.f32 %v3055_v56, %v3055_v56  ;;  %v374_v3 = vsel %vm307_vm0, %v3066_v1, 0.0 }
  0x8b   : > { %v475_v47 = vmul.f32 %v3041_v46, %v3041_v46 }
  0x8c   : > { %v513_v2 = vsel %vm307_vm0, %v477_v62, 0.0 }
  0x8d   : > { %v507_v49 = vsel %vm307_vm0, %v475_v47, 0.0  ;;  %v325_v50 = vpop.xlane.xlu2 %324  ;;  %v319_v60 = vpop.xlane.xlu1 %318 }
  0x8e   : > { %508 = vadd.xlane.f32.xlu0 %v507_v49  ;;  %v313_v51 = vpop.xlane.xlu0 %312  ;;  %v414_v63 = vmul.f32 %v3037_v42, %v319_v60  ;;  %v416_v25 = vmul.f32 %v3037_v42, %v325_v50  ;;  %v3145_v60 = vld [vmem:[%s2945_s26 + $0xd8] sm:$0xff] }
  0x8f   : > { %v412_v52 = vmul.f32 %v3037_v42, %v313_v51  ;;  %v389_v62 = vsel %vm307_vm0, %v3145_v60, 0.0 }
  0x90   : > { %v3072_v4 = vsub.f32 %v2969_v8, %v414_v63  ;;  %v3110_v35 = vsub.f32 %v2963_v6, %v416_v25 }
  0x91   : > { %v3052_v55 = vsub.f32 %v2966_v7, %v412_v52  ;;  %v415_v7 = vmul.f32 %v3037_v42, %v322_v43 }
  0x92   : > { %v478_v11 = vmul.f32 %v3072_v4, %v3072_v4 }
  0x93   : > { %v476_v58 = vmul.f32 %v3052_v55, %v3052_v55  ;;  %v3085_v8 = vsub.f32 %v2948_v0, %v415_v7 }
  0x94   : > { %v516_v21 = vsel %vm307_vm0, %v478_v11, 0.0  ;;  %v3160_v11 = vld [vmem:[%s2945_s26 + $0x70] sm:$0xff] }
  0x95   : > { %v510_v59 = vsel %vm307_vm0, %v476_v58, 0.0  ;;  %v328_v61 = vpop.xlane.xlu2 %327  ;;  %v479_v0 = vmul.f32 %v3085_v8, %v3085_v8  ;;  %v364_v49 = vpop.xlane.xlu1 %363 }
  0x96   : > { %342 = vadd.xlane.f32.xlu0 %v341_v57  ;;  %511 = vadd.xlane.f32.xlu1 %v510_v59  ;;  %v331_v37 = vpop.xlane.xlu0 %330  ;;  %v417_v39 = vmul.f32 %v3037_v42, %v328_v61 }
  0x97   : > { %v519_v34 = vsel %vm307_vm0, %v479_v0, 0.0  ;;  %v418_v6 = vmul.f32 %v3037_v42, %v331_v37 }
  0x98   : > { %v3124_v43 = vsub.f32 %v2978_v12, %v417_v39  ;;  %v429_v12 = vmul.f32 %v3037_v42, %v364_v49 }
  0x99   : > { %v3131_v48 = vsub.f32 %v2981_v13, %v418_v6 }
  0x9a   : > { %v481_v50 = vmul.f32 %v3124_v43, %v3124_v43  ;;  %v3140_v53 = vsub.f32 %v2984_v14, %v429_v12 }
  0x9b   : > { %v482_v51 = vmul.f32 %v3131_v48, %v3131_v48 }
  0x9c   : > { %v525_v52 = vsel %vm307_vm0, %v481_v50, 0.0  ;;  %v493_v61 = vmul.f32 %v3140_v53, %v3140_v53  ;;  %v3208_v50 = vld [vmem:[%s2945_s26 + $0xe0] sm:$0xff] }
  0x9d   : > { %v367_v5 = vpop.xlane.xlu2 %366  ;;  %v528_v13 = vsel %vm307_vm0, %v482_v51, 0.0  ;;  %v392_v51 = vsel %vm307_vm0, %v3208_v50, 0.0 }
  0x9e   : > { %514 = vadd.xlane.f32.xlu0 %v513_v2  ;;  %375 = vadd.xlane.f32.xlu1 %v374_v3  ;;  %v430_v9 = vmul.f32 %v3037_v42, %v367_v5  ;;  %v337_v57 = vpop.xlane.xlu0 %336  ;;  %v561_v63 = vsel %vm307_vm0, %v493_v61, 0.0  ;;  %v370_v2 = vpop.xlane.xlu1 %369 }
  0x9f   : > { %v420_v59 = vmul.f32 %v3037_v42, %v337_v57  ;;  %v431_v3 = vmul.f32 %v3037_v42, %v370_v2 }
  0xa0   : > { %v3082_v15 = vsub.f32 %v2993_v18, %v430_v9 }
  0xa1   : > { %v3152_v14 = vsub.f32 %v2996_v19, %v420_v59 }
  0xa2   : > { %v494_v16 = vmul.f32 %v3082_v15, %v3082_v15 }
  0xa3   : > { %v484_v5 = vmul.f32 %v3152_v14, %v3152_v14 }
  0xa4   : > { %v564_v22 = vsel %vm307_vm0, %v494_v16, 0.0  ;;  %v3163_v16 = vsub.f32 %v2999_v20, %v431_v3 }
  0xa5   : > { %565 = vadd.xlane.f32.xlu2 %v564_v22  ;;  %v334_v23 = vpop.xlane.xlu2 %333  ;;  %v534_v19 = vsel %vm307_vm0, %v484_v5, 0.0 }
  0xa6   : > { %348 = vadd.xlane.f32.xlu0 %v347_v17  ;;  %517 = vadd.xlane.f32.xlu1 %v516_v21  ;;  %v419_v18 = vmul.f32 %v3037_v42, %v334_v23  ;;  %v350_v21 = vsel %vm307_vm0, %v3160_v11, 0.0  ;;  %v495_v22 = vmul.f32 %v3163_v16, %v3163_v16 }
  0xa8   : > { %v3106_v33 = vsub.f32 %v3008_v24, %v419_v18  ;;  %v480_v24 = vmul.f32 %v3110_v35, %v3110_v35  ;;  %v567_v20 = vsel %vm307_vm0, %v495_v22, 0.0 }
  0xaa   : > { %v483_v40 = vmul.f32 %v3106_v33, %v3106_v33  ;;  %v522_v47 = vsel %vm307_vm0, %v480_v24, 0.0 }
  0xac   : > { %v531_v44 = vsel %vm307_vm0, %v483_v40, 0.0 }
  0xad   : > { %387 = vadd.xlane.f32.xlu2 %v386_v31  ;;  %v373_v58 = vpop.xlane.xlu2 %372  ;;  %v3180_v31 = vld [vmem:[%s2945_s26 + $0x80] sm:$0xff] }
  0xae   : > { %520 = vadd.xlane.f32.xlu0 %v519_v34  ;;  %384 = vadd.xlane.f32.xlu1 %v383_v36  ;;  %v432_v7 = vmul.f32 %v3037_v42, %v373_v58  ;;  %v3183_v34 = vld [vmem:[%s2945_s26 + $0x88] sm:$0xff]  ;;  %v356_v37 = vsel %vm307_vm0, %v3180_v31, 0.0  ;;  %v2654_v58 = vld [vmem:[%s5063_s2] sm:$0xff] }
  0xaf   : > { %v359_v40 = vsel %vm307_vm0, %v3183_v34, 0.0 }
  0xb0   : > { %v3167_v17 = vsub.f32 %v3013_v26, %v432_v7 }
  0xb2   : > { %v496_v23 = vmul.f32 %v3167_v17, %v3167_v17 }
  0xb4   : > { %v570_v0 = vsel %vm307_vm0, %v496_v23, 0.0 }
  0xb5   : > { %532 = vadd.xlane.f32.xlu2 %v531_v44  ;;  %v340_v9 = vpop.xlane.xlu2 %339 }
  0xb6   : > { %381 = vadd.xlane.f32.xlu0 %v380_v45  ;;  %523 = vadd.xlane.f32.xlu1 %v522_v47  ;;  %v421_v25 = vmul.f32 %v3037_v42, %v340_v9 }
  0xb8   : > { %v3191_v39 = vsub.f32 %v3018_v28, %v421_v25 }
  0xbd   : > { %v379_v18 = vpop.xlane.xlu2 %378 }
  0xbe   : > { %526 = vadd.xlane.f32.xlu0 %v525_v52  ;;  %529 = vadd.xlane.f32.xlu1 %v528_v13  ;;  %v434_v26 = vmul.f32 %v3037_v42, %v379_v18 }
  0xc0   : > { %v3186_v36 = vsub.f32 %v3023_v30, %v434_v26  ;;  %v485_v30 = vmul.f32 %v3191_v39, %v3191_v39 }
  0xc2   : > { %v498_v44 = vmul.f32 %v3186_v36, %v3186_v36  ;;  %v537_v47 = vsel %vm307_vm0, %v485_v30, 0.0 }
  0xc4   : > { %v576_v28 = vsel %vm307_vm0, %v498_v44, 0.0 }
  0xc5   : > { %v346_v24 = vpop.xlane.xlu2 %345 }
  0xc6   : > { %390 = vadd.xlane.f32.xlu0 %v389_v62  ;;  %562 = vadd.xlane.f32.xlu1 %v561_v63  ;;  %v423_v6 = vmul.f32 %v3037_v42, %v346_v24 }
  0xc8   : > { %v3201_v45 = vsub.f32 %v3028_v32, %v423_v6  ;;  %v2655_v32 = vld [vmem:[%s5063_s2 + $0x8] sm:$0xff] }
  0xc9   : > { %1172 = vmatpush.bf16.msra.mxu0 %v2655_v32  ;;  %2664 = vmatpush.bf16.msra.mxu3 %v2655_v32 }
  0xca   : > { %v487_v49 = vmul.f32 %v3201_v45, %v3201_v45 }
  0xcc   : > { %v543_v12 = vsel %vm307_vm0, %v487_v49, 0.0 }
  0xcd   : > { %1173 = vmatpush.bf16.msra.mxu0 %v2654_v58  ;;  %2665 = vmatpush.bf16.msra.mxu3 %v2654_v58  ;;  %v355_v25 = vpop.xlane.xlu2 %354  ;;  %v3251_v58 = vld [vmem:[%s2945_s26 + $0xe8] sm:$0xff] }
  0xce   : > { %535 = vadd.xlane.f32.xlu0 %v534_v19  ;;  %351 = vadd.xlane.f32.xlu1 %v350_v21 }
  0xd6   : > { %568 = vadd.xlane.f32.xlu0 %v567_v20  ;;  %571 = vadd.xlane.f32.xlu1 %v570_v0 }
  0xde   : > { %357 = vadd.xlane.f32.xlu0 %v356_v37  ;;  %360 = vadd.xlane.f32.xlu1 %v359_v40 }
  0xe6   : > { %577 = vadd.xlane.f32.xlu0 %v576_v28  ;;  %538 = vadd.xlane.f32.xlu1 %v537_v47 }
  0xee   : > { %544 = vadd.xlane.f32.xlu0 %v543_v12  ;;  %393 = vadd.xlane.f32.xlu1 %v392_v51  ;;  %v273_v12 = vld [vmem:[%s5065_s4] sm:$0x7] }
 0x101   : > { %v509_v52 = vpop.xlane.xlu0 %508 }
 0x102   : > { %v603_v13 = vmul.f32 %v509_v52, %v3037_v42 }
 0x104   : > { %v635_v57 = vadd.f32 1e-06, %v603_v13 }
 0x106   : > { %2686 = vrsqrt.f32 %v635_v57  ;;  %vm673_vm3 = vweird.f32 %v635_v57 }
 0x109   : > { %v512_v59 = vpop.xlane.xlu1 %511  ;;  %v343_v61 = vpop.xlane.xlu0 %342 }
 0x10a   : > { %v604_v62 = vmul.f32 %v512_v59, %v3037_v42  ;;  %v422_v63 = vmul.f32 %v3037_v42, %v343_v61 }
 0x10c   : > { %v2687_v2 = vpop.eup %2686  ;;  %v636_v3 = vadd.f32 1e-06, %v604_v62  ;;  %v3223_v5 = vsub.f32 %v3049_v54, %v422_v63  ;;  %v3258_v62 = vperm.slane %v273_v12, 0 }
 0x10d   : > { %v668_v7 = vmul.f32 %v2687_v2, %v635_v57  ;;  %vm674_vm2 = vweird.f32 %v2687_v2 }
 0x10e   : > { %2688 = vrsqrt.f32 %v636_v3  ;;  %v486_v9 = vmul.f32 %v3223_v5, %v3223_v5  ;;  %vm3239_vm4 = vmor %vm673_vm3, %vm674_vm2  ;;  %vm683_vm5 = vweird.f32 %v636_v3 }
 0x10f   : > { %v669_v19 = vmul.f32 %v2687_v2, %v668_v7 }
 0x110   : > { %v540_v21 = vsel %vm307_vm0, %v486_v9, 0.0 }
 0x111   : > { %v670_v22 = vmul.f32 0.5, %v669_v19  ;;  %v376_v23 = vpop.xlane.xlu1 %375  ;;  %541 = vadd.xlane.f32.xlu2 %v540_v21  ;;  %v515_v18 = vpop.xlane.xlu0 %514  ;;  %v395_v19 = vsel %vm307_vm0, %v3251_v58, 0.0 }
 0x112   : > { %v433_v20 = vmul.f32 %v3037_v42, %v376_v23  ;;  %v605_v0 = vmul.f32 %v515_v18, %v3037_v42 }
 0x113   : > { %v671_v26 = vsub.f32 1.5, %v670_v22 }
 0x114   : > { %v2689_v54 = vpop.eup %2688  ;;  %v3231_v37 = vsub.f32 %v3066_v1, %v433_v20  ;;  %v3233_v40 = vadd.f32 1e-06, %v605_v0  ;;  %v426_v20 = vmul.f32 %v3037_v42, %v355_v25 }
 0x115   : > { %v678_v24 = vmul.f32 %v2689_v54, %v636_v3  ;;  %v672_v6 = vmul.f32 %v2687_v2, %v671_v26  ;;  %vm684_vm6 = vweird.f32 %v2689_v54 }
 0x116   : > { %2690 = vrsqrt.f32 %v3233_v40  ;;  %v497_v44 = vmul.f32 %v3231_v37, %v3231_v37  ;;  %vm685_vm7 = vmor %vm683_vm5, %vm684_vm6  ;;  %vm693_vm11 = vweird.f32 %v3233_v40 }
 0x117   : > { %v679_v30 = vmul.f32 %v2689_v54, %v678_v24  ;;  %v676_v51 = vsel %vm3239_vm4, %v2687_v2, %v672_v6  ;;  %v3273_v6 = vperm.slane %v273_v12, 1 }
 0x118   : > { %v573_v28 = vsel %vm307_vm0, %v497_v44, 0.0  ;;  %v987_v63 = vmul.f32 %v676_v51, %v3041_v46  ;;  %v566_v9 = vpop.xlane.xlu2 %565  ;;  %v3287_v51 = vsub.f32 %v3033_v38, %v426_v20 }
 0x119   : > { %v680_v1 = vmul.f32 0.5, %v679_v30  ;;  %574 = vadd.xlane.f32.xlu2 %v573_v28  ;;  %v349_v49 = vpop.xlane.xlu0 %348  ;;  %v518_v32 = vpop.xlane.xlu1 %517  ;;  %v622_v23 = vmul.f32 %v566_v9, %v3037_v42  ;;  %v3279_v28 = vld [vmem:[%s2945_s26 + $0xf0] sm:$0xff] }
 0x11a   : > { %v424_v52 = vmul.f32 %v3037_v42, %v349_v49  ;;  %v606_v57 = vmul.f32 %v518_v32, %v3037_v42  ;;  %v1020_v24 = vmul.f32 %v3258_v62, %v987_v63 }
 0x11b   : > { %v681_v13 = vsub.f32 1.5, %v680_v1  ;;  %v3281_v47 = vadd.f32 1e-06, %v622_v23 }
 0x11c   : > { %v3253_v59 = vpop.eup %2690  ;;  %v3256_v61 = vsub.f32 %v3077_v10, %v424_v52  ;;  %v638_v3 = vadd.f32 1e-06, %v606_v57  ;;  %v1053_v52 = vadd.f32 %v3273_v6, %v1020_v24  ;;  %v398_v57 = vsel %vm307_vm0, %v3279_v28, 0.0 }
 0x11d   : > { %v682_v2 = vmul.f32 %v2689_v54, %v681_v13  ;;  %v688_v7 = vmul.f32 %v3253_v59, %v3233_v40  ;;  %vm694_vm8 = vweird.f32 %v3253_v59  ;;  %vm863_vm5 = vweird.f32 %v3281_v47 }
 0x11e   : > { %v488_v21 = vmul.f32 %v3256_v61, %v3256_v61  ;;  %2692 = vrsqrt.f32 %v638_v3  ;;  %vm703_vm9 = vweird.f32 %v638_v3  ;;  %vm695_vm12 = vmor %vm693_vm11, %vm694_vm8 }
 0x11f   : > { %v686_v22 = vsel %vm685_vm7, %v2689_v54, %v682_v2  ;;  %v689_v10 = vmul.f32 %v3253_v59, %v688_v7 }
 0x120   : > { %v988_v46 = vmul.f32 %v686_v22, %v3052_v55  ;;  %v546_v18 = vsel %vm307_vm0, %v488_v21, 0.0  ;;  %v388_v7 = vpop.xlane.xlu2 %387  ;;  %v490_v21 = vmul.f32 %v3287_v51, %v3287_v51 }
 0x121   : > { %v690_v0 = vmul.f32 0.5, %v689_v10  ;;  %396 = vadd.xlane.f32.xlu2 %v395_v19  ;;  %547 = vadd.xlane.f32.xlu1 %v546_v18  ;;  %v521_v26 = vpop.xlane.xlu0 %520  ;;  %v385_v54 = vpop.xlane.xlu1 %384 }
 0x122   : > { %v607_v44 = vmul.f32 %v521_v26, %v3037_v42  ;;  %v1021_v30 = vmul.f32 %v3258_v62, %v988_v46  ;;  %v436_v55 = vmul.f32 %v3037_v42, %v385_v54 }
 0x123   : > { %v691_v12 = vsub.f32 1.5, %v690_v0 }
 0x124   : > { %v3283_v25 = vadd.f32 1e-06, %v607_v44  ;;  %v1054_v1 = vadd.f32 %v3273_v6, %v1021_v30  ;;  %v2693_v49 = vpop.eup %2692  ;;  %v3290_v32 = vsub.f32 %v3101_v29, %v436_v55  ;;  %v552_v44 = vsel %vm307_vm0, %v490_v21, 0.0 }
 0x125   : > { %v698_v13 = vmul.f32 %v2693_v49, %v638_v3  ;;  %v692_v9 = vmul.f32 %v3253_v59, %v691_v12  ;;  %vm704_vm10 = vweird.f32 %v2693_v49 }
 0x126   : > { %2694 = vrsqrt.f32 %v3283_v25  ;;  %v1085_v63 = vpack.c.bf16 %v1054_v1, %v1053_v52  ;;  %v500_v2 = vmul.f32 %v3290_v32, %v3290_v32  ;;  %vm705_vm13 = vmor %vm703_vm9, %vm704_vm10  ;;  %vm713_vm15 = vweird.f32 %v3283_v25 }
 0x127   : > { %2696 = vrsqrt.f32 %v3281_v47  ;;  %v699_v38 = vmul.f32 %v2693_v49, %v698_v13  ;;  %v696_v3 = vsel %vm695_vm12, %v3253_v59, %v692_v9  ;;  %v437_v13 = vmul.f32 %v3037_v42, %v388_v7 }
 0x128   : > { %2601 = vmatmul.msk.bf16.vlgmr.msra.gmra.mxu0 %vm307_vm0, %v1085_v63  ;;  %v582_v29 = vsel %vm307_vm0, %v500_v2, 0.0  ;;  %v533_v2 = vpop.xlane.xlu2 %532 }
 0x129   : > { %399 = vadd.xlane.f32.xlu1 %v398_v57  ;;  %v382_v19 = vpop.xlane.xlu0 %381  ;;  %v700_v22 = vmul.f32 0.5, %v699_v38  ;;  %v524_v10 = vpop.xlane.xlu1 %523  ;;  %583 = vadd.xlane.f32.xlu0 %v582_v29 }
 0x12a   : > { %v435_v46 = vmul.f32 %v3037_v42, %v382_v19  ;;  %v608_v23 = vmul.f32 %v524_v10, %v3037_v42  ;;  %v3341_v10 = vsub.f32 %v3098_v27, %v437_v13 }
 0x12b   : > { %v701_v20 = vsub.f32 1.5, %v700_v22 }
 0x12c   : > { %v3308_v18 = vpop.eup %2694  ;;  %v3313_v0 = vsub.f32 %v3118_v41, %v435_v46  ;;  %v640_v24 = vadd.f32 1e-06, %v608_v23  ;;  %v989_v41 = vmul.f32 %v696_v3, %v3055_v56  ;;  %v611_v46 = vmul.f32 %v533_v2, %v3037_v42 }
 0x12d   : > { %v708_v26 = vmul.f32 %v3308_v18, %v3283_v25  ;;  %v3318_v54 = vpop.eup %2696  ;;  %v702_v40 = vmul.f32 %v2693_v49, %v701_v20  ;;  %vm714_vm14 = vweird.f32 %v3308_v18 }
 0x12e   : > { %v499_v30 = vmul.f32 %v3313_v0, %v3313_v0  ;;  %2698 = vrsqrt.f32 %v640_v24  ;;  %v858_v12 = vmul.f32 %v3318_v54, %v3281_v47  ;;  %v1022_v21 = vmul.f32 %v3258_v62, %v989_v41  ;;  %vm3359_vm1 = vmor %vm713_vm15, %vm714_vm14 }
 0x12f   : > { %v709_v55 = vmul.f32 %v3308_v18, %v708_v26  ;;  %v706_v59 = vsel %vm705_vm13, %v2693_v49, %v702_v40  ;;  %v3333_v49 = vld [vmem:[%s2945_s26 + $0xf8] sm:$0xff]  ;;  %vm723_vm2 = vweird.f32 %v640_v24  ;;  %vm864_vm6 = vweird.f32 %v3318_v54 }
 0x130   : > { %v579_v1 = vsel %vm307_vm0, %v499_v30, 0.0  ;;  %v990_v52 = vmul.f32 %v706_v59, %v3072_v4  ;;  %v859_v22 = vmul.f32 %v3318_v54, %v858_v12  ;;  %v401_v3 = vsel %vm307_vm0, %v3333_v49, 0.0  ;;  %vm3409_vm11 = vmor %vm863_vm5, %vm864_vm6 }
 0x131   : > { %v710_v57 = vmul.f32 0.5, %v709_v55  ;;  %553 = vadd.xlane.f32.xlu1 %v552_v44  ;;  %580 = vadd.xlane.f32.xlu2 %v579_v1  ;;  %v527_v63 = vpop.xlane.xlu0 %526  ;;  %v530_v38 = vpop.xlane.xlu1 %529  ;;  %v1055_v27 = vadd.f32 %v3273_v6, %v1022_v21  ;;  %v3355_v55 = vadd.f32 1e-06, %v611_v46  ;;  %v501_v59 = vmul.f32 %v3341_v10, %v3341_v10 }
 0x132   : > { %v609_v9 = vmul.f32 %v527_v63, %v3037_v42  ;;  %v610_v56 = vmul.f32 %v530_v38, %v3037_v42  ;;  %v1023_v4 = vmul.f32 %v3258_v62, %v990_v52  ;;  %v860_v30 = vmul.f32 0.5, %v859_v22 }
 0x133   : > { %v711_v29 = vsub.f32 1.5, %v710_v57 }
 0x134   : > { %v3335_v19 = vadd.f32 1e-06, %v609_v9  ;;  %v2699_v7 = vpop.eup %2698  ;;  %v3344_v23 = vadd.f32 1e-06, %v610_v56  ;;  %v1056_v44 = vadd.f32 %v3273_v6, %v1023_v4  ;;  %v861_v9 = vsub.f32 1.5, %v860_v30 }
 0x135   : > { %v718_v20 = vmul.f32 %v2699_v7, %v640_v24  ;;  %v712_v26 = vmul.f32 %v3308_v18, %v711_v29  ;;  %vm724_vm3 = vweird.f32 %v2699_v7  ;;  %v585_v56 = vsel %vm307_vm0, %v501_v59, 0.0 }
 0x136   : > { %2700 = vrsqrt.f32 %v3335_v19  ;;  %v1086_v52 = vpack.c.bf16 %v1056_v44, %v1055_v27  ;;  %vm725_vm4 = vmor %vm723_vm2, %vm724_vm3  ;;  %vm733_vm7 = vweird.f32 %v3335_v19  ;;  %vm743_vm9 = vweird.f32 %v3344_v23 }
 0x137   : > { %2702 = vrsqrt.f32 %v3344_v23  ;;  %v719_v40 = vmul.f32 %v2699_v7, %v718_v20  ;;  %v716_v25 = vsel %vm3359_vm1, %v3308_v18, %v712_v26  ;;  %vm753_vm2 = vweird.f32 %v3355_v55 }
 0x138   : > { %2602 = vmatmul.msk.bf16.gmra.mxu0 %vm307_vm0, %v1086_v52  ;;  %v991_v18 = vmul.f32 %v716_v25, %v3085_v8  ;;  %2704 = vrsqrt.f32 %v3355_v55 }
 0x139   : > { %402 = vadd.xlane.f32.xlu2 %v401_v3  ;;  %v391_v41 = vpop.xlane.xlu0 %390  ;;  %v720_v12 = vmul.f32 0.5, %v719_v40  ;;  %v563_v13 = vpop.xlane.xlu1 %562  ;;  %v862_v40 = vmul.f32 %v3318_v54, %v861_v9 }
 0x13a   : > { %v621_v57 = vmul.f32 %v563_v13, %v3037_v42  ;;  %v1024_v59 = vmul.f32 %v3258_v62, %v991_v18  ;;  %v438_v1 = vmul.f32 %v3037_v42, %v391_v41 }
 0x13b   : > { %v721_v2 = vsub.f32 1.5, %v720_v12 }
 0x13c   : > { %v3367_v63 = vpop.eup %2700  ;;  %v3374_v29 = vadd.f32 1e-06, %v621_v57  ;;  %v3423_v47 = vsub.f32 %v3145_v60, %v438_v1 }
 0x13d   : > { %v3370_v38 = vpop.eup %2702  ;;  %v728_v24 = vmul.f32 %v3367_v63, %v3335_v19  ;;  %v722_v21 = vmul.f32 %v2699_v7, %v721_v2  ;;  %vm734_vm8 = vweird.f32 %v3367_v63 }
 0x13e   : > { %v738_v4 = vmul.f32 %v3370_v38, %v3344_v23  ;;  %2706 = vrsqrt.f32 %v3374_v29  ;;  %v3393_v13 = vpop.eup %2704  ;;  %vm744_vm10 = vweird.f32 %v3370_v38  ;;  %v1057_v23 = vadd.f32 %v3273_v6, %v1024_v59  ;;  %vm3418_vm12 = vmor %vm733_vm7, %vm734_vm8 }
 0x13f   : > { %v729_v22 = vmul.f32 %v3367_v63, %v728_v24  ;;  %v726_v46 = vsel %vm725_vm4, %v2699_v7, %v722_v21  ;;  %v748_v21 = vmul.f32 %v3393_v13, %v3355_v55  ;;  %vm3429_vm13 = vmor %vm743_vm9, %vm744_vm10  ;;  %vm853_vm14 = vweird.f32 %v3374_v29 }
 0x140   : > { %v739_v20 = vmul.f32 %v3370_v38, %v738_v4  ;;  %v992_v3 = vmul.f32 %v726_v46, %v3110_v35  ;;  %vm754_vm5 = vweird.f32 %v3393_v13 }
 0x141   : > { %v730_v8 = vmul.f32 0.5, %v729_v22  ;;  %586 = vadd.xlane.f32.xlu2 %v585_v56  ;;  %v536_v26 = vpop.xlane.xlu0 %535  ;;  %v352_v44 = vpop.xlane.xlu1 %351  ;;  %vm3507_vm9 = vmor %vm753_vm2, %vm754_vm5 }
 0x142   : > { %v740_v27 = vmul.f32 0.5, %v739_v20  ;;  %v612_v30 = vmul.f32 %v536_v26, %v3037_v42  ;;  %v425_v12 = vmul.f32 %v3037_v42, %v352_v44  ;;  %v1025_v52 = vmul.f32 %v3258_v62, %v992_v3 }
 0x143   : > { %v731_v7 = vsub.f32 1.5, %v730_v8  ;;  %v866_v20 = vsel %vm3409_vm11, %v3318_v54, %v862_v40  ;;  %v502_v40 = vmul.f32 %v3423_v47, %v3423_v47 }
 0x144   : > { %v741_v35 = vsub.f32 1.5, %v740_v27  ;;  %v3397_v25 = vadd.f32 1e-06, %v612_v30  ;;  %v2707_v57 = vpop.eup %2706  ;;  %v3402_v41 = vsub.f32 %v3160_v11, %v425_v12  ;;  %v1058_v2 = vadd.f32 %v3273_v6, %v1025_v52 }
 0x145   : > { %v732_v9 = vmul.f32 %v3367_v63, %v731_v7  ;;  %v848_v24 = vmul.f32 %v2707_v57, %v3374_v29  ;;  %vm854_vm15 = vweird.f32 %v2707_v57  ;;  %v1006_v7 = vmul.f32 %v866_v20, %v3082_v15 }
 0x146   : > { %2708 = vrsqrt.f32 %v3397_v25  ;;  %v742_v11 = vmul.f32 %v3370_v38, %v741_v35  ;;  %v489_v18 = vmul.f32 %v3402_v41, %v3402_v41  ;;  %v1087_v46 = vpack.c.bf16 %v1058_v2, %v1057_v23  ;;  %vm855_vm1 = vmor %vm853_vm14, %vm854_vm15 }
 0x147   : > { %v849_v22 = vmul.f32 %v2707_v57, %v848_v24  ;;  %v736_v8 = vsel %vm3418_vm12, %v3367_v63, %v732_v9  ;;  %v749_v63 = vmul.f32 %v3393_v13, %v748_v21  ;;  %v588_v9 = vsel %vm307_vm0, %v502_v40, 0.0 }
 0x148   : > { %v549_v60 = vsel %vm307_vm0, %v489_v18, 0.0  ;;  %v746_v30 = vsel %vm3429_vm13, %v3370_v38, %v742_v11  ;;  %2603 = vmatmul.msk.bf16.gmra.mxu0 %vm307_vm0, %v1087_v46  ;;  %v993_v52 = vmul.f32 %v736_v8, %v3124_v43  ;;  %v1039_v29 = vmul.f32 %v3258_v62, %v1006_v7 }
 0x149   : > { %v569_v3 = vpop.xlane.xlu0 %568  ;;  %v850_v26 = vmul.f32 0.5, %v849_v22  ;;  %v572_v27 = vpop.xlane.xlu1 %571  ;;  %550 = vadd.xlane.f32.xlu0 %v549_v60  ;;  %v994_v2 = vmul.f32 %v746_v30, %v3131_v48  ;;  %v750_v43 = vmul.f32 0.5, %v749_v63  ;;  %vm763_vm3 = vweird.f32 %v3397_v25 }
 0x14a   : > { %v623_v44 = vmul.f32 %v569_v3, %v3037_v42  ;;  %v624_v54 = vmul.f32 %v572_v27, %v3037_v42  ;;  %v1026_v18 = vmul.f32 %v3258_v62, %v993_v52  ;;  %v1072_v3 = vadd.f32 %v3273_v6, %v1039_v29 }
 0x14b   : > { %v851_v1 = vsub.f32 1.5, %v850_v26  ;;  %v1027_v4 = vmul.f32 %v3258_v62, %v994_v2  ;;  %v751_v60 = vsub.f32 1.5, %v750_v43 }
 0x14c   : > { %v3448_v59 = vpop.eup %2708  ;;  %v3453_v12 = vadd.f32 1e-06, %v623_v44  ;;  %v3460_v35 = vadd.f32 1e-06, %v624_v54  ;;  %v1059_v44 = vadd.f32 %v3273_v6, %v1026_v18 }
 0x14d   : > { %v758_v38 = vmul.f32 %v3448_v59, %v3397_v25  ;;  %v852_v15 = vmul.f32 %v2707_v57, %v851_v1  ;;  %vm764_vm4 = vweird.f32 %v3448_v59  ;;  %v1060_v54 = vadd.f32 %v3273_v6, %v1027_v4 }
 0x14e   : > { %2710 = vrsqrt.f32 %v3453_v12  ;;  %v752_v1 = vmul.f32 %v3393_v13, %v751_v60  ;;  %vm3498_vm6 = vmor %vm763_vm3, %vm764_vm4  ;;  %vm873_vm7 = vweird.f32 %v3453_v12  ;;  %vm883_vm10 = vweird.f32 %v3460_v35 }
 0x14f   : > { %v759_v19 = vmul.f32 %v3448_v59, %v758_v38  ;;  %2712 = vrsqrt.f32 %v3460_v35  ;;  %v856_v24 = vsel %vm855_vm1, %v2707_v57, %v852_v15 }
 0x150   : > { %v1005_v23 = vmul.f32 %v856_v24, %v3140_v53  ;;  %v1088_v24 = vpack.c.bf16 %v1060_v54, %v1059_v44  ;;  %v756_v55 = vsel %vm3507_vm9, %v3393_v13, %v752_v1 }
 0x151   : > { %v760_v11 = vmul.f32 0.5, %v759_v19  ;;  %v358_v56 = vpop.xlane.xlu0 %357  ;;  %v361_v48 = vpop.xlane.xlu1 %360  ;;  %589 = vadd.xlane.f32.xlu0 %v588_v9  ;;  %v995_v4 = vmul.f32 %v756_v55, %v3106_v33 }
 0x152   : > { %v427_v21 = vmul.f32 %v3037_v42, %v358_v56  ;;  %v428_v46 = vmul.f32 %v3037_v42, %v361_v48  ;;  %v1038_v57 = vmul.f32 %v3258_v62, %v1005_v23 }
 0x153   : > { %v761_v22 = vsub.f32 1.5, %v760_v11 }
 0x154   : > { %v2711_v20 = vpop.eup %2710  ;;  %v3477_v53 = vsub.f32 %v3180_v31, %v427_v21  ;;  %v3483_v27 = vsub.f32 %v3183_v34, %v428_v46  ;;  %v1071_v40 = vadd.f32 %v3273_v6, %v1038_v57 }
 0x155   : > { %v2713_v8 = vpop.eup %2712  ;;  %v868_v26 = vmul.f32 %v2711_v20, %v3453_v12  ;;  %v762_v7 = vmul.f32 %v3448_v59, %v761_v22  ;;  %vm874_vm8 = vweird.f32 %v2711_v20 }
 0x156   : > { %v878_v30 = vmul.f32 %v2713_v8, %v3460_v35  ;;  %v491_v31 = vmul.f32 %v3477_v53, %v3477_v53  ;;  %v492_v34 = vmul.f32 %v3483_v27, %v3483_v27  ;;  %v1094_v2 = vpack.c.bf16 %v1072_v3, %v1071_v40  ;;  %vm875_vm12 = vmor %vm873_vm7, %vm874_vm8 }
 0x157   : > { %v869_v63 = vmul.f32 %v2711_v20, %v868_v26  ;;  %vm884_vm11 = vweird.f32 %v2713_v8  ;;  %v766_v23 = vsel %vm3498_vm6, %v3448_v59, %v762_v7 }
 0x158   : > { %v879_v38 = vmul.f32 %v2713_v8, %v878_v30  ;;  %v555_v15 = vsel %vm307_vm0, %v491_v31, 0.0  ;;  %v558_v9 = vsel %vm307_vm0, %v492_v34, 0.0  ;;  %2610 = vmatmul.msk.bf16.vlgmr.msra.gmra.mxu3 %vm307_vm0, %v1094_v2  ;;  %2604 = vmatmul.msk.bf16.gmra.mxu0 %vm307_vm0, %v1088_v24  ;;  %vm885_vm13 = vmor %vm883_vm10, %vm884_vm11  ;;  %v996_v18 = vmul.f32 %v766_v23, %v3152_v14 }
 0x159   : > { %v870_v19 = vmul.f32 0.5, %v869_v63  ;;  %556 = vadd.xlane.f32.xlu1 %v555_v15  ;;  %v539_v29 = vpop.xlane.xlu1 %538  ;;  %559 = vadd.xlane.f32.xlu2 %v558_v9  ;;  %v1028_v14 = vmul.f32 %v3258_v62, %v995_v4  ;;  %v578_v31 = vpop.xlane.xlu0 %577 }
 0x15a   : > { %v880_v25 = vmul.f32 0.5, %v879_v38  ;;  %v1029_v57 = vmul.f32 %v3258_v62, %v996_v18  ;;  %v626_v7 = vmul.f32 %v578_v31, %v3037_v42 }
 0x15b   : > { %v871_v11 = vsub.f32 1.5, %v870_v19  ;;  %v1061_v44 = vadd.f32 %v3273_v6, %v1028_v14 }
 0x15c   : > { %v881_v56 = vsub.f32 1.5, %v880_v25  ;;  %v658_v63 = vadd.f32 1e-06, %v626_v7 }
 0x15d   : > { %v872_v35 = vmul.f32 %v2711_v20, %v871_v11 }
 0x15e   : > { %v882_v48 = vmul.f32 %v2713_v8, %v881_v56  ;;  %vm903_vm2 = vweird.f32 %v658_v63 }
 0x15f   : > { %v876_v21 = vsel %vm875_vm12, %v2711_v20, %v872_v35 }
 0x160   : > { %v886_v59 = vsel %vm885_vm13, %v2713_v8, %v882_v48  ;;  %v1007_v22 = vmul.f32 %v876_v21, %v3163_v16 }
 0x161   : > { %v1008_v12 = vmul.f32 %v886_v59, %v3167_v17  ;;  %v394_v46 = vpop.xlane.xlu1 %393  ;;  %v1062_v17 = vadd.f32 %v3273_v6, %v1029_v57  ;;  %v545_v1 = vpop.xlane.xlu0 %544 }
 0x162   : > { %v1040_v60 = vmul.f32 %v3258_v62, %v1007_v22  ;;  %v439_v13 = vmul.f32 %v3037_v42, %v394_v46  ;;  %v615_v38 = vmul.f32 %v545_v1, %v3037_v42 }
 0x163   : > { %v1041_v3 = vmul.f32 %v3258_v62, %v1008_v12  ;;  %v1089_v54 = vpack.c.bf16 %v1062_v17, %v1061_v44 }
 0x164   : > { %v1073_v20 = vadd.f32 %v3273_v6, %v1040_v60  ;;  %v3533_v33 = vsub.f32 %v3208_v50, %v439_v13  ;;  %v613_v50 = vmul.f32 %v539_v29, %v3037_v42  ;;  %v3546_v15 = vadd.f32 1e-06, %v615_v38 }
 0x165   : > { %v1074_v16 = vadd.f32 %v3273_v6, %v1041_v3 }
 0x166   : > { %v503_v26 = vmul.f32 %v3533_v33, %v3533_v33  ;;  %v645_v40 = vadd.f32 1e-06, %v613_v50  ;;  %vm793_vm8 = vweird.f32 %v3546_v15 }
 0x167   : > { %v1095_v8 = vpack.c.bf16 %v1074_v16, %v1073_v20 }
 0x168   : > { %v591_v30 = vsel %vm307_vm0, %v503_v26, 0.0  ;;  %2605 = vmatmul.msk.bf16.gmra.mxu0 %vm307_vm0, %v1089_v54  ;;  %2714 = vrsqrt.f32 %v645_v40  ;;  %vm773_vm14 = vweird.f32 %v645_v40 }
 0x169   : > { %2611 = vmatmul.msk.bf16.gmra.mxu3 %vm307_vm0, %v1095_v8  ;;  %592 = vadd.xlane.f32.xlu0 %v591_v30  ;;  %2716 = vrsqrt.f32 %v658_v63 }
 0x16a   : > { %2718 = vrsqrt.f32 %v3546_v15 }
 0x16e   : > { %v2715_v34 = vpop.eup %2714 }
 0x16f   : > { %v768_v52 = vmul.f32 %v2715_v34, %v645_v40  ;;  %v3549_v43 = vpop.eup %2716  ;;  %vm774_vm15 = vweird.f32 %v2715_v34 }
 0x170   : > { %v898_v29 = vmul.f32 %v3549_v43, %v658_v63  ;;  %v3555_v35 = vpop.eup %2718  ;;  %vm3557_vm1 = vmor %vm773_vm14, %vm774_vm15  ;;  %vm904_vm4 = vweird.f32 %v3549_v43 }
 0x171   : > { %v769_v2 = vmul.f32 %v2715_v34, %v768_v52  ;;  %v788_v12 = vmul.f32 %v3555_v35, %v3546_v15  ;;  %vm3580_vm7 = vmor %vm903_vm2, %vm904_vm4  ;;  %vm794_vm11 = vweird.f32 %v3555_v35 }
 0x172   : > { %v899_v56 = vmul.f32 %v3549_v43, %v898_v29  ;;  %vm3607_vm13 = vmor %vm793_vm8, %vm794_vm11 }
 0x173   : > { %v770_v24 = vmul.f32 0.5, %v769_v2  ;;  %v789_v20 = vmul.f32 %v3555_v35, %v788_v12 }
 0x174   : > { %v900_v22 = vmul.f32 0.5, %v899_v56 }
 0x175   : > { %v771_v23 = vsub.f32 1.5, %v770_v24  ;;  %v790_v7 = vmul.f32 0.5, %v789_v20 }
 0x176   : > { %v901_v14 = vsub.f32 1.5, %v900_v22 }
 0x177   : > { %v772_v21 = vmul.f32 %v2715_v34, %v771_v23 }
 0x178   : > { %v902_v31 = vmul.f32 %v3549_v43, %v901_v14 }
 0x179   : > { %v776_v57 = vsel %vm3557_vm1, %v2715_v34, %v772_v21 }
 0x17a   : > { %v997_v44 = vmul.f32 %v776_v57, %v3191_v39  ;;  %v906_v63 = vsel %vm3580_vm7, %v3549_v43, %v902_v31 }
 0x17b   : > { %v1010_v22 = vmul.f32 %v906_v63, %v3186_v36 }
 0x17c   : > { %v1030_v2 = vmul.f32 %v3258_v62, %v997_v44 }
 0x184   : > { %v542_v19 = vpop.xlane.xlu2 %541 }
 0x185   : > { %v614_v9 = vmul.f32 %v542_v19, %v3037_v42 }
 0x187   : > { %v646_v25 = vadd.f32 1e-06, %v614_v9 }
 0x189   : > { %2720 = vrsqrt.f32 %v646_v25  ;;  %vm783_vm5 = vweird.f32 %v646_v25 }
 0x18c   : > { %v575_v11 = vpop.xlane.xlu2 %574 }
 0x18d   : > { %v625_v55 = vmul.f32 %v575_v11, %v3037_v42 }
 0x18f   : > { %v2721_v18 = vpop.eup %2720  ;;  %v657_v48 = vadd.f32 1e-06, %v625_v55 }
 0x190   : > { %v778_v4 = vmul.f32 %v2721_v18, %v646_v25  ;;  %vm784_vm3 = vweird.f32 %v2721_v18  ;;  %v791_v25 = vsub.f32 1.5, %v790_v7 }
 0x191   : > { %2722 = vrsqrt.f32 %v657_v48  ;;  %vm785_vm6 = vmor %vm783_vm5, %vm784_vm3  ;;  %vm893_vm9 = vweird.f32 %v657_v48 }
 0x192   : > { %v779_v46 = vmul.f32 %v2721_v18, %v778_v4 }
 0x194   : > { %v780_v60 = vmul.f32 0.5, %v779_v46  ;;  %v397_v13 = vpop.xlane.xlu2 %396  ;;  %v548_v3 = vpop.xlane.xlu1 %547 }
 0x195   : > { %v440_v16 = vmul.f32 %v3037_v42, %v397_v13  ;;  %v616_v17 = vmul.f32 %v548_v3, %v3037_v42 }
 0x196   : > { %v781_v8 = vsub.f32 1.5, %v780_v60 }
 0x197   : > { %v2723_v26 = vpop.eup %2722  ;;  %v3571_v30 = vsub.f32 %v3251_v58, %v440_v16  ;;  %v3573_v54 = vadd.f32 1e-06, %v616_v17  ;;  %v1043_v17 = vmul.f32 %v3258_v62, %v1010_v22 }
 0x198   : > { %v782_v50 = vmul.f32 %v2721_v18, %v781_v8  ;;  %v888_v40 = vmul.f32 %v2723_v26, %v657_v48  ;;  %vm894_vm10 = vweird.f32 %v2723_v26  ;;  %v792_v48 = vmul.f32 %v3555_v35, %v791_v25 }
 0x199   : > { %2724 = vrsqrt.f32 %v3573_v54  ;;  %v504_v34 = vmul.f32 %v3571_v30, %v3571_v30  ;;  %vm895_vm12 = vmor %vm893_vm9, %vm894_vm10  ;;  %vm803_vm15 = vweird.f32 %v3573_v54 }
 0x19a   : > { %v786_v58 = vsel %vm785_vm6, %v2721_v18, %v782_v50  ;;  %v889_v1 = vmul.f32 %v2723_v26, %v888_v40  ;;  %v1063_v18 = vadd.f32 %v3273_v6, %v1030_v2  ;;  %v796_v15 = vsel %vm3607_vm13, %v3555_v35, %v792_v48 }
 0x19b   : > { %v998_v52 = vmul.f32 %v786_v58, %v3223_v5  ;;  %v594_v38 = vsel %vm307_vm0, %v504_v34, 0.0  ;;  %v999_v50 = vmul.f32 %v796_v15, %v3201_v45  ;;  %v1076_v35 = vadd.f32 %v3273_v6, %v1043_v17 }
 0x19c   : > { %v890_v19 = vmul.f32 0.5, %v889_v1  ;;  %v400_v9 = vpop.xlane.xlu1 %399  ;;  %595 = vadd.xlane.f32.xlu1 %v594_v38  ;;  %v584_v29 = vpop.xlane.xlu0 %583 }
 0x19d   : > { %v441_v24 = vmul.f32 %v3037_v42, %v400_v9  ;;  %v1031_v23 = vmul.f32 %v3258_v62, %v998_v52  ;;  %v628_v11 = vmul.f32 %v584_v29, %v3037_v42  ;;  %v1032_v52 = vmul.f32 %v3258_v62, %v999_v50 }
 0x19e   : > { %v891_v5 = vsub.f32 1.5, %v890_v19 }
 0x19f   : > { %v2725_v56 = vpop.eup %2724  ;;  %v3596_v55 = vsub.f32 %v3279_v28, %v441_v24  ;;  %v1064_v43 = vadd.f32 %v3273_v6, %v1031_v23  ;;  %v660_v59 = vadd.f32 1e-06, %v628_v11  ;;  %v1065_v9 = vadd.f32 %v3273_v6, %v1032_v52 }
 0x1a0   : > { %v892_v21 = vmul.f32 %v2723_v26, %v891_v5  ;;  %v798_v4 = vmul.f32 %v2725_v56, %v3573_v54  ;;  %vm804_vm14 = vweird.f32 %v2725_v56 }
 0x1a1   : > { %v1090_v12 = vpack.c.bf16 %v1064_v43, %v1063_v18  ;;  %v505_v46 = vmul.f32 %v3596_v55, %v3596_v55  ;;  %2726 = vrsqrt.f32 %v660_v59  ;;  %vm805_vm1 = vmor %vm803_vm15, %vm804_vm14  ;;  %vm923_vm2 = vweird.f32 %v660_v59 }
 0x1a2   : > { %v896_v57 = vsel %vm895_vm12, %v2723_v26, %v892_v21  ;;  %v799_v60 = vmul.f32 %v2725_v56, %v798_v4 }
 0x1a3   : > { %v1009_v13 = vmul.f32 %v896_v57, %v3231_v37  ;;  %2606 = vmatmul.msk.bf16.gmra.mxu0 %vm307_vm0, %v1090_v12  ;;  %v597_v36 = vsel %vm307_vm0, %v505_v46, 0.0 }
 0x1a4   : > { %v800_v3 = vmul.f32 0.5, %v799_v60  ;;  %598 = vadd.xlane.f32.xlu2 %v597_v36  ;;  %v581_v14 = vpop.xlane.xlu2 %580 }
 0x1a5   : > { %v627_v20 = vmul.f32 %v581_v14, %v3037_v42  ;;  %v1042_v16 = vmul.f32 %v3258_v62, %v1009_v13 }
 0x1a6   : > { %v801_v8 = vsub.f32 1.5, %v800_v3 }
 0x1a7   : > { %v659_v37 = vadd.f32 1e-06, %v627_v20  ;;  %v1075_v26 = vadd.f32 %v3273_v6, %v1042_v16  ;;  %v2727_v44 = vpop.eup %2726 }
 0x1a8   : > { %v802_v40 = vmul.f32 %v2725_v56, %v801_v8  ;;  %v918_v31 = vmul.f32 %v2727_v44, %v660_v59  ;;  %vm924_vm3 = vweird.f32 %v2727_v44 }
 0x1a9   : > { %2728 = vrsqrt.f32 %v659_v37  ;;  %v1096_v58 = vpack.c.bf16 %v1076_v35, %v1075_v26  ;;  %vm925_vm4 = vmor %vm923_vm2, %vm924_vm3  ;;  %vm913_vm6 = vweird.f32 %v659_v37 }
 0x1aa   : > { %v806_v7 = vsel %vm805_vm1, %v2725_v56, %v802_v40  ;;  %v919_v39 = vmul.f32 %v2727_v44, %v918_v31  ;;  %v554_v56 = vpop.xlane.xlu1 %553 }
 0x1ab   : > { %v1000_v34 = vmul.f32 %v806_v7, %v3256_v61  ;;  %2612 = vmatmul.msk.bf16.gmra.mxu3 %vm307_vm0, %v1096_v58 }
 0x1ac   : > { %v403_v1 = vpop.xlane.xlu2 %402  ;;  %v920_v38 = vmul.f32 0.5, %v919_v39 }
 0x1ad   : > { %v442_v45 = vmul.f32 %v3037_v42, %v403_v1  ;;  %v1033_v54 = vmul.f32 %v3258_v62, %v1000_v34 }
 0x1ae   : > { %v921_v2 = vsub.f32 1.5, %v920_v38 }
 0x1af   : > { %v2729_v19 = vpop.eup %2728  ;;  %v1066_v63 = vadd.f32 %v3273_v6, %v1033_v54  ;;  %v3632_v25 = vsub.f32 %v3333_v49, %v442_v45  ;;  %v618_v49 = vmul.f32 %v554_v56, %v3037_v42 }
 0x1b0   : > { %v908_v61 = vmul.f32 %v2729_v19, %v659_v37  ;;  %v922_v24 = vmul.f32 %v2727_v44, %v921_v2  ;;  %vm914_vm5 = vweird.f32 %v2729_v19 }
 0x1b1   : > { %v1091_v23 = vpack.c.bf16 %v1066_v63, %v1065_v9  ;;  %v506_v11 = vmul.f32 %v3632_v25, %v3632_v25  ;;  %vm915_vm7 = vmor %vm913_vm6, %vm914_vm5  ;;  %v650_v12 = vadd.f32 1e-06, %v618_v49 }
 0x1b2   : > { %v909_v29 = vmul.f32 %v2729_v19, %v908_v61  ;;  %v926_v18 = vsel %vm925_vm4, %v2727_v44, %v922_v24 }
 0x1b3   : > { %2607 = vmatmul.msk.bf16.gmra.mxu0 %vm307_vm0, %v1091_v23  ;;  %v600_v21 = vsel %vm307_vm0, %v506_v11, 0.0  ;;  %v1012_v59 = vmul.f32 %v926_v18, %v3290_v32  ;;  %2730 = vrsqrt.f32 %v650_v12  ;;  %vm823_vm10 = vweird.f32 %v650_v12 }
 0x1b4   : > { %v910_v5 = vmul.f32 0.5, %v909_v29  ;;  %601 = vadd.xlane.f32.xlu0 %v600_v21  ;;  %v587_v17 = vpop.xlane.xlu2 %586  ;;  %v1175_v29 = vpop.f32.mrf.mxu0 }
 0x1b5   : > { %v1045_v60 = vmul.f32 %v3258_v62, %v1012_v59  ;;  %v629_v26 = vmul.f32 %v587_v17, %v3037_v42 }
 0x1b6   : > { %v911_v43 = vsub.f32 1.5, %v910_v5 }
 0x1b7   : > { %v1078_v3 = vadd.f32 %v3273_v6, %v1045_v60  ;;  %v661_v31 = vadd.f32 1e-06, %v629_v26 }
 0x1b8   : > { %v912_v4 = vmul.f32 %v2729_v19, %v911_v43 }
 0x1b9   : > { %v2731_v14 = vpop.eup %2730  ;;  %vm933_vm14 = vweird.f32 %v661_v31 }
 0x1ba   : > { %v916_v22 = vsel %vm915_vm7, %v2729_v19, %v912_v4  ;;  %v818_v20 = vmul.f32 %v2731_v14, %v650_v12  ;;  %vm824_vm11 = vweird.f32 %v2731_v14 }
 0x1bb   : > { %v1011_v48 = vmul.f32 %v916_v22, %v3313_v0  ;;  %vm825_vm13 = vmor %vm823_vm10, %vm824_vm11 }
 0x1bc   : > { %v551_v46 = vpop.xlane.xlu0 %550  ;;  %v819_v8 = vmul.f32 %v2731_v14, %v818_v20  ;;  %v1177_v12 = vpop.f32.mrf.mxu0 }
 0x1bd   : > { %v617_v28 = vmul.f32 %v551_v46, %v3037_v42  ;;  %v1044_v57 = vmul.f32 %v3258_v62, %v1011_v48 }
 0x1be   : > { %v820_v50 = vmul.f32 0.5, %v819_v8 }
 0x1bf   : > { %v649_v13 = vadd.f32 1e-06, %v617_v28  ;;  %v1077_v36 = vadd.f32 %v3273_v6, %v1044_v57 }
 0x1c0   : > { %v821_v7 = vsub.f32 1.5, %v820_v50 }
 0x1c1   : > { %2732 = vrsqrt.f32 %v649_v13  ;;  %v1097_v32 = vpack.c.bf16 %v1078_v3, %v1077_v36  ;;  %vm813_vm8 = vweird.f32 %v649_v13 }
 0x1c2   : > { %2734 = vrsqrt.f32 %v661_v31  ;;  %v822_v1 = vmul.f32 %v2731_v14, %v821_v7 }
 0x1c3   : > { %2613 = vmatmul.msk.bf16.gmra.mxu3 %vm307_vm0, %v1097_v32 }
 0x1c4   : > { %v590_v37 = vpop.xlane.xlu0 %589  ;;  %v826_v19 = vsel %vm825_vm13, %v2731_v14, %v822_v1 }
 0x1c5   : > { %v630_v40 = vmul.f32 %v590_v37, %v3037_v42  ;;  %v1002_v24 = vmul.f32 %v826_v19, %v3287_v51  ;;  %v1180_v37 = vpop.f32.mrf.mxu0 }
 0x1c7   : > { %v2733_v0 = vpop.eup %2732  ;;  %v662_v34 = vadd.f32 1e-06, %v630_v40  ;;  %v1035_v43 = vmul.f32 %v3258_v62, %v1002_v24 }
 0x1c8   : > { %v808_v15 = vmul.f32 %v2733_v0, %v649_v13  ;;  %vm814_vm9 = vweird.f32 %v2733_v0  ;;  %v2735_v2 = vpop.eup %2734 }
 0x1c9   : > { %vm815_vm12 = vmor %vm813_vm8, %vm814_vm9  ;;  %2736 = vrsqrt.f32 %v662_v34  ;;  %v928_v23 = vmul.f32 %v2735_v2, %v661_v31  ;;  %v1068_v59 = vadd.f32 %v3273_v6, %v1035_v43  ;;  %vm934_vm15 = vweird.f32 %v2735_v2 }
 0x1ca   : > { %v809_v16 = vmul.f32 %v2733_v0, %v808_v15  ;;  %vm943_vm1 = vweird.f32 %v662_v34  ;;  %vm935_vm3 = vmor %vm933_vm14, %vm934_vm15 }
 0x1cb   : > { %v929_v18 = vmul.f32 %v2735_v2, %v928_v23 }
 0x1cc   : > { %v810_v44 = vmul.f32 0.5, %v809_v16  ;;  %v557_v58 = vpop.xlane.xlu1 %556  ;;  %v560_v52 = vpop.xlane.xlu2 %559 }
 0x1cd   : > { %v619_v38 = vmul.f32 %v557_v58, %v3037_v42  ;;  %v620_v54 = vmul.f32 %v560_v52, %v3037_v42  ;;  %v930_v51 = vmul.f32 0.5, %v929_v18 }
 0x1ce   : > { %v811_v35 = vsub.f32 1.5, %v810_v44 }
 0x1cf   : > { %v651_v63 = vadd.f32 1e-06, %v619_v38  ;;  %v2737_v61 = vpop.eup %2736  ;;  %v652_v5 = vadd.f32 1e-06, %v620_v54  ;;  %v931_v60 = vsub.f32 1.5, %v930_v51  ;;  %v1182_v54 = vpop.f32.mrf.mxu0 }
 0x1d0   : > { %v812_v39 = vmul.f32 %v2733_v0, %v811_v35  ;;  %v938_v11 = vmul.f32 %v2737_v61, %v662_v34  ;;  %vm944_vm2 = vweird.f32 %v2737_v61 }
 0x1d1   : > { %2738 = vrsqrt.f32 %v651_v63  ;;  %v932_v14 = vmul.f32 %v2735_v2, %v931_v60  ;;  %vm945_vm4 = vmor %vm943_vm1, %vm944_vm2  ;;  %vm833_vm5 = vweird.f32 %v651_v63  ;;  %vm843_vm7 = vweird.f32 %v652_v5 }
 0x1d2   : > { %v816_v45 = vsel %vm815_vm12, %v2733_v0, %v812_v39  ;;  %2740 = vrsqrt.f32 %v652_v5  ;;  %v939_v21 = vmul.f32 %v2737_v61, %v938_v11 }
 0x1d3   : > { %v1001_v9 = vmul.f32 %v816_v45, %v3402_v41  ;;  %v274_v41 = vld [vmem:[%s5066_s5] sm:$0x7]  ;;  %v936_v8 = vsel %vm935_vm3, %v2735_v2, %v932_v14 }
 0x1d4   : > { %v3660_v48 = vperm.slane %v274_v41, 0  ;;  %v940_v46 = vmul.f32 0.5, %v939_v21  ;;  %v1013_v40 = vmul.f32 %v936_v8, %v3341_v10 }
 0x1d5   : > { %v1034_v56 = vmul.f32 %v3258_v62, %v1001_v9 }
 0x1d6   : > { %v3664_v36 = vadd.f32 %v1175_v29, %v3660_v48  ;;  %v941_v3 = vsub.f32 1.5, %v940_v46  ;;  %v3670_v17 = vadd.f32 %v1177_v12, %v3660_v48  ;;  %v1046_v1 = vmul.f32 %v3258_v62, %v1013_v40 }
 0x1d7   : > { %v1067_v49 = vadd.f32 %v3273_v6, %v1034_v56  ;;  %v2739_v4 = vpop.eup %2738  ;;  %v1185_v43 = vpop.f32.mrf.mxu0 }
 0x1d8   : > { %v2741_v22 = vpop.eup %2740  ;;  %v828_v57 = vmul.f32 %v2739_v4, %v651_v63  ;;  %v3667_v15 = vmul.f32 0.70710677, %v3664_v36  ;;  %v942_v20 = vmul.f32 %v2737_v61, %v941_v3  ;;  %v3677_v35 = vmul.f32 0.70710677, %v3670_v17 }
 0x1d9   : > { %v1092_v28 = vpack.c.bf16 %v1068_v59, %v1067_v49  ;;  %v838_v13 = vmul.f32 %v2741_v22, %v652_v5  ;;  %vm834_vm6 = vweird.f32 %v2739_v4  ;;  %vm844_vm8 = vweird.f32 %v2741_v22 }
 0x1da   : > { %v829_v32 = vmul.f32 %v2739_v4, %v828_v57  ;;  %v3673_v44 = vand.u32 2147483647, %v3667_v15  ;;  %v946_v50 = vsel %vm945_vm4, %v2737_v61, %v942_v20  ;;  %vm835_vm9 = vmor %vm833_vm5, %vm834_vm6  ;;  %v3683_v52 = vand.u32 2147483647, %v3677_v35 }
 0x1db   : > { %2608 = vmatmul.msk.bf16.gmra.mxu0 %vm307_vm0, %v1092_v28  ;;  %v839_v0 = vmul.f32 %v2741_v22, %v838_v13  ;;  %v1014_v7 = vmul.f32 %v946_v50, %v3423_v47  ;;  %vm845_vm10 = vmor %vm843_vm7, %vm844_vm8  ;;  %v3687_v47 = vadd.f32 %v1180_v37, %v3660_v48  ;;  %v1079_v19 = vadd.f32 %v3273_v6, %v1046_v1 }
 0x1dc   : > { %v830_v16 = vmul.f32 0.5, %v829_v32  ;;  %v1351_v39 = vmul.f32 0.3275911, %v3673_v44  ;;  %v1352_v63 = vmul.f32 0.3275911, %v3683_v52  ;;  %v593_v41 = vpop.xlane.xlu0 %592  ;;  %v3726_v14 = vadd.f32 %v1185_v43, %v3660_v48 }
 0x1dd   : > { %v840_v26 = vmul.f32 0.5, %v839_v0  ;;  %v1047_v38 = vmul.f32 %v3258_v62, %v1014_v7  ;;  %v3694_v23 = vmul.f32 0.70710677, %v3687_v47  ;;  %v631_v59 = vmul.f32 %v593_v41, %v3037_v42 }
 0x1de   : > { %v831_v31 = vsub.f32 1.5, %v830_v16  ;;  %v1383_v45 = vadd.f32 1.0, %v1351_v39  ;;  %v1384_v11 = vadd.f32 1.0, %v1352_v63  ;;  %v3732_v37 = vmul.f32 0.70710677, %v3726_v14 }
 0x1df   : > { %v841_v34 = vsub.f32 1.5, %v840_v26  ;;  %v1080_v9 = vadd.f32 %v3273_v6, %v1047_v38  ;;  %v3700_v18 = vand.u32 2147483647, %v3694_v23  ;;  %v3718_v13 = vadd.f32 1e-06, %v631_v59  ;;  %v1187_v0 = vpop.f32.mrf.mxu0 }
 0x1e0   : > { %v832_v58 = vmul.f32 %v2739_v4, %v831_v31  ;;  %2742 = vrcp.f32 %v1383_v45  ;;  %v3743_v39 = vadd.f32 %v1187_v0, %v3660_v48  ;;  %v1735_v38 = vsub.f32 0.0, %v3673_v44 }
 0x1e1   : > { %v842_v10 = vmul.f32 %v2741_v22, %v841_v34  ;;  %v1098_v24 = vpack.c.bf16 %v1080_v9, %v1079_v19  ;;  %2744 = vrcp.f32 %v1384_v11  ;;  %v3740_v34 = vand.u32 2147483647, %v3732_v37 }
 0x1e2   : > { %v836_v2 = vsel %vm835_vm9, %v2739_v4, %v832_v58  ;;  %v3752_v19 = vmul.f32 0.70710677, %v3743_v39  ;;  %v1736_v11 = vsub.f32 0.0, %v3683_v52  ;;  %vm953_vm11 = vweird.f32 %v3718_v13 }
 0x1e3   : > { %v846_v61 = vsel %vm845_vm10, %v2741_v22, %v842_v10  ;;  %v1003_v29 = vmul.f32 %v836_v2, %v3477_v53  ;;  %2614 = vmatmul.msk.bf16.gmra.mxu3 %vm307_vm0, %v1098_v24  ;;  %v3706_v53 = vadd.f32 %v1182_v54, %v3660_v48  ;;  %v1355_v2 = vmul.f32 0.3275911, %v3740_v34 }
 0x1e4   : > { %v1004_v5 = vmul.f32 %v846_v61, %v3483_v27  ;;  %v1353_v27 = vmul.f32 0.3275911, %v3700_v18  ;;  %v3763_v41 = vand.u32 2147483647, %v3752_v19  ;;  %vm1927_vm1 = vcmp.ge.f32.partialorder %v3667_v15, 0.0 }
 0x1e5   : > { %v1036_v56 = vmul.f32 %v3258_v62, %v1003_v29  ;;  %v3714_v12 = vmul.f32 0.70710677, %v3706_v53  ;;  %vm1928_vm3 = vcmp.ge.f32.partialorder %v3677_v35, 0.0  ;;  %vm1929_vm7 = vcmp.ge.f32.partialorder %v3694_v23, 0.0 }
 0x1e6   : > { %v1037_v21 = vmul.f32 %v3258_v62, %v1004_v5  ;;  %v3703_v49 = vpop.eup %2742  ;;  %v1385_v57 = vadd.f32 1.0, %v1353_v27  ;;  %v1767_v5 = vmul.f32 %v1735_v38, %v3673_v44  ;;  %v1356_v0 = vmul.f32 0.3275911, %v3763_v41 }
 0x1e7   : > { %v1069_v4 = vadd.f32 %v3273_v6, %v1036_v56  ;;  %v1447_v51 = vmul.f32 1.0614054, %v3703_v49  ;;  %v3716_v28 = vpop.eup %2744  ;;  %v3722_v3 = vand.u32 2147483647, %v3714_v12  ;;  %v1190_v10 = vpop.f32.mrf.mxu0 }
 0x1e8   : > { %v1070_v22 = vadd.f32 %v3273_v6, %v1037_v21  ;;  %v1448_v32 = vmul.f32 1.0614054, %v3716_v28  ;;  %2746 = vrcp.f32 %v1385_v57  ;;  %v3755_v9 = vadd.f32 %v1190_v10, %v3660_v48 }
 0x1e9   : > { %v1479_v60 = vadd.f32 -1.4531521, %v1447_v51  ;;  %2748 = vrsqrt.f32 %v3718_v13  ;;  %v1354_v16 = vmul.f32 0.3275911, %v3722_v3  ;;  %v1387_v21 = vadd.f32 1.0, %v1355_v2 }
 0x1ea   : > { %v1093_v46 = vpack.c.bf16 %v1070_v22, %v1069_v4  ;;  %v1480_v8 = vadd.f32 -1.4531521, %v1448_v32  ;;  %v3770_v51 = vmul.f32 0.70710677, %v3755_v9  ;;  %v1799_v22 = vmul.f32 1.442695, %v1767_v5 }
 0x1eb   : > { %v1511_v20 = vmul.f32 %v3703_v49, %v1479_v60  ;;  %v1386_v40 = vadd.f32 1.0, %v1354_v16  ;;  %v1388_v2 = vadd.f32 1.0, %v1356_v0 }
 0x1ec   : > { %2609 = vmatmul.msk.bf16.gmra.mxu0 %vm307_vm0, %v1093_v46  ;;  %v1512_v7 = vmul.f32 %v3716_v28, %v1480_v8  ;;  %v1768_v46 = vmul.f32 %v1736_v11, %v3683_v52  ;;  %v1737_v52 = vsub.f32 0.0, %v3700_v18 }
 0x1ed   : > { %v1543_v26 = vadd.f32 1.4214138, %v1511_v20  ;;  %2750 = vrcp.f32 %v1386_v40  ;;  %v3779_v20 = vand.u32 2147483647, %v3770_v51 }
 0x1ee   : > { %v3734_v50 = vpop.eup %2746  ;;  %v1544_v54 = vadd.f32 1.4214138, %v1512_v7 }
 0x1ef   : > { %v3736_v31 = vpop.eup %2748  ;;  %v1575_v58 = vmul.f32 %v3703_v49, %v1543_v26  ;;  %v1449_v1 = vmul.f32 1.0614054, %v3734_v50  ;;  %v1192_v40 = vpop.f32.mrf.mxu0 }
 0x1f0   : > { %v948_v45 = vmul.f32 %v3736_v31, %v3718_v13  ;;  %v1576_v43 = vmul.f32 %v3716_v28, %v1544_v54  ;;  %vm954_vm12 = vweird.f32 %v3736_v31 }
 0x1f1   : > { %v1607_v61 = vadd.f32 -0.28449672, %v1575_v58  ;;  %v1481_v24 = vadd.f32 -1.4531521, %v1449_v1  ;;  %v1801_v58 = vmul.f32 1.442695, %v1768_v46  ;;  %v1220_v1 = vpop.f32.mrf.mxu3  ;;  %vm3804_vm13 = vmor %vm953_vm11, %vm954_vm12 }
 0x1f2   : > { %v949_v56 = vmul.f32 %v3736_v31, %v948_v45  ;;  %v1608_v60 = vadd.f32 -0.28449672, %v1576_v43  ;;  %v1769_v43 = vmul.f32 %v1737_v52, %v3700_v18  ;;  %v1738_v46 = vsub.f32 0.0, %v3722_v3 }
 0x1f3   : > { %v3767_v27 = vpop.eup %2750  ;;  %v1639_v59 = vmul.f32 %v3703_v49, %v1607_v61  ;;  %v1513_v44 = vmul.f32 %v3734_v50, %v1481_v24  ;;  %v1357_v61 = vmul.f32 0.3275911, %v3779_v20  ;;  %vm1930_vm11 = vcmp.ge.f32.partialorder %v3714_v12, 0.0 }
 0x1f4   : > { %v950_v57 = vmul.f32 0.5, %v949_v56  ;;  %v1450_v32 = vmul.f32 1.0614054, %v3767_v27  ;;  %v1640_v45 = vmul.f32 %v3716_v28, %v1608_v60  ;;  %v3795_v56 = vadd.f32 %v1220_v1, %v3660_v48 }
 0x1f5   : > { %v1671_v8 = vadd.f32 0.2548296, %v1639_v59  ;;  %v1545_v26 = vadd.f32 1.4214138, %v1513_v44  ;;  %v3809_v60 = vmul.f32 0.5, %v3664_v36  ;;  %vm1931_vm12 = vcmp.ge.f32.partialorder %v3732_v37, 0.0 }
 0x1f6   : > { %v951_v10 = vsub.f32 1.5, %v950_v57  ;;  %v1482_v54 = vadd.f32 -1.4531521, %v1450_v32  ;;  %v1672_v44 = vadd.f32 0.2548296, %v1640_v45  ;;  %v1389_v32 = vadd.f32 1.0, %v1357_v61 }
 0x1f7   : > { %v1703_v5 = vmul.f32 %v3703_v49, %v1671_v8  ;;  %v1577_v11 = vmul.f32 %v3734_v50, %v1545_v26  ;;  %v3815_v26 = vmul.f32 0.70710677, %v3795_v56  ;;  %v1803_v1 = vmul.f32 1.442695, %v1769_v43  ;;  %v1195_v45 = vpop.f32.mrf.mxu0 }
 0x1f8   : > { %v1704_v52 = vmul.f32 %v3716_v28, %v1672_v44  ;;  %v3834_v28 = vmul.f32 0.5, %v3687_v47 }
 0x1f9   : > { %v1609_v8 = vadd.f32 -0.28449672, %v1577_v11  ;;  %v1222_v11 = vpop.f32.mrf.mxu3 }
 0x20f   : > { %v596_v63 = vpop.xlane.xlu1 %595 }
 0x210   : > { %v632_v29 = vmul.f32 %v596_v63, %v3037_v42 }
 0x212   : > { %v3765_v4 = vadd.f32 1e-06, %v632_v29 }
 0x214   : > { %2752 = vrsqrt.f32 %v3765_v4  ;;  %vm963_vm14 = vweird.f32 %v3765_v4 }
 0x215   : > { %2754 = vrcp.f32 %v1387_v21  ;;  %v952_v21 = vmul.f32 %v3736_v31, %v951_v10 }
 0x216   : > { %2756 = vpow2.f32 %v1799_v22  ;;  %v1514_v22 = vmul.f32 %v3767_v27, %v1482_v54 }
 0x217   : > { %v599_v16 = vpop.xlane.xlu2 %598  ;;  %v956_v13 = vsel %vm3804_vm13, %v3736_v31, %v952_v21  ;;  %v1641_v21 = vmul.f32 %v3734_v50, %v1609_v8  ;;  %vm1932_vm13 = vcmp.ge.f32.partialorder %v3752_v19, 0.0 }
 0x218   : > { %v633_v7 = vmul.f32 %v599_v16, %v3037_v42  ;;  %v1546_v10 = vadd.f32 1.4214138, %v1514_v22 }
 0x21a   : > { %v2753_v38 = vpop.eup %2752  ;;  %v3784_v63 = vadd.f32 1e-06, %v633_v7  ;;  %v1578_v44 = vmul.f32 %v3767_v27, %v1546_v10 }
 0x21b   : > { %v958_v24 = vmul.f32 %v2753_v38, %v3765_v4  ;;  %v3790_v29 = vpop.eup %2754  ;;  %vm964_vm15 = vweird.f32 %v2753_v38 }
 0x21c   : > { %2758 = vrsqrt.f32 %v3784_v63  ;;  %v2757_v57 = vpop.eup %2756  ;;  %v1451_v18 = vmul.f32 1.0614054, %v3790_v29  ;;  %vm965_vm2 = vmor %vm963_vm14, %vm964_vm15  ;;  %vm973_vm4 = vweird.f32 %v3784_v63  ;;  %vm1933_vm14 = vcmp.ge.f32.partialorder %v3770_v51, 0.0 }
 0x21d   : > { %v959_v59 = vmul.f32 %v2753_v38, %v958_v24  ;;  %2760 = vrcp.f32 %v1388_v2  ;;  %v3812_v16 = vmul.f32 %v2757_v57, %v1703_v5  ;;  %v3831_v24 = vmul.f32 0.5, %v3670_v17 }
 0x21e   : > { %2762 = vpow2.f32 %v1801_v58  ;;  %v1770_v58 = vmul.f32 %v1738_v46, %v3722_v3  ;;  %v1483_v54 = vadd.f32 -1.4531521, %v1451_v18  ;;  %v3837_v5 = vand.u32 2147483647, %v3815_v26 }
 0x21f   : > { %v960_v0 = vmul.f32 0.5, %v959_v59  ;;  %2764 = vrcp.f32 %v1389_v32  ;;  %v1015_v3 = vmul.f32 %v956_v13, %v3533_v33  ;;  %v1895_v43 = vsub.f32 1.0, %v3812_v16 }
 0x220   : > { %v3846_v17 = vadd.f32 %v1192_v40, %v3660_v48  ;;  %2766 = vpow2.f32 %v1803_v1  ;;  %v1805_v22 = vmul.f32 1.442695, %v1770_v58  ;;  %v1515_v49 = vmul.f32 %v3790_v29, %v1483_v54 }
 0x221   : > { %v961_v7 = vsub.f32 1.5, %v960_v0  ;;  %v1369_v32 = vmul.f32 0.3275911, %v3837_v5  ;;  %v1959_v8 = vsub.f32 0.0, %v1895_v43  ;;  %v1739_v13 = vsub.f32 0.0, %v3740_v34 }
 0x222   : > { %v3821_v36 = vpop.eup %2758  ;;  %v3865_v1 = vadd.f32 %v1195_v45, %v3660_v48  ;;  %v1547_v54 = vadd.f32 1.4214138, %v1515_v49  ;;  %vm1945_vm15 = vcmp.ge.f32.partialorder %v3815_v26, 0.0 }
 0x223   : > { %v962_v2 = vmul.f32 %v2753_v38, %v961_v7  ;;  %v968_v61 = vmul.f32 %v3821_v36, %v3784_v63  ;;  %v3827_v31 = vpop.eup %2760  ;;  %v3861_v7 = vmul.f32 0.70710677, %v3846_v17  ;;  %v1991_v45 = vsel %vm1927_vm1, %v1895_v43, %v1959_v8 }
 0x224   : > { %v2763_v47 = vpop.eup %2762  ;;  %v1452_v4 = vmul.f32 1.0614054, %v3827_v31  ;;  %vm974_vm5 = vweird.f32 %v3821_v36 }
 0x225   : > { %v966_v59 = vsel %vm965_vm2, %v2753_v38, %v962_v2  ;;  %v1864_v46 = vmul.f32 %v2763_v47, %v1704_v52  ;;  %v969_v57 = vmul.f32 %v3821_v36, %v968_v61  ;;  %v1048_v38 = vmul.f32 %v3258_v62, %v1015_v3  ;;  %v3857_v16 = vpop.eup %2764  ;;  %5123 = vst [vmem:[#allocation2_spill] sm:$0xff] %v3861_v7  ;;  %v1197_v47 = vpop.f32.mrf.mxu0  ;;  %vm3921_vm6 = vmor %vm973_vm4, %vm974_vm5 }
 0x226   : > { %v1016_v33 = vmul.f32 %v966_v59, %v3571_v30  ;;  %v1673_v30 = vadd.f32 0.2548296, %v1641_v21  ;;  %v1610_v52 = vadd.f32 -0.28449672, %v1578_v44  ;;  %v1484_v2 = vadd.f32 -1.4531521, %v1452_v4  ;;  %v2767_v3 = vpop.eup %2766 }
 0x227   : > { %v602_v18 = vpop.xlane.xlu0 %601  ;;  %v1896_v58 = vsub.f32 1.0, %v1864_v46  ;;  %v970_v61 = vmul.f32 0.5, %v969_v57  ;;  %v1453_v21 = vmul.f32 1.0614054, %v3857_v16  ;;  %v1401_v59 = vadd.f32 1.0, %v1369_v32 }
 0x228   : > { %v634_v40 = vmul.f32 %v602_v18, %v3037_v42  ;;  %v1049_v0 = vmul.f32 %v3258_v62, %v1016_v33  ;;  %v1081_v44 = vadd.f32 %v3273_v6, %v1048_v38  ;;  %v3876_v33 = vand.u32 2147483647, %v3861_v7  ;;  %v1225_v18 = vpop.f32.mrf.mxu3 }
 0x229   : > { %v3879_v46 = vadd.f32 %v1222_v11, %v3660_v48  ;;  %v1705_v49 = vmul.f32 %v3734_v50, %v1673_v30  ;;  %v1771_v4 = vmul.f32 %v1739_v13, %v3740_v34  ;;  %v3884_v57 = vmul.f32 0.70710677, %v3865_v1 }
 0x22a   : > { %v3867_v42 = vadd.f32 1e-06, %v634_v40  ;;  %v1082_v10 = vadd.f32 %v3273_v6, %v1049_v0  ;;  %v1960_v40 = vsub.f32 0.0, %v1896_v58  ;;  %v1642_v15 = vmul.f32 %v3767_v27, %v1610_v52 }
 0x22b   : > { %5124 = vst [vmem:[#allocation3_spill] sm:$0xff] %v3884_v57  ;;  %v3888_v43 = vadd.f32 %v1197_v47, %v3660_v48  ;;  %v1579_v38 = vmul.f32 %v3790_v29, %v1547_v54  ;;  %v1516_v11 = vmul.f32 %v3827_v31, %v1484_v2  ;;  %v1485_v0 = vadd.f32 -1.4531521, %v1453_v21 }
 0x22c   : > { %2768 = vrsqrt.f32 %v3867_v42  ;;  %v1099_v32 = vpack.c.bf16 %v1082_v10, %v1081_v44  ;;  %v1358_v50 = vmul.f32 0.3275911, %v3876_v33  ;;  %v3895_v34 = vmul.f32 0.70710677, %v3879_v46 }
 0x22d   : > { %2770 = vpow2.f32 %v1805_v22  ;;  %5125 = vst [vmem:[#allocation4_spill] sm:$0xff] %v3888_v43  ;;  %v971_v22 = vsub.f32 1.5, %v970_v61  ;;  %v3899_v30 = vadd.f32 1.0, %v1991_v45  ;;  %v3901_v13 = vmul.f32 %v2767_v3, %v1705_v49 }
 0x22e   : > { %2772 = vrcp.f32 %v1401_v59  ;;  %2615 = vmatmul.msk.bf16.gmra.mxu3 %vm307_vm0, %v1099_v32  ;;  %5126 = vst [vmem:[#allocation5_spill] sm:$0xff] %v3895_v34  ;;  %v3904_v52 = vand.u32 2147483647, %v3884_v57  ;;  %v3907_v10 = vadd.f32 %v1225_v18, %v3660_v48  ;;  %v1992_v2 = vsel %vm1928_vm3, %v1896_v58, %v1960_v40 }
 0x22f   : > { %v3912_v61 = vmul.f32 0.70710677, %v3888_v43  ;;  %v972_v21 = vmul.f32 %v3821_v36, %v971_v22  ;;  %v1674_v47 = vadd.f32 0.2548296, %v1642_v15  ;;  %v1611_v3 = vadd.f32 -0.28449672, %v1579_v38 }
 0x230   : > { %5127 = vst [vmem:[#allocation6_spill] sm:$0xff] %v3907_v10  ;;  %v1548_v44 = vadd.f32 1.4214138, %v1516_v11  ;;  %v1517_v45 = vmul.f32 %v3857_v16, %v1485_v0  ;;  %v1807_v35 = vmul.f32 1.442695, %v1771_v4  ;;  %v1390_v58 = vadd.f32 1.0, %v1358_v50  ;;  %v1227_v43 = vpop.f32.mrf.mxu3 }
 0x231   : > { %5128 = vst [vmem:[#allocation7_spill] sm:$0xff] %v3912_v61  ;;  %v3926_v18 = vand.u32 2147483647, %v3895_v34  ;;  %v3930_v15 = vadd.f32 1.0, %v1992_v2  ;;  %v1897_v22 = vsub.f32 1.0, %v3901_v13  ;;  %v1740_v4 = vsub.f32 0.0, %v3763_v41 }
 0x232   : > { %v2769_v8 = vpop.eup %2768  ;;  %v1359_v38 = vmul.f32 0.3275911, %v3904_v52  ;;  %v3935_v63 = vmul.f32 0.70710677, %v3907_v10  ;;  %v3940_v11 = vand.u32 2147483647, %v3912_v61  ;;  %v976_v0 = vsel %vm3921_vm6, %v3821_v36, %v972_v21 }
 0x233   : > { %v2771_v54 = vpop.eup %2770  ;;  %v978_v59 = vmul.f32 %v2769_v8, %v3867_v42  ;;  %v1706_v2 = vmul.f32 %v3767_v27, %v1674_v47  ;;  %v1643_v13 = vmul.f32 %v3790_v29, %v1611_v3  ;;  %v1549_v34 = vadd.f32 1.4214138, %v1517_v45 }
 0x234   : > { %v3928_v40 = vpop.eup %2772  ;;  %2774 = vrcp.f32 %v1390_v58  ;;  %v1370_v57 = vmul.f32 0.3275911, %v3926_v18  ;;  %vm984_vm8 = vweird.f32 %v2769_v8  ;;  %v1391_v7 = vadd.f32 1.0, %v1359_v38 }
 0x235   : > { %v979_v32 = vmul.f32 %v2769_v8, %v978_v59  ;;  %v1580_v59 = vmul.f32 %v3827_v31, %v1548_v44  ;;  %v1465_v61 = vmul.f32 1.0614054, %v3928_v40  ;;  %v3951_v49 = vand.u32 2147483647, %v3935_v63 }
 0x236   : > { %v1017_v36 = vmul.f32 %v976_v0, %v3596_v55  ;;  %v1360_v27 = vmul.f32 0.3275911, %v3940_v11  ;;  %v3956_v21 = vadd.f32 %v1227_v43, %v3660_v48  ;;  %vm983_vm9 = vweird.f32 %v3867_v42 }
 0x237   : > { %v980_v50 = vmul.f32 0.5, %v979_v32  ;;  %v1961_v3 = vsub.f32 0.0, %v1897_v22  ;;  %v3959_v44 = vmul.f32 %v2771_v54, %v1706_v2  ;;  %2776 = vpow2.f32 %v1807_v35  ;;  %vm985_vm10 = vmor %vm983_vm9, %vm984_vm8 }
 0x238   : > { %v1772_v45 = vmul.f32 %v1740_v4, %v3763_v41  ;;  %v1675_v58 = vadd.f32 0.2548296, %v1643_v13  ;;  %v1612_v32 = vadd.f32 -0.28449672, %v1580_v59  ;;  %v1402_v38 = vadd.f32 1.0, %v1370_v57  ;;  %v1200_v4 = vpop.f32.mrf.mxu0 }
 0x239   : > { %v981_v10 = vsub.f32 1.5, %v980_v50  ;;  %v1581_v55 = vmul.f32 %v3857_v16, %v1549_v34  ;;  %v1371_v0 = vmul.f32 0.3275911, %v3951_v49  ;;  %v1497_v54 = vadd.f32 -1.4531521, %v1465_v61 }
 0x23a   : > { %v3966_v42 = vpop.eup %2774  ;;  %2778 = vrcp.f32 %v1391_v7  ;;  %v1392_v35 = vadd.f32 1.0, %v1360_v27  ;;  %v3969_v41 = vmul.f32 0.70710677, %v3956_v21  ;;  %v1993_v57 = vsel %vm1929_vm7, %v1897_v22, %v1961_v3 }
 0x23b   : > { %v982_v47 = vmul.f32 %v2769_v8, %v981_v10  ;;  %v1050_v10 = vmul.f32 %v3258_v62, %v1017_v36  ;;  %v1741_v34 = vsub.f32 0.0, %v3779_v20  ;;  %v1707_v13 = vmul.f32 %v3790_v29, %v1675_v58 }
 0x23c   : > { %v1644_v61 = vmul.f32 %v3827_v31, %v1612_v32  ;;  %2780 = vrcp.f32 %v1402_v38  ;;  %v1613_v59 = vadd.f32 -0.28449672, %v1581_v55  ;;  %v1403_v36 = vadd.f32 1.0, %v1371_v0 }
 0x23d   : > { %v986_v50 = vsel %vm985_vm10, %v2769_v8, %v982_v47  ;;  %v1809_v8 = vmul.f32 1.442695, %v1772_v45  ;;  %v2777_v7 = vpop.eup %2776  ;;  %v1083_v27 = vadd.f32 %v3273_v6, %v1050_v10  ;;  %v1529_v22 = vmul.f32 %v3928_v40, %v1497_v54 }
 0x23e   : > { %v1018_v43 = vmul.f32 %v986_v50, %v3632_v25  ;;  %v1898_v25 = vsub.f32 1.0, %v3959_v44  ;;  %v1454_v47 = vmul.f32 1.0614054, %v3966_v42  ;;  %2782 = vrcp.f32 %v1392_v35 }
 0x23f   : > { %v1258_v29 = vmul.f32 0.5, %v3706_v53  ;;  %v1773_v3 = vmul.f32 %v1741_v34, %v3779_v20  ;;  %v3996_v58 = vmul.f32 %v3930_v15, %v3831_v24  ;;  %v2025_v32 = vadd.f32 1.0, %v1993_v57 }
 0x240   : > { %v1051_v2 = vmul.f32 %v3258_v62, %v1018_v43  ;;  %v3983_v62 = vand.u32 2147483647, %v3969_v41  ;;  %v3988_v45 = vpop.eup %2778  ;;  %v1962_v38 = vsub.f32 0.0, %v1898_v25  ;;  %v1867_v50 = vmul.f32 %v2777_v7, %v1707_v13 }
 0x241   : > { %5132 = vst [vmem:[#allocation9_spill] sm:$0xff] %v3996_v58  ;;  %v1676_v55 = vadd.f32 0.2548296, %v1644_v61  ;;  %v1645_v53 = vmul.f32 %v3857_v16, %v1613_v59  ;;  %2784 = vrcp.f32 %v1403_v36  ;;  %v1561_v0 = vadd.f32 1.4214138, %v1529_v22  ;;  %v4022_v61 = vpop.f32.mrf.mxu0 }
 0x242   : > { %v1084_v23 = vadd.f32 %v3273_v6, %v1051_v2  ;;  %v3992_v6 = vmul.f32 %v3899_v30, %v3809_v60  ;;  %v4000_v20 = vpop.eup %2780  ;;  %2786 = vpow2.f32 %v1809_v8  ;;  %v1486_v43 = vadd.f32 -1.4531521, %v1454_v47 }
 0x243   : > { %v1372_v60 = vmul.f32 0.3275911, %v3983_v62  ;;  %v4004_v30 = vmul.f32 0.5, %v3726_v14  ;;  %v1811_v24 = vmul.f32 1.442695, %v1773_v3  ;;  %v4008_v10 = vadd.f32 %v1200_v4, %v3660_v48 }
 0x244   : > { %v1100_v44 = vpack.c.bf16 %v1084_v23, %v1083_v27  ;;  %5131 = vst [vmem:[#allocation8_spill] sm:$0xff] %v3992_v6  ;;  %v1455_v15 = vmul.f32 1.0614054, %v3988_v45  ;;  %v4010_v54 = vpop.eup %2782  ;;  %v2087_v35 = vmul.f32 %v3992_v6, %v3992_v6  ;;  %v2088_v57 = vmul.f32 %v3996_v58, %v3996_v58 }
 0x245   : > { %v1994_v8 = vsel %vm1930_vm11, %v1898_v25, %v1962_v38  ;;  %v1753_v14 = vsub.f32 0.0, %v3837_v5  ;;  %v1899_v34 = vsub.f32 1.0, %v1867_v50  ;;  %v1708_v2 = vmul.f32 %v3827_v31, %v1676_v55 }
 0x246   : > { %2616 = vmatmul.msk.bf16.gmra.mxu3 %vm307_vm0, %v1100_v44  ;;  %v1677_v4 = vadd.f32 0.2548296, %v1645_v53  ;;  %v1466_v13 = vmul.f32 1.0614054, %v4000_v20  ;;  %v4025_v7 = vmul.f32 %v2025_v32, %v3834_v28  ;;  %v1593_v59 = vmul.f32 %v3928_v40, %v1561_v0 }
 0x247   : > { %v1518_v12 = vmul.f32 %v3966_v42, %v1486_v43  ;;  %v1404_v25 = vadd.f32 1.0, %v1372_v60  ;;  %v4029_v36 = vpop.eup %2784  ;;  %2788 = vpow2.f32 %v1811_v24  ;;  %v1487_v27 = vadd.f32 -1.4531521, %v1455_v15 }
 0x248   : > { %5133 = vst [vmem:[#allocation10_spill] sm:$0xff] %v4025_v7  ;;  %v1456_v23 = vmul.f32 1.0614054, %v4010_v54  ;;  %v4033_v31 = vmul.f32 0.70710677, %v4008_v10  ;;  %v2787_v22 = vpop.eup %2786  ;;  %v2119_v47 = vadd.f32 %v2088_v57, %v2087_v35  ;;  %v2026_v3 = vadd.f32 1.0, %v1994_v8 }
 0x249   : > { %v4036_v28 = vmul.f32 0.5, %v3743_v39  ;;  %v1785_v44 = vmul.f32 %v1753_v14, %v3837_v5  ;;  %v1963_v32 = vsub.f32 0.0, %v1899_v34  ;;  %v1868_v38 = vmul.f32 %v2787_v22, %v1708_v2  ;;  %v4061_v22 = vpop.f32.mrf.mxu0 }
 0x24a   : > { %v1709_v50 = vmul.f32 %v3857_v16, %v1677_v4  ;;  %v1498_v55 = vadd.f32 -1.4531521, %v1466_v13  ;;  %v1625_v53 = vadd.f32 -0.28449672, %v1593_v59  ;;  %v1550_v0 = vadd.f32 1.4214138, %v1518_v12 }
 0x24b   : > { %v1467_v43 = vmul.f32 1.0614054, %v4029_v36  ;;  %2790 = vrcp.f32 %v1404_v25  ;;  %v2089_v60 = vmul.f32 %v4025_v7, %v4025_v7  ;;  %v1519_v24 = vmul.f32 %v3988_v45, %v1487_v27 }
 0x24c   : > { %v1488_v15 = vadd.f32 -1.4531521, %v1456_v23  ;;  %v4045_v39 = vand.u32 2147483647, %v4033_v31  ;;  %v4047_v5 = vmul.f32 %v2026_v3, %v1258_v29  ;;  %v4051_v16 = vmul.f32 0.5, %v3755_v9 }
 0x24d   : > { %v1835_v35 = vmul.f32 1.442695, %v1785_v44  ;;  %v2789_v57 = vpop.eup %2788  ;;  %v1995_v8 = vsel %vm1931_vm12, %v1899_v34, %v1963_v32  ;;  %v1900_v14 = vsub.f32 1.0, %v1868_v38  ;;  %v1742_v2 = vsub.f32 0.0, %v3876_v33 }
 0x24e   : > { %5134 = vst [vmem:[#allocation11_spill] sm:$0xff] %v4047_v5  ;;  %v1530_v4 = vmul.f32 %v4000_v20, %v1498_v55  ;;  %v1869_v13 = vmul.f32 %v2789_v57, %v1709_v50  ;;  %v1657_v59 = vmul.f32 %v3928_v40, %v1625_v53  ;;  %v1582_v29 = vmul.f32 %v3966_v42, %v1550_v0 }
 0x24f   : > { %v1499_v12 = vadd.f32 -1.4531521, %v1467_v43  ;;  %v2120_v25 = vadd.f32 %v2119_v47, %v2089_v60  ;;  %v1551_v27 = vadd.f32 1.4214138, %v1519_v24  ;;  %v1520_v9 = vmul.f32 %v4010_v54, %v1488_v15 }
 0x250   : > { %v1361_v23 = vmul.f32 0.3275911, %v4045_v39  ;;  %v2090_v34 = vmul.f32 %v4047_v5, %v4047_v5  ;;  %v2027_v3 = vadd.f32 1.0, %v1995_v8  ;;  %v4068_v44 = vmul.f32 0.5, %v3795_v56 }
 0x251   : > { %v4063_v37 = vpop.eup %2790  ;;  %2792 = vpow2.f32 %v1835_v35  ;;  %v1964_v32 = vsub.f32 0.0, %v1900_v14  ;;  %v1774_v47 = vmul.f32 %v1742_v2, %v3876_v33  ;;  %v1562_v38 = vadd.f32 1.4214138, %v1530_v4 }
 0x252   : > { %v1754_v50 = vsub.f32 0.0, %v3926_v18  ;;  %v1901_v55 = vsub.f32 1.0, %v1869_v13  ;;  %v1689_v53 = vadd.f32 0.2548296, %v1657_v59  ;;  %v1614_v0 = vadd.f32 -0.28449672, %v1582_v29 }
 0x253   : > { %v1531_v43 = vmul.f32 %v4029_v36, %v1499_v12  ;;  %v1583_v60 = vmul.f32 %v3988_v45, %v1551_v27  ;;  %v1552_v24 = vadd.f32 1.4214138, %v1520_v9  ;;  %v1468_v56 = vmul.f32 1.0614054, %v4063_v37 }
 0x254   : > { %v1393_v15 = vadd.f32 1.0, %v1361_v23  ;;  %v2121_v35 = vadd.f32 %v2120_v25, %v2090_v34  ;;  %v4077_v57 = vmul.f32 %v2027_v3, %v4004_v30  ;;  %v4080_v33 = vmul.f32 0.5, %v3846_v17 }
 0x255   : > { %v1743_v8 = vsub.f32 0.0, %v3904_v52  ;;  %v1996_v2 = vsel %vm1932_vm13, %v1900_v14, %v1964_v32  ;;  %v1813_v4 = vmul.f32 1.442695, %v1774_v47  ;;  %v1594_v13 = vmul.f32 %v4000_v20, %v1562_v38  ;;  %v4098_v47 = vpop.f32.mrf.mxu0 }
 0x256   : > { %5135 = vst [vmem:[#allocation12_spill] sm:$0xff] %v4077_v57  ;;  %v1786_v59 = vmul.f32 %v1754_v50, %v3926_v18  ;;  %v1965_v12 = vsub.f32 0.0, %v1901_v55  ;;  %v1721_v25 = vmul.f32 %v3928_v40, %v1689_v53  ;;  %v1646_v30 = vmul.f32 %v3966_v42, %v1614_v0 }
 0x257   : > { %v2793_v29 = vpop.eup %2792  ;;  %v1563_v27 = vadd.f32 1.4214138, %v1531_v43  ;;  %v1615_v9 = vadd.f32 -0.28449672, %v1583_v60  ;;  %v1584_v17 = vmul.f32 %v4010_v54, %v1552_v24  ;;  %v1500_v23 = vadd.f32 -1.4531521, %v1468_v56 }
 0x258   : > { %2794 = vrcp.f32 %v1393_v15  ;;  %v2091_v19 = vmul.f32 %v4077_v57, %v4077_v57  ;;  %v1775_v14 = vmul.f32 %v1743_v8, %v3904_v52  ;;  %v1744_v34 = vsub.f32 0.0, %v3940_v11 }
 0x259   : > { %v4096_v18 = vadd.f32 %v4022_v61, %v3660_v48  ;;  %v2028_v40 = vadd.f32 1.0, %v1996_v2  ;;  %2796 = vpow2.f32 %v1813_v4  ;;  %v1626_v3 = vadd.f32 -0.28449672, %v1594_v13 }
 0x25a   : > { %v1837_v32 = vmul.f32 1.442695, %v1786_v59  ;;  %v1997_v38 = vsel %vm1933_vm14, %v1901_v55, %v1965_v12  ;;  %v1881_v50 = vmul.f32 %v2793_v29, %v1721_v25  ;;  %v1678_v53 = vadd.f32 0.2548296, %v1646_v30 }
 0x25b   : > { %v1595_v0 = vmul.f32 %v4029_v36, %v1563_v27  ;;  %v1647_v52 = vmul.f32 %v3988_v45, %v1615_v9  ;;  %v1755_v43 = vsub.f32 0.0, %v3951_v49  ;;  %v1616_v60 = vadd.f32 -0.28449672, %v1584_v17 }
 0x25c   : > { %v1532_v61 = vmul.f32 %v4063_v37, %v1500_v23  ;;  %v4107_v24 = vmul.f32 0.5, %v3879_v46  ;;  %v1815_v56 = vmul.f32 1.442695, %v1775_v14  ;;  %v1776_v15 = vmul.f32 %v1744_v34, %v3940_v11 }
 0x25d   : > { %v4111_v51 = vmul.f32 0.70710677, %v4096_v18  ;;  %v2122_v8 = vadd.f32 %v2121_v35, %v2091_v19  ;;  %v4116_v2 = vmul.f32 %v2028_v40, %v4036_v28  ;;  %v2029_v4 = vadd.f32 1.0, %v1997_v38 }
 0x25e   : > { %v4113_v55 = vpop.eup %2794  ;;  %v1658_v13 = vmul.f32 %v4000_v20, %v1626_v3  ;;  %v1913_v59 = vsub.f32 1.0, %v1881_v50  ;;  %v1710_v46 = vmul.f32 %v3966_v42, %v1678_v53  ;;  %2798 = vpow2.f32 %v1837_v32  ;;  %v1230_v32 = vpop.f32.mrf.mxu3 }
 0x25f   : > { %5136 = vst [vmem:[#allocation13_spill] sm:$0xff] %v4116_v2  ;;  %v1627_v29 = vadd.f32 -0.28449672, %v1595_v0  ;;  %v2797_v11 = vpop.eup %2796  ;;  %v1679_v12 = vadd.f32 0.2548296, %v1647_v52  ;;  %v1787_v25 = vmul.f32 %v1755_v43, %v3951_v49  ;;  %v1648_v30 = vmul.f32 %v4010_v54, %v1616_v60  ;;  %v1210_v49 = vpop.f32.mrf.mxu0 }
 0x260   : > { %v1564_v35 = vadd.f32 1.4214138, %v1532_v61  ;;  %2800 = vpow2.f32 %v1815_v56  ;;  %v1817_v28 = vmul.f32 1.442695, %v1776_v15  ;;  %v1457_v27 = vmul.f32 1.0614054, %v4113_v55 }
 0x261   : > { %v4125_v9 = vand.u32 2147483647, %v4111_v51  ;;  %v2092_v17 = vmul.f32 %v4116_v2, %v4116_v2  ;;  %v4130_v42 = vmul.f32 %v2029_v4, %v4051_v16  ;;  %v1690_v23 = vadd.f32 0.2548296, %v1658_v13  ;;  %v5138_v56 = vld [vmem:[#allocation2_spill] sm:$0xff] }
 0x262   : > { %v4133_v19 = vmul.f32 0.5, %v3865_v1  ;;  %v1977_v14 = vsub.f32 0.0, %v1913_v59  ;;  %v1870_v34 = vmul.f32 %v2797_v11, %v1710_v46  ;;  %v1659_v40 = vmul.f32 %v4029_v36, %v1627_v29 }
 0x263   : > { %5137 = vst [vmem:[#allocation14_spill] sm:$0xff] %v4130_v42  ;;  %v1756_v3 = vsub.f32 0.0, %v3983_v62  ;;  %v1711_v38 = vmul.f32 %v3988_v45, %v1679_v12  ;;  %v1839_v50 = vmul.f32 1.442695, %v1787_v25  ;;  %v1680_v53 = vadd.f32 0.2548296, %v1648_v30 }
 0x264   : > { %v1596_v0 = vmul.f32 %v4063_v37, %v1564_v35  ;;  %v2799_v16 = vpop.eup %2798  ;;  %2802 = vpow2.f32 %v1817_v28  ;;  %v1489_v52 = vadd.f32 -1.4531521, %v1457_v27  ;;  %v1362_v1 = vmul.f32 0.3275911, %v4125_v9  ;;  %v5140_v25 = vld [vmem:[#allocation6_spill] sm:$0xff] }
 0x265   : > { %v4142_v43 = vadd.f32 %v4061_v22, %v3660_v48  ;;  %v2123_v60 = vadd.f32 %v2122_v8, %v2092_v17  ;;  %v2093_v61 = vmul.f32 %v4130_v42, %v4130_v42  ;;  %vm1934_vm1 = vcmp.ge.f32.partialorder %v5138_v56, 0.0 }
 0x266   : > { %v1722_v45 = vmul.f32 %v4000_v20, %v1690_v23  ;;  %v4149_v15 = vadd.f32 %v1230_v32, %v3660_v48  ;;  %v2801_v4 = vpop.eup %2800  ;;  %v2009_v13 = vsel %vm1945_vm15, %v1913_v59, %v1977_v14  ;;  %v1902_v46 = vsub.f32 1.0, %v1870_v34  ;;  %v5141_v23 = vld [vmem:[#allocation3_spill] sm:$0xff]  ;;  %v5142_v34 = vld [vmem:[#allocation4_spill] sm:$0xff] }
 0x267   : > { %v1691_v29 = vadd.f32 0.2548296, %v1659_v40  ;;  %v1788_v22 = vmul.f32 %v1756_v3, %v3983_v62  ;;  %v1871_v11 = vmul.f32 %v2801_v4, %v1711_v38  ;;  %2804 = vpow2.f32 %v1839_v50 }
 0x268   : > { %5139 = vst [vmem:[#allocation2_spill] sm:$0xff] %v4149_v15  ;;  %v1712_v8 = vmul.f32 %v4010_v54, %v1680_v53  ;;  %v1628_v12 = vadd.f32 -0.28449672, %v1596_v0  ;;  %v4156_v30 = vmul.f32 0.5, %v5140_v25  ;;  %v1521_v20 = vmul.f32 %v4113_v55, %v1489_v52  ;;  %v1212_v0 = vpop.f32.mrf.mxu0 }
 0x269   : > { %v1394_v35 = vadd.f32 1.0, %v1362_v1  ;;  %v4160_v28 = vmul.f32 0.70710677, %v4142_v43  ;;  %v2041_v26 = vadd.f32 1.0, %v2009_v13  ;;  %v4162_v59 = vmul.f32 %v2799_v16, %v1722_v45  ;;  %v1232_v13 = vpop.f32.mrf.mxu3 }
 0x26a   : > { %v4165_v27 = vmul.f32 0.70710677, %v4149_v15  ;;  %v4169_v62 = vadd.f32 %v4098_v47, %v3660_v48  ;;  %v2803_v54 = vpop.eup %2802  ;;  %v1966_v17 = vsub.f32 0.0, %v1902_v46  ;;  %vm1935_vm2 = vcmp.ge.f32.partialorder %v5141_v23, 0.0 }
 0x26b   : > { %v1723_v14 = vmul.f32 %v4029_v36, %v1691_v29  ;;  %v4174_v40 = vmul.f32 0.5, %v5142_v34  ;;  %v1841_v3 = vmul.f32 1.442695, %v1788_v22  ;;  %v1903_v32 = vsub.f32 1.0, %v1871_v11 }
 0x26c   : > { %v1872_v38 = vmul.f32 %v2803_v54, %v1712_v8  ;;  %v1660_v50 = vmul.f32 %v4063_v37, %v1628_v12  ;;  %v4178_v53 = vadd.f32 %v1210_v49, %v3660_v48  ;;  %v4180_v47 = vadd.f32 %v2123_v60, %v2093_v61  ;;  %v5144_v61 = vld [vmem:[#allocation5_spill] sm:$0xff] }
 0x26d   : > { %v1553_v16 = vadd.f32 1.4214138, %v1521_v20  ;;  %2806 = vrcp.f32 %v1394_v35  ;;  %v4183_v52 = vand.u32 2147483647, %v4160_v28  ;;  %v2805_v36 = vpop.eup %2804  ;;  %v4186_v1 = vmul.f32 %v2041_v26, %v4068_v44  ;;  %v5147_v26 = vld [vmem:[#allocation7_spill] sm:$0xff] }
 0x26e   : > { %v1914_v45 = vsub.f32 1.0, %v4162_v59  ;;  %v4190_v4 = vand.u32 2147483647, %v4165_v27  ;;  %v4193_v49 = vmul.f32 0.70710677, %v4169_v62  ;;  %v1998_v60 = vsel %vm1934_vm1, %v1902_v46, %v1966_v17 }
 0x26f   : > { %5143 = vst [vmem:[#allocation6_spill] sm:$0xff] %v4186_v1  ;;  %vm1946_vm3 = vcmp.ge.f32.partialorder %v5144_v61, 0.0  ;;  %v1883_v29 = vmul.f32 %v2805_v36, %v1723_v14  ;;  %2808 = vpow2.f32 %v1841_v3  ;;  %v4199_v22 = vadd.f32 %v1212_v0, %v3660_v48 }
 0x270   : > { %v1967_v44 = vsub.f32 0.0, %v1903_v32  ;;  %v1904_v11 = vsub.f32 1.0, %v1872_v38  ;;  %v1692_v8 = vadd.f32 0.2548296, %v1660_v50  ;;  %v4202_v12 = vmul.f32 0.70710677, %v4178_v53 }
 0x271   : > { %v1585_v25 = vmul.f32 %v4113_v55, %v1553_v16  ;;  %v1745_v20 = vsub.f32 0.0, %v4045_v39  ;;  %v1363_v56 = vmul.f32 0.3275911, %v4183_v52  ;;  %v4208_v46 = vadd.f32 %v1232_v13, %v3660_v48 }
 0x272   : > { %v4212_v35 = vmul.f32 %v4186_v1, %v4186_v1  ;;  %vm1947_vm4 = vcmp.ge.f32.partialorder %v3935_v63, 0.0  ;;  %vm1936_vm5 = vcmp.ge.f32.partialorder %v5147_v26, 0.0  ;;  %v1373_v59 = vmul.f32 0.3275911, %v4190_v4 }
 0x273   : > { %5145 = vst [vmem:[#allocation3_spill] sm:$0xff] %v4208_v46  ;;  %v4218_v54 = vand.u32 2147483647, %v4193_v49  ;;  %v4220_v17 = vpop.eup %2806  ;;  %v2030_v14 = vadd.f32 1.0, %v1998_v60  ;;  %v1978_v34 = vsub.f32 0.0, %v1914_v45  ;;  %v1915_v3 = vsub.f32 1.0, %v1883_v29 }
 0x274   : > { %5146 = vst [vmem:[#allocation4_spill] sm:$0xff] %v4212_v35  ;;  %v4223_v38 = vmul.f32 0.70710677, %v4199_v22  ;;  %v1999_v50 = vsel %vm1935_vm2, %v1903_v32, %v1967_v44  ;;  %v1968_v0 = vsub.f32 0.0, %v1904_v11  ;;  %v1724_v16 = vmul.f32 %v4063_v37, %v1692_v8 }
 0x275   : > { %v4229_v36 = vand.u32 2147483647, %v4202_v12  ;;  %v2809_v13 = vpop.eup %2808  ;;  %v1617_v42 = vadd.f32 -0.28449672, %v1585_v25  ;;  %v1777_v2 = vmul.f32 %v1745_v20, %v4045_v39  ;;  %v1395_v57 = vadd.f32 1.0, %v1363_v56 }
 0x276   : > { %v4233_v60 = vmul.f32 0.70710677, %v4208_v46  ;;  %v4236_v29 = vmul.f32 0.5, %v3956_v21  ;;  %v1458_v23 = vmul.f32 1.0614054, %v4220_v17  ;;  %v1405_v32 = vadd.f32 1.0, %v1373_v59 }
 0x277   : > { %v1364_v44 = vmul.f32 0.3275911, %v4218_v54  ;;  %v4241_v37 = vmul.f32 %v2030_v14, %v4080_v33  ;;  %v2031_v8 = vadd.f32 1.0, %v1999_v50  ;;  %v1979_v1 = vsub.f32 0.0, %v1915_v3  ;;  %v1215_v14 = vpop.f32.mrf.mxu0 }
 0x278   : > { %v4244_v25 = vand.u32 2147483647, %v4223_v38  ;;  %v2010_v39 = vsel %vm1946_vm3, %v1914_v45, %v1978_v34  ;;  %v2000_v21 = vsel %vm1936_vm5, %v1904_v11, %v1968_v0  ;;  %v1884_v20 = vmul.f32 %v2809_v13, %v1724_v16 }
 0x279   : > { %5148 = vst [vmem:[#allocation5_spill] sm:$0xff] %v4241_v37  ;;  %v1365_v56 = vmul.f32 0.3275911, %v4229_v36  ;;  %v1649_v59 = vmul.f32 %v4113_v55, %v1617_v42  ;;  %v1819_v5 = vmul.f32 1.442695, %v1777_v2  ;;  %2810 = vrcp.f32 %v1395_v57 }
 0x27a   : > { %v4253_v33 = vand.u32 2147483647, %v4233_v60  ;;  %v1490_v50 = vadd.f32 -1.4531521, %v1458_v23  ;;  %2812 = vrcp.f32 %v1405_v32  ;;  %v1396_v7 = vadd.f32 1.0, %v1364_v44 }
 0x27b   : > { %v4256_v61 = vadd.f32 %v1215_v14, %v3660_v48  ;;  %v2042_v45 = vadd.f32 1.0, %v2010_v39  ;;  %v4259_v11 = vmul.f32 %v2031_v8, %v4133_v19  ;;  %v2011_v26 = vsel %vm1947_vm4, %v1915_v3, %v1979_v1  ;;  %v4270_v19 = vpop.f32.mrf.mxu3 }
 0x27c   : > { %v1366_v2 = vmul.f32 0.3275911, %v4244_v25  ;;  %v2032_v57 = vadd.f32 1.0, %v2000_v21  ;;  %v1916_v42 = vsub.f32 1.0, %v1884_v20  ;;  %v1397_v34 = vadd.f32 1.0, %v1365_v56 }
 0x27d   : > { %5149 = vst [vmem:[#allocation7_spill] sm:$0xff] %v4259_v11  ;;  %v4265_v0 = vmul.f32 0.70710677, %v4256_v61  ;;  %v2094_v16 = vmul.f32 %v4241_v37, %v4241_v37  ;;  %v1681_v13 = vadd.f32 0.2548296, %v1649_v59  ;;  %2814 = vpow2.f32 %v1819_v5 }
 0x27e   : > { %v1374_v23 = vmul.f32 0.3275911, %v4253_v33  ;;  %vm1948_vm6 = vcmp.ge.f32.partialorder %v3969_v41, 0.0  ;;  %v1522_v63 = vmul.f32 %v4220_v17, %v1490_v50  ;;  %2816 = vrcp.f32 %v1396_v7 }
 0x27f   : > { %v4275_v1 = vand.u32 2147483647, %v4265_v0  ;;  %v4277_v3 = vpop.eup %2810  ;;  %v4280_v32 = vmul.f32 %v2042_v45, %v4107_v24  ;;  %v2095_v5 = vmul.f32 %v4259_v11, %v4259_v11  ;;  %v2043_v44 = vadd.f32 1.0, %v2011_v26  ;;  %v1217_v50 = vpop.f32.mrf.mxu0 }
 0x280   : > { %v1398_v8 = vadd.f32 1.0, %v1366_v2  ;;  %v4284_v39 = vpop.eup %2812  ;;  %v4287_v21 = vmul.f32 %v2032_v57, %v4174_v40  ;;  %v1980_v20 = vsub.f32 0.0, %v1916_v42  ;;  %2818 = vrcp.f32 %v1397_v34 }
 0x281   : > { %5150 = vst [vmem:[#allocation15_spill] sm:$0xff] %v4280_v32  ;;  %v1367_v7 = vmul.f32 0.3275911, %v4275_v1  ;;  %v2125_v56 = vadd.f32 %v4180_v47, %v2094_v16  ;;  %v1713_v59 = vmul.f32 %v4113_v55, %v1681_v13  ;;  %v1746_v24 = vsub.f32 0.0, %v4125_v9 }
 0x282   : > { %5151 = vst [vmem:[#allocation16_spill] sm:$0xff] %v4287_v21  ;;  %v1406_v14 = vadd.f32 1.0, %v1374_v23  ;;  %v1554_v45 = vadd.f32 1.4214138, %v1522_v63  ;;  %v1459_v26 = vmul.f32 1.0614054, %v4277_v3  ;;  %v4295_v37 = vadd.f32 %v1217_v50, %v3660_v48 }
 0x283   : > { %v1399_v2 = vadd.f32 1.0, %v1367_v7  ;;  %v2815_v40 = vpop.eup %2814  ;;  %v4299_v57 = vmul.f32 %v4280_v32, %v4280_v32  ;;  %v4302_v47 = vmul.f32 0.5, %v4008_v10  ;;  %v1469_v55 = vmul.f32 1.0614054, %v4284_v39 }
 0x284   : > { %2820 = vrcp.f32 %v1398_v8  ;;  %v4305_v34 = vpop.eup %2816  ;;  %v2126_v16 = vadd.f32 %v2125_v56, %v2095_v5  ;;  %v4308_v13 = vmul.f32 %v2043_v44, %v4156_v30  ;;  %v2096_v23 = vmul.f32 %v4287_v21, %v4287_v21 }
 0x285   : > { %5152 = vst [vmem:[#allocation17_spill] sm:$0xff] %v4299_v57  ;;  %v2012_v63 = vsel %vm1948_vm6, %v1916_v42, %v1980_v20  ;;  %v1873_v7 = vmul.f32 %v2815_v40, %v1713_v59  ;;  %v1778_v50 = vmul.f32 %v1746_v24, %v4125_v9  ;;  %v1757_v10 = vsub.f32 0.0, %v4190_v4  ;;  %v1237_v20 = vpop.f32.mrf.mxu3 }
 0x286   : > { %5153 = vst [vmem:[#allocation18_spill] sm:$0xff] %v4308_v13  ;;  %2822 = vrcp.f32 %v1399_v2  ;;  %v4316_v11 = vpop.eup %2818  ;;  %v1586_v8 = vmul.f32 %v4220_v17, %v1554_v45  ;;  %v1491_v5 = vadd.f32 -1.4531521, %v1459_v26  ;;  %v4320_v30 = vmul.f32 0.70710677, %v4295_v37 }
 0x287   : > { %2824 = vrcp.f32 %v1406_v14  ;;  %v2044_v44 = vadd.f32 1.0, %v2012_v63  ;;  %v1501_v56 = vadd.f32 -1.4531521, %v1469_v55  ;;  %v1747_v41 = vsub.f32 0.0, %v4183_v52 }
 0x288   : > { %v1460_v42 = vmul.f32 1.0614054, %v4305_v34  ;;  %v4326_v9 = vmul.f32 %v4308_v13, %v4308_v13  ;;  %vm1937_vm7 = vcmp.ge.f32.partialorder %v4033_v31, 0.0  ;;  %v4330_v59 = vmul.f32 0.5, %v4096_v18 }
 0x289   : > { %v4333_v24 = vand.u32 2147483647, %v4320_v30  ;;  %v4337_v45 = vadd.f32 %v2126_v16, %v2096_v23  ;;  %v1905_v26 = vsub.f32 1.0, %v1873_v7  ;;  %v1789_v2 = vmul.f32 %v1757_v10, %v4190_v4 }
 0x28a   : > { %5154 = vst [vmem:[#allocation19_spill] sm:$0xff] %v4326_v9  ;;  %v4335_v14 = vpop.eup %2820  ;;  %v1461_v40 = vmul.f32 1.0614054, %v4316_v11  ;;  %v1618_v55 = vadd.f32 -0.28449672, %v1586_v8  ;;  %v1523_v13 = vmul.f32 %v4277_v3, %v1491_v5  ;;  %v4346_v32 = vmul.f32 %v2044_v44, %v4236_v29 }
 0x28b   : > { %v1821_v63 = vmul.f32 1.442695, %v1778_v50  ;;  %v1368_v21 = vmul.f32 0.3275911, %v4333_v24  ;;  %v1533_v58 = vmul.f32 %v4284_v39, %v1501_v56  ;;  %v1779_v16 = vmul.f32 %v1747_v41, %v4183_v52 }
 0x28c   : > { %v4343_v18 = vpop.eup %2822  ;;  %5155 = vst [vmem:[#allocation20_spill] sm:$0xff] %v4346_v32  ;;  %v1492_v23 = vadd.f32 -1.4531521, %v1460_v42  ;;  %v1758_v4 = vsub.f32 0.0, %v4253_v33  ;;  %v4355_v50 = vadd.f32 %v4270_v19, %v3660_v48  ;;  %v1462_v10 = vmul.f32 1.0614054, %v4335_v14 }
 0x28d   : > { %v4350_v7 = vpop.eup %2824  ;;  %v1400_v8 = vadd.f32 1.0, %v1368_v21  ;;  %v1969_v5 = vsub.f32 0.0, %v1905_v26  ;;  %v1843_v6 = vmul.f32 1.442695, %v1789_v2  ;;  %v4359_v29 = vmul.f32 0.5, %v4142_v43  ;;  %v1240_v32 = vpop.f32.mrf.mxu3 }
 0x28e   : > { %5156 = vst [vmem:[#allocation21_spill] sm:$0xff] %v4355_v50  ;;  %v1493_v44 = vadd.f32 -1.4531521, %v1461_v40  ;;  %v1650_v52 = vmul.f32 %v4220_v17, %v1618_v55  ;;  %v1555_v56 = vadd.f32 1.4214138, %v1523_v13  ;;  %v1524_v46 = vmul.f32 %v4305_v34, %v1492_v23 }
 0x28f   : > { %v1463_v41 = vmul.f32 1.0614054, %v4343_v18  ;;  %2826 = vrcp.f32 %v1400_v8  ;;  %v1565_v42 = vadd.f32 1.4214138, %v1533_v58  ;;  %v1823_v9 = vmul.f32 1.442695, %v1779_v16 }
 0x290   : > { %v1470_v19 = vmul.f32 1.0614054, %v4350_v7  ;;  %2828 = vpow2.f32 %v1821_v63  ;;  %v1790_v21 = vmul.f32 %v1758_v4, %v4253_v33  ;;  %v4367_v43 = vmul.f32 0.70710677, %v4355_v50 }
 0x291   : > { %v1494_v2 = vadd.f32 -1.4531521, %v1462_v10  ;;  %v2001_v13 = vsel %vm1937_vm7, %v1905_v26, %v1969_v5  ;;  %v1748_v40 = vsub.f32 0.0, %v4218_v54  ;;  %v4373_v58 = vadd.f32 %v1237_v20, %v3660_v48 }
 0x292   : > { %5157 = vst [vmem:[#allocation22_spill] sm:$0xff] %v4367_v43  ;;  %v1525_v55 = vmul.f32 %v4316_v11, %v1493_v44  ;;  %v1682_v16 = vadd.f32 0.2548296, %v1650_v52  ;;  %2830 = vpow2.f32 %v1843_v6  ;;  %v1587_v63 = vmul.f32 %v4277_v3, %v1555_v56 }
 0x293   : > { %5158 = vst [vmem:[#allocation23_spill] sm:$0xff] %v4373_v58  ;;  %v1495_v23 = vadd.f32 -1.4531521, %v1463_v41  ;;  %v1597_v33 = vmul.f32 %v4284_v39, %v1565_v42  ;;  %2832 = vpow2.f32 %v1823_v9  ;;  %v1502_v4 = vadd.f32 -1.4531521, %v1470_v19 }
 0x294   : > { %v1556_v10 = vadd.f32 1.4214138, %v1524_v46  ;;  %v2033_v31 = vadd.f32 1.0, %v2001_v13  ;;  %v4380_v26 = vmul.f32 1.442695, %v1790_v21  ;;  %v1526_v5 = vmul.f32 %v4335_v14, %v1494_v2 }
 0x295   : > { %v4378_v8 = vpop.eup %2826  ;;  %v4383_v20 = vand.u32 2147483647, %v4367_v43  ;;  %v1780_v6 = vmul.f32 %v1748_v40, %v4218_v54  ;;  %v4388_v44 = vmul.f32 0.70710677, %v4373_v58  ;;  %v1557_v52 = vadd.f32 1.4214138, %v1525_v55 }
 0x296   : > { %v1464_v9 = vmul.f32 1.0614054, %v4378_v8  ;;  %v2829_v56 = vpop.eup %2828  ;;  %v1714_v46 = vmul.f32 %v4220_v17, %v1682_v16  ;;  %v1619_v41 = vadd.f32 -0.28449672, %v1587_v63  ;;  %v4393_v42 = vadd.f32 %v1240_v32, %v3660_v48 }
 0x297   : > { %5159 = vst [vmem:[#allocation24_spill] sm:$0xff] %v4388_v44  ;;  %v1527_v19 = vmul.f32 %v4343_v18, %v1495_v23  ;;  %v1629_v21 = vadd.f32 -0.28449672, %v1597_v33  ;;  %v1534_v2 = vmul.f32 %v4350_v7, %v1502_v4  ;;  %v1588_v54 = vmul.f32 %v4305_v34, %v1556_v10  ;;  %v1242_v4 = vpop.f32.mrf.mxu3 }
 0x298   : > { %5160 = vst [vmem:[#allocation25_spill] sm:$0xff] %v4393_v42  ;;  %v1496_v13 = vadd.f32 -1.4531521, %v1464_v9  ;;  %v4398_v40 = vpop.eup %2830  ;;  %v4401_v55 = vmul.f32 %v2033_v31, %v4302_v47  ;;  %v4404_v58 = vmul.f32 0.5, %v4169_v62  ;;  %v1375_v17 = vmul.f32 0.3275911, %v4383_v20 }
 0x299   : > { %v1558_v32 = vadd.f32 1.4214138, %v1526_v5  ;;  %v2833_v16 = vpop.eup %2832  ;;  %v1825_v63 = vmul.f32 1.442695, %v1780_v6  ;;  %v4408_v23 = vand.u32 2147483647, %v4388_v44  ;;  %v1589_v33 = vmul.f32 %v4316_v11, %v1557_v52 }
 0x29a   : > { %v1528_v10 = vmul.f32 %v4378_v8, %v1496_v13  ;;  %v1651_v9 = vmul.f32 %v4277_v3, %v1619_v41  ;;  %v1749_v47 = vsub.f32 0.0, %v4229_v36  ;;  %v4415_v62 = vmul.f32 0.70710677, %v4393_v42 }
 0x29b   : > { %v1559_v31 = vadd.f32 1.4214138, %v1527_v19  ;;  %v4417_v50 = vmul.f32 %v2829_v56, %v1714_v46  ;;  %v1661_v5 = vmul.f32 %v4284_v39, %v1629_v21  ;;  %v1566_v6 = vadd.f32 1.4214138, %v1534_v2 }
 0x29c   : > { %5161 = vst [vmem:[#allocation26_spill] sm:$0xff] %v4415_v62  ;;  %v1620_v44 = vadd.f32 -0.28449672, %v1588_v54  ;;  %v1407_v43 = vadd.f32 1.0, %v1375_v17  ;;  %v1590_v52 = vmul.f32 %v4335_v14, %v1558_v32  ;;  %v4422_v15 = vadd.f32 %v1242_v4, %v3660_v48 }
 0x29d   : > { %v1560_v13 = vadd.f32 1.4214138, %v1528_v10  ;;  %2834 = vpow2.f32 %v1825_v63  ;;  %v1376_v41 = vmul.f32 0.3275911, %v4408_v23  ;;  %v1621_v57 = vadd.f32 -0.28449672, %v1589_v33 }
 0x29e   : > { %5162 = vst [vmem:[#allocation27_spill] sm:$0xff] %v4422_v15  ;;  %v1750_v42 = vsub.f32 0.0, %v4244_v25  ;;  %v1683_v19 = vadd.f32 0.2548296, %v1651_v9  ;;  %v1781_v56 = vmul.f32 %v1749_v47, %v4229_v36  ;;  %v4428_v46 = vand.u32 2147483647, %v4415_v62 }
 0x29f   : > { %v1591_v21 = vmul.f32 %v4343_v18, %v1559_v31  ;;  %v1906_v2 = vsub.f32 1.0, %v4417_v50  ;;  %v1693_v54 = vadd.f32 0.2548296, %v1661_v5  ;;  %v1652_v17 = vmul.f32 %v4305_v34, %v1620_v44 }
 0x2a0   : > { %v1751_v32 = vsub.f32 0.0, %v4275_v1  ;;  %2836 = vrcp.f32 %v1407_v43  ;;  %v1622_v63 = vadd.f32 -0.28449672, %v1590_v52  ;;  %v4435_v33 = vmul.f32 0.70710677, %v4422_v15 }
 0x2a1   : > { %v1592_v4 = vmul.f32 %v4378_v8, %v1560_v13  ;;  %vm1938_vm8 = vcmp.ge.f32.partialorder %v4111_v51, 0.0  ;;  %v1408_v36 = vadd.f32 1.0, %v1376_v41  ;;  %v1653_v10 = vmul.f32 %v4316_v11, %v1621_v57 }
 0x2a2   : > { %v1782_v9 = vmul.f32 %v1750_v42, %v4244_v25  ;;  %v1752_v50 = vsub.f32 0.0, %v4333_v24  ;;  %v1715_v44 = vmul.f32 %v4277_v3, %v1683_v19  ;;  %v1827_v47 = vmul.f32 1.442695, %v1781_v56 }
 0x2a3   : > { %v1377_v43 = vmul.f32 0.3275911, %v4428_v46  ;;  %v1623_v31 = vadd.f32 -0.28449672, %v1591_v21  ;;  %v2835_v5 = vpop.eup %2834  ;;  %v1598_v52 = vmul.f32 %v4350_v7, %v1566_v6  ;;  %v1684_v15 = vadd.f32 0.2548296, %v1652_v17 }
 0x2a4   : > { %v1759_v13 = vsub.f32 0.0, %v4383_v20  ;;  %v1783_v41 = vmul.f32 %v1751_v32, %v4275_v1  ;;  %v1970_v62 = vsub.f32 0.0, %v1906_v2  ;;  %v1654_v57 = vmul.f32 %v4335_v14, %v1622_v63 }
 0x2a5   : > { %v4449_v25 = vand.u32 2147483647, %v4435_v33  ;;  %v1624_v42 = vadd.f32 -0.28449672, %v1592_v4  ;;  %2838 = vrcp.f32 %v1408_v36  ;;  %v1685_v3 = vadd.f32 0.2548296, %v1653_v10 }
 0x2a6   : > { %v1829_v19 = vmul.f32 1.442695, %v1782_v9  ;;  %v1784_v56 = vmul.f32 %v1752_v50, %v4333_v24  ;;  %v4452_v21 = vpop.eup %2836  ;;  %v1875_v6 = vmul.f32 %v2833_v16, %v1715_v44  ;;  %2840 = vpow2.f32 %v1827_v47 }
 0x2a7   : > { %v1409_v17 = vadd.f32 1.0, %v1377_v43  ;;  %v1655_v35 = vmul.f32 %v4343_v18, %v1623_v31  ;;  %v2097_v1 = vmul.f32 %v4401_v55, %v4401_v55  ;;  %v1725_v32 = vmul.f32 %v4284_v39, %v1693_v54 }
 0x2a8   : > { %v1716_v63 = vmul.f32 %v4305_v34, %v1684_v15  ;;  %v1831_v4 = vmul.f32 1.442695, %v1783_v41  ;;  %v1630_v36 = vadd.f32 -0.28449672, %v1598_v52  ;;  %v1686_v10 = vadd.f32 0.2548296, %v1654_v57 }
 0x2a9   : > { %v1378_v9 = vmul.f32 0.3275911, %v4449_v25  ;;  %v1656_v24 = vmul.f32 %v4378_v8, %v1624_v42  ;;  %vm1939_vm9 = vcmp.ge.f32.partialorder %v4160_v28, 0.0  ;;  %v1791_v16 = vmul.f32 %v1759_v13, %v4383_v20 }
 0x2aa   : > { %v1717_v50 = vmul.f32 %v4316_v11, %v1685_v3  ;;  %2842 = vpow2.f32 %v1829_v19  ;;  %v1833_v44 = vmul.f32 1.442695, %v1784_v56  ;;  %v2002_v39 = vsel %vm1938_vm8, %v1906_v2, %v1970_v62 }
 0x2ab   : > { %v1907_v54 = vsub.f32 1.0, %v1875_v6  ;;  %2844 = vrcp.f32 %v1409_v17  ;;  %v1687_v15 = vadd.f32 0.2548296, %v1655_v35  ;;  %v4466_v34 = vpop.eup %2838  ;;  %v4469_v47 = vmul.f32 %v4398_v40, %v1725_v32 }
 0x2ac   : > { %v1876_v43 = vmul.f32 %v2835_v5, %v1716_v63  ;;  %v1471_v31 = vmul.f32 1.0614054, %v4452_v21  ;;  %2846 = vpow2.f32 %v1831_v4  ;;  %v2841_v20 = vpop.eup %2840  ;;  %v1718_v11 = vmul.f32 %v4335_v14, %v1686_v10 }
 0x2ad   : > { %2848 = vpow2.f32 %v4380_v26  ;;  %v1410_v52 = vadd.f32 1.0, %v1378_v9  ;;  %v1688_v51 = vadd.f32 0.2548296, %v1656_v24  ;;  %v2034_v62 = vadd.f32 1.0, %v2002_v39 }
 0x2ae   : > { %v1662_v2 = vmul.f32 %v4350_v7, %v1630_v36  ;;  %v1877_v35 = vmul.f32 %v2841_v20, %v1717_v50  ;;  %2850 = vpow2.f32 %v1833_v44  ;;  %v2128_v13 = vadd.f32 %v4337_v45, %v2097_v1 }
 0x2af   : > { %v1971_v40 = vsub.f32 0.0, %v1907_v54  ;;  %vm1940_vm10 = vcmp.ge.f32.partialorder %v4193_v49, 0.0  ;;  %v1472_v5 = vmul.f32 1.0614054, %v4466_v34  ;;  %v1719_v41 = vmul.f32 %v4343_v18, %v1687_v15 }
 0x2b0   : > { %v2843_v57 = vpop.eup %2842  ;;  %v1917_v26 = vsub.f32 1.0, %v4469_v47  ;;  %v1908_v14 = vsub.f32 1.0, %v1876_v43  ;;  %v1503_v42 = vadd.f32 -1.4531521, %v1471_v31  ;;  %v1847_v3 = vmul.f32 1.442695, %v1791_v16 }
 0x2b1   : > { %v1245_v19 = vpop.f32.mrf.mxu3  ;;  %v4480_v56 = vpop.eup %2844  ;;  %v1878_v6 = vmul.f32 %v2843_v57, %v1718_v11  ;;  %2852 = vrcp.f32 %v1410_v52  ;;  %v1720_v45 = vmul.f32 %v4378_v8, %v1688_v51  ;;  %v4487_v32 = vmul.f32 %v2034_v62, %v4330_v59 }
 0x2b2   : > { %v4484_v17 = vadd.f32 %v1245_v19, %v3660_v48  ;;  %v2847_v1 = vpop.eup %2846  ;;  %v1694_v18 = vadd.f32 0.2548296, %v1662_v2  ;;  %v1760_v63 = vsub.f32 0.0, %v4408_v23  ;;  %v1909_v4 = vsub.f32 1.0, %v1877_v35 }
 0x2b3   : > { %v4490_v36 = vpop.eup %2848  ;;  %v2003_v10 = vsel %vm1939_vm9, %v1907_v54, %v1971_v40  ;;  %v1504_v9 = vadd.f32 -1.4531521, %v1472_v5  ;;  %v1879_v24 = vmul.f32 %v2847_v1, %v1719_v41  ;;  %v1972_v50 = vsub.f32 0.0, %v1908_v14 }
 0x2b4   : > { %v4495_v8 = vmul.f32 0.70710677, %v4484_v17  ;;  %v2851_v16 = vpop.eup %2850  ;;  %v1535_v44 = vmul.f32 %v4452_v21, %v1503_v42  ;;  %2854 = vpow2.f32 %v1847_v3  ;;  %v1473_v59 = vmul.f32 1.0614054, %v4480_v56 }
 0x2b5   : > { %v4501_v39 = vsub.f32 0.0, %v1917_v26  ;;  %v1910_v15 = vsub.f32 1.0, %v1878_v6  ;;  %v1880_v43 = vmul.f32 %v2851_v16, %v1720_v45  ;;  %v2098_v54 = vmul.f32 %v4487_v32, %v4487_v32 }
 0x2b6   : > { %v4504_v28 = vand.u32 2147483647, %v4495_v8  ;;  %v2035_v31 = vadd.f32 1.0, %v2003_v10  ;;  %v4509_v20 = vmul.f32 %v4350_v7, %v1694_v18  ;;  %v1973_v11 = vsub.f32 0.0, %v1909_v4 }
 0x2b7   : > { %v4511_v52 = vpop.eup %2852  ;;  %v1536_v51 = vmul.f32 %v4466_v34, %v1504_v9  ;;  %v1792_v62 = vmul.f32 %v1760_v63, %v4408_v23  ;;  %v1911_v2 = vsub.f32 1.0, %v1879_v24  ;;  %v2004_v40 = vsel %vm1940_vm10, %v1908_v14, %v1972_v50 }
 0x2b8   : > { %v1379_v35 = vmul.f32 0.3275911, %v4504_v28  ;;  %v1567_v5 = vadd.f32 1.4214138, %v1535_v44  ;;  %vm1941_vm11 = vcmp.ge.f32.partialorder %v4202_v12, 0.0  ;;  %v1974_v7 = vsub.f32 0.0, %v1910_v15 }
 0x2b9   : > { %v1505_v41 = vadd.f32 -1.4531521, %v1473_v59  ;;  %v1247_v57 = vpop.f32.mrf.mxu3  ;;  %v1912_v42 = vsub.f32 1.0, %v1880_v43  ;;  %v2129_v23 = vadd.f32 %v2128_v13, %v2098_v54  ;;  %v4525_v45 = vmul.f32 %v2035_v31, %v4359_v29 }
 0x2ba   : > { %v1411_v3 = vadd.f32 1.0, %v1379_v35  ;;  %v4520_v19 = vadd.f32 %v1247_v57, %v3660_v48  ;;  %v4522_v6 = vpop.eup %2854  ;;  %v2005_v1 = vsel %vm1941_vm11, %v1909_v4, %v1973_v11  ;;  %v1474_v49 = vmul.f32 1.0614054, %v4511_v52 }
 0x2bb   : > { %v2036_v14 = vadd.f32 1.0, %v2004_v40  ;;  %v1568_v18 = vadd.f32 1.4214138, %v1536_v51  ;;  %v1975_v12 = vsub.f32 0.0, %v1911_v2  ;;  %v1599_v63 = vmul.f32 %v4452_v21, %v1567_v5 }
 0x2bc   : > { %2856 = vrcp.f32 %v1411_v3  ;;  %v1849_v10 = vmul.f32 1.442695, %v1792_v62  ;;  %vm1942_vm12 = vcmp.ge.f32.partialorder %v4223_v38, 0.0  ;;  %v4531_v9 = vmul.f32 0.70710677, %v4520_v19 }
 0x2bd   : > { %v2037_v24 = vadd.f32 1.0, %v2005_v1  ;;  %v2006_v13 = vsel %vm1942_vm12, %v1910_v15, %v1974_v7  ;;  %v1537_v29 = vmul.f32 %v4480_v56, %v1505_v41  ;;  %v1976_v16 = vsub.f32 0.0, %v1912_v42 }
 0x2be   : > { %v1269_v4 = vmul.f32 0.5, %v4178_v53  ;;  %vm1943_vm13 = vcmp.ge.f32.partialorder %v4265_v0, 0.0  ;;  %v1506_v50 = vadd.f32 -1.4531521, %v1474_v49  ;;  %v4537_v44 = vand.u32 2147483647, %v4531_v9 }
 0x2bf   : > { %v2099_v59 = vmul.f32 %v4525_v45, %v4525_v45  ;;  %v4542_v38 = vmul.f32 %v2036_v14, %v4404_v58  ;;  %v1600_v43 = vmul.f32 %v4466_v34, %v1568_v18  ;;  %v2007_v15 = vsel %vm1943_vm13, %v1911_v2, %v1975_v12 }
 0x2c0   : > { %v1270_v54 = vmul.f32 0.5, %v4199_v22  ;;  %v2038_v31 = vadd.f32 1.0, %v2006_v13  ;;  %vm1944_vm14 = vcmp.ge.f32.partialorder %v4320_v30, 0.0  ;;  %v1380_v53 = vmul.f32 0.3275911, %v4537_v44 }
 0x2c1   : > { %v1631_v11 = vadd.f32 -0.28449672, %v1599_v63  ;;  %v4550_v51 = vmul.f32 %v2037_v24, %v1269_v4  ;;  %v1569_v62 = vadd.f32 1.4214138, %v1537_v29  ;;  %v2008_v35 = vsel %vm1944_vm14, %v1912_v42, %v1976_v16 }
 0x2c2   : > { %v4548_v0 = vpop.eup %2856  ;;  %v2039_v40 = vadd.f32 1.0, %v2007_v15  ;;  %v1538_v58 = vmul.f32 %v4511_v52, %v1506_v50  ;;  %v1412_v2 = vadd.f32 1.0, %v1380_v53  ;;  %v2100_v22 = vmul.f32 %v4542_v38, %v4542_v38 }
 0x2c3   : > { %v1475_v5 = vmul.f32 1.0614054, %v4548_v0  ;;  %v1632_v41 = vadd.f32 -0.28449672, %v1600_v43  ;;  %v1761_v30 = vsub.f32 0.0, %v4428_v46  ;;  %v1271_v57 = vmul.f32 0.5, %v4256_v61 }
 0x2c4   : > { %v4558_v7 = vmul.f32 %v2038_v31, %v1270_v54  ;;  %v2040_v3 = vadd.f32 1.0, %v2008_v35  ;;  %2858 = vrcp.f32 %v1412_v2  ;;  %v2130_v42 = vadd.f32 %v2129_v23, %v2099_v59 }
 0x2c5   : > { %v1507_v1 = vadd.f32 -1.4531521, %v1475_v5  ;;  %v1663_v49 = vmul.f32 %v4452_v21, %v1631_v11  ;;  %v2101_v14 = vmul.f32 %v4550_v51, %v4550_v51  ;;  %v1272_v18 = vmul.f32 0.5, %v4295_v37 }
 0x2c6   : > { %v1601_v12 = vmul.f32 %v4480_v56, %v1569_v62  ;;  %v4565_v63 = vmul.f32 %v2039_v40, %v1271_v57  ;;  %v1570_v24 = vadd.f32 1.4214138, %v1538_v58  ;;  %vm1949_vm15 = vcmp.ge.f32.partialorder %v4165_v27, 0.0 }
 0x2c7   : > { %v1539_v61 = vmul.f32 %v4548_v0, %v1507_v1  ;;  %v4571_v23 = vmul.f32 %v4490_v36, %v4509_v20  ;;  %v2131_v29 = vadd.f32 %v2130_v42, %v2100_v22  ;;  %v1664_v16 = vmul.f32 %v4466_v34, %v1632_v41 }
 0x2c8   : > { %v2102_v37 = vmul.f32 %v4558_v7, %v4558_v7  ;;  %v1793_v50 = vmul.f32 %v1761_v30, %v4428_v46  ;;  %v4580_v59 = vmul.f32 %v2040_v3, %v1272_v18  ;;  %v1695_v15 = vadd.f32 0.2548296, %v1663_v49 }
 0x2c9   : > { %v1250_v13 = vpop.f32.mrf.mxu3  ;;  %v1571_v43 = vadd.f32 1.4214138, %v1539_v61  ;;  %2860 = vpow2.f32 %v1849_v10  ;;  %v1762_v54 = vsub.f32 0.0, %v4449_v25  ;;  %v2132_v31 = vadd.f32 %v2131_v29, %v2101_v14 }
 0x2ca   : > { %v4575_v4 = vadd.f32 %v1250_v13, %v3660_v48  ;;  %v4586_v20 = vpop.eup %2858  ;;  %v1633_v53 = vadd.f32 -0.28449672, %v1601_v12  ;;  %v2103_v11 = vmul.f32 %v4565_v63, %v4565_v63  ;;  %v1602_v62 = vmul.f32 %v4511_v52, %v1570_v24 }
 0x2cb   : > { %v1696_v46 = vadd.f32 0.2548296, %v1664_v16  ;;  %v1603_v35 = vmul.f32 %v4548_v0, %v1571_v43  ;;  %v1476_v40 = vmul.f32 1.0614054, %v4586_v20  ;;  %v2133_v58 = vadd.f32 %v2132_v31, %v2102_v37 }
 0x2cc   : > { %v4584_v36 = vmul.f32 0.70710677, %v4575_v4  ;;  %v1851_v5 = vmul.f32 1.442695, %v1793_v50  ;;  %v2104_v2 = vmul.f32 %v4580_v59, %v4580_v59  ;;  %v1763_v22 = vsub.f32 0.0, %v4504_v28 }
 0x2cd   : > { %v1727_v41 = vmul.f32 %v4452_v21, %v1695_v15  ;;  %v1508_v30 = vadd.f32 -1.4531521, %v1476_v40  ;;  %v1764_v57 = vsub.f32 0.0, %v4537_v44  ;;  %v1665_v1 = vmul.f32 %v4480_v56, %v1633_v53 }
 0x2ce   : > { %v4594_v10 = vand.u32 2147483647, %v4584_v36  ;;  %v2134_v42 = vadd.f32 %v2133_v58, %v2103_v11  ;;  %v1634_v49 = vadd.f32 -0.28449672, %v1602_v62  ;;  %v1794_v14 = vmul.f32 %v1762_v54, %v4449_v25 }
 0x2cf   : > { %v2861_v12 = vpop.eup %2860  ;;  %v1635_v24 = vadd.f32 -0.28449672, %v1603_v35  ;;  %v1540_v61 = vmul.f32 %v4586_v20, %v1508_v30  ;;  %v2013_v21 = vsel %vm1949_vm15, %v1917_v26, %v4501_v39  ;;  %v1918_v16 = vsub.f32 1.0, %v4571_v23 }
 0x2d0   : > { %v1381_v3 = vmul.f32 0.3275911, %v4594_v10  ;;  %vm1950_vm1 = vcmp.ge.f32.partialorder %v4233_v60, 0.0  ;;  %v2135_v25 = vadd.f32 %v2134_v42, %v2104_v2  ;;  %v1795_v37 = vmul.f32 %v1763_v22, %v4504_v28 }
 0x2d1   : > { %v1252_v18 = vpop.f32.mrf.mxu3  ;;  %v1887_v50 = vmul.f32 %v4522_v6, %v1727_v41  ;;  %v1572_v43 = vadd.f32 1.4214138, %v1540_v61  ;;  %v1796_v15 = vmul.f32 %v1764_v57, %v4537_v44  ;;  %v1697_v54 = vadd.f32 0.2548296, %v1665_v1  ;;  %v5163_v6 = vld [vmem:[#allocation4_spill] sm:$0xff]  ;;  %v5164_v57 = vld [vmem:[#allocation17_spill] sm:$0xff] }
 0x2d2   : > { %v1413_v13 = vadd.f32 1.0, %v1381_v3  ;;  %v4606_v29 = vadd.f32 %v1252_v18, %v3660_v48  ;;  %v1728_v48 = vmul.f32 %v4466_v34, %v1696_v46  ;;  %v1853_v47 = vmul.f32 1.442695, %v1794_v14 }
 0x2d3   : > { %v1666_v26 = vmul.f32 %v4511_v52, %v1634_v49  ;;  %v1667_v39 = vmul.f32 %v4548_v0, %v1635_v24  ;;  %v1604_v28 = vmul.f32 %v4586_v20, %v1572_v43  ;;  %v2045_v23 = vadd.f32 1.0, %v2013_v21 }
 0x2d4   : > { %2862 = vrcp.f32 %v1413_v13  ;;  %v4620_v27 = vmul.f32 0.70710677, %v4606_v29  ;;  %v2136_v31 = vadd.f32 %v2135_v25, %v5163_v6  ;;  %v1855_v53 = vmul.f32 1.442695, %v1795_v37  ;;  %v5165_v13 = vld [vmem:[#allocation2_spill] sm:$0xff] }
 0x2d5   : > { %2864 = vpow2.f32 %v1851_v5  ;;  %v1982_v34 = vsub.f32 0.0, %v1918_v16  ;;  %v1919_v11 = vsub.f32 1.0, %v1887_v50  ;;  %v1636_v62 = vadd.f32 -0.28449672, %v1604_v28  ;;  %v5169_v6 = vld [vmem:[#allocation22_spill] sm:$0xff] }
 0x2d6   : > { %v4627_v44 = vand.u32 2147483647, %v4620_v27  ;;  %v1857_v46 = vmul.f32 1.442695, %v1796_v15  ;;  %v1888_v35 = vmul.f32 %v2861_v12, %v1728_v48  ;;  %v1729_v40 = vmul.f32 %v4480_v56, %v1697_v54  ;;  %v5166_v15 = vld [vmem:[#allocation20_spill] sm:$0xff]  ;;  %v5168_v54 = vld [vmem:[#allocation19_spill] sm:$0xff] }
 0x2d7   : > { %2866 = vpow2.f32 %v1853_v47  ;;  %v1698_v2 = vadd.f32 0.2548296, %v1666_v26  ;;  %v1699_v22 = vadd.f32 0.2548296, %v1667_v39  ;;  %v1668_v41 = vmul.f32 %v4586_v20, %v1636_v62 }
 0x2d8   : > { %v1382_v58 = vmul.f32 0.3275911, %v4627_v44  ;;  %v1765_v30 = vsub.f32 0.0, %v4594_v10  ;;  %v2137_v3 = vadd.f32 %v2136_v31, %v5164_v57  ;;  %2868 = vpow2.f32 %v1855_v53 }
 0x2d9   : > { %v2014_v56 = vsel %vm1950_vm1, %v1918_v16, %v1982_v34  ;;  %v1983_v14 = vsub.f32 0.0, %v1919_v11  ;;  %v1700_v18 = vadd.f32 0.2548296, %v1668_v41  ;;  %2870 = vpow2.f32 %v1857_v46  ;;  %v5167_v16 = vld [vmem:[#allocation3_spill] sm:$0xff]  ;;  %v5170_v46 = vld [vmem:[#allocation21_spill] sm:$0xff] }
 0x2da   : > { %v4631_v5 = vpop.eup %2862  ;;  %v1414_v42 = vadd.f32 1.0, %v1382_v58  ;;  %v1920_v12 = vsub.f32 1.0, %v1888_v35  ;;  %v1277_v21 = vmul.f32 0.5, %v5165_v13  ;;  %v1730_v25 = vmul.f32 %v4511_v52, %v1698_v2 }
 0x2db   : > { %v1477_v1 = vmul.f32 1.0614054, %v4631_v5  ;;  %v2865_v49 = vpop.eup %2864  ;;  %v1731_v37 = vmul.f32 %v4548_v0, %v1699_v22  ;;  %v1797_v50 = vmul.f32 %v1765_v30, %v4594_v10  ;;  %v2108_v60 = vmul.f32 %v5166_v15, %v5166_v15 }
 0x2dc   : > { %v1889_v24 = vmul.f32 %v2865_v49, %v1729_v40  ;;  %2872 = vrcp.f32 %v1414_v42  ;;  %v1278_v48 = vmul.f32 0.5, %v5167_v16  ;;  %v2138_v47 = vadd.f32 %v2137_v3, %v5168_v54 }
 0x2dd   : > { %v1509_v61 = vadd.f32 -1.4531521, %v1477_v1  ;;  %v2867_v43 = vpop.eup %2866  ;;  %v4648_v39 = vmul.f32 %v2045_v23, %v1277_v21  ;;  %v2046_v28 = vadd.f32 1.0, %v2014_v56  ;;  %vm1951_vm2 = vcmp.ge.f32.partialorder %v5169_v6, 0.0  ;;  %v5171_v23 = vld [vmem:[#allocation24_spill] sm:$0xff]  ;;  %v5173_v6 = vld [vmem:[#allocation23_spill] sm:$0xff] }
 0x2de   : > { %v1732_v52 = vmul.f32 %v4586_v20, %v1700_v18  ;;  %v2869_v0 = vpop.eup %2868  ;;  %v2015_v31 = vsel %vm1951_vm2, %v1919_v11, %v1983_v14  ;;  %v1984_v10 = vsub.f32 0.0, %v1920_v12  ;;  %v1921_v53 = vsub.f32 1.0, %v1889_v24 }
 0x2df   : > { %v1541_v26 = vmul.f32 %v4631_v5, %v1509_v61  ;;  %v2871_v62 = vpop.eup %2870  ;;  %v1279_v35 = vmul.f32 0.5, %v5170_v46  ;;  %v1890_v40 = vmul.f32 %v2867_v43, %v1730_v25  ;;  %v1891_v58 = vmul.f32 %v2869_v0, %v1731_v37 }
 0x2e0   : > { %v1859_v2 = vmul.f32 1.442695, %v1797_v50  ;;  %vm1952_vm3 = vcmp.ge.f32.partialorder %v5171_v23, 0.0  ;;  %v2139_v41 = vadd.f32 %v2138_v47, %v2108_v60  ;;  %v1766_v20 = vsub.f32 0.0, %v4627_v44  ;;  %v5172_v50 = vld [vmem:[#allocation26_spill] sm:$0xff] }
 0x2e1   : > { %v1573_v34 = vadd.f32 1.4214138, %v1541_v26  ;;  %v2109_v11 = vmul.f32 %v4648_v39, %v4648_v39  ;;  %v2047_v57 = vadd.f32 1.0, %v2015_v31  ;;  %v1892_v3 = vmul.f32 %v2871_v62, %v1732_v52 }
 0x2e2   : > { %v4653_v22 = vpop.eup %2872  ;;  %v4661_v42 = vmul.f32 %v2046_v28, %v1278_v48  ;;  %v2016_v49 = vsel %vm1952_vm3, %v1920_v12, %v1984_v10  ;;  %v1985_v56 = vsub.f32 0.0, %v1921_v53  ;;  %v1922_v18 = vsub.f32 1.0, %v1890_v40 }
 0x2e3   : > { %v1605_v30 = vmul.f32 %v4631_v5, %v1573_v34  ;;  %v1478_v1 = vmul.f32 1.0614054, %v4653_v22  ;;  %v1923_v24 = vsub.f32 1.0, %v1891_v58  ;;  %2874 = vpow2.f32 %v1859_v2  ;;  %v5174_v58 = vld [vmem:[#allocation25_spill] sm:$0xff] }
 0x2e4   : > { %v2140_v13 = vadd.f32 %v2139_v41, %v2109_v11  ;;  %v1798_v25 = vmul.f32 %v1766_v20, %v4627_v44  ;;  %v4665_v37 = vmul.f32 %v2047_v57, %v1279_v35  ;;  %vm1953_vm4 = vcmp.ge.f32.partialorder %v5172_v50, 0.0 }
 0x2e5   : > { %v1637_v14 = vadd.f32 -0.28449672, %v1605_v30  ;;  %v1510_v61 = vadd.f32 -1.4531521, %v1478_v1  ;;  %v1924_v43 = vsub.f32 1.0, %v1892_v3  ;;  %v2110_v12 = vmul.f32 %v4661_v42, %v4661_v42 }
 0x2e6   : > { %v2048_v16 = vadd.f32 1.0, %v2016_v49  ;;  %v2017_v48 = vsel %vm1953_vm4, %v1921_v53, %v1985_v56  ;;  %v1986_v47 = vsub.f32 0.0, %v1922_v18  ;;  %v1987_v26 = vsub.f32 0.0, %v1923_v24  ;;  %v5175_v56 = vld [vmem:[#allocation27_spill] sm:$0xff] }
 0x2e7   : > { %v1669_v21 = vmul.f32 %v4631_v5, %v1637_v14  ;;  %v1542_v60 = vmul.f32 %v4653_v22, %v1510_v61  ;;  %v1280_v52 = vmul.f32 0.5, %v5173_v6  ;;  %v2141_v0 = vadd.f32 %v2140_v13, %v2110_v12 }
 0x2e8   : > { %v1861_v31 = vmul.f32 1.442695, %v1798_v25  ;;  %v2111_v34 = vmul.f32 %v4665_v37, %v4665_v37  ;;  %v2049_v62 = vadd.f32 1.0, %v2017_v48  ;;  %v1988_v46 = vsub.f32 0.0, %v1924_v43 }
 0x2e9   : > { %v1701_v54 = vadd.f32 0.2548296, %v1669_v21  ;;  %v1574_v28 = vadd.f32 1.4214138, %v1542_v60  ;;  %v2875_v10 = vpop.eup %2874  ;;  %v4676_v40 = vmul.f32 %v2048_v16, %v1280_v52  ;;  %vm1954_vm5 = vcmp.ge.f32.partialorder %v4435_v33, 0.0 }
 0x2ea   : > { %vm1955_vm6 = vcmp.ge.f32.partialorder %v4495_v8, 0.0  ;;  %v1281_v2 = vmul.f32 0.5, %v5174_v58  ;;  %v2018_v23 = vsel %vm1954_vm5, %v1922_v18, %v1986_v47  ;;  %v2142_v30 = vadd.f32 %v2141_v0, %v2111_v34 }
 0x2eb   : > { %v1733_v44 = vmul.f32 %v4631_v5, %v1701_v54  ;;  %v1606_v35 = vmul.f32 %v4653_v22, %v1574_v28  ;;  %v2019_v5 = vsel %vm1955_vm6, %v1923_v24, %v1987_v26  ;;  %vm1956_vm7 = vcmp.ge.f32.partialorder %v4531_v9, 0.0 }
 0x2ec   : > { %2876 = vpow2.f32 %v1861_v31  ;;  %v4682_v11 = vmul.f32 %v2049_v62, %v1281_v2  ;;  %v2020_v57 = vsel %vm1956_vm7, %v1924_v43, %v1988_v46  ;;  %v2112_v33 = vmul.f32 %v4676_v40, %v4676_v40 }
 0x2ed   : > { %v1893_v53 = vmul.f32 %v2875_v10, %v1733_v44  ;;  %v1638_v41 = vadd.f32 -0.28449672, %v1606_v35  ;;  %v2050_v8 = vadd.f32 1.0, %v2018_v23  ;;  %v2051_v1 = vadd.f32 1.0, %v2019_v5 }
 0x2ee   : > { %v1282_v14 = vmul.f32 0.5, %v5175_v56  ;;  %vm1957_vm8 = vcmp.ge.f32.partialorder %v4584_v36, 0.0  ;;  %v1283_v9 = vmul.f32 0.5, %v4484_v17  ;;  %v2143_v24 = vadd.f32 %v2142_v30, %v2112_v33 }
 0x2ef   : > { %v1925_v20 = vsub.f32 1.0, %v1893_v53  ;;  %v1670_v3 = vmul.f32 %v4653_v22, %v1638_v41  ;;  %v2052_v61 = vadd.f32 1.0, %v2020_v57  ;;  %v2113_v21 = vmul.f32 %v4682_v11, %v4682_v11 }
 0x2f0   : > { %v4693_v43 = vmul.f32 %v2050_v8, %v1282_v14  ;;  %v4695_v60 = vmul.f32 %v2051_v1, %v1283_v9  ;;  %v1284_v12 = vmul.f32 0.5, %v4520_v19  ;;  %v1285_v17 = vmul.f32 0.5, %v4575_v4 }
 0x2f1   : > { %v1989_v49 = vsub.f32 0.0, %v1925_v20  ;;  %v1702_v18 = vadd.f32 0.2548296, %v1670_v3  ;;  %v2144_v48 = vadd.f32 %v2143_v24, %v2113_v21  ;;  %vm1958_vm9 = vcmp.ge.f32.partialorder %v4620_v27, 0.0  ;;  %v2663_v27 = vld [vmem:[%s5064_s3 + $0x38] sm:$0xff]  ;;  %v2661_v21 = vld [vmem:[%s5064_s3 + $0x28] sm:$0xff] }
 0x2f2   : > { %v2877_v50 = vpop.eup %2876  ;;  %v4698_v54 = vmul.f32 %v2052_v61, %v1284_v12  ;;  %v2114_v26 = vmul.f32 %v4693_v43, %v4693_v43  ;;  %v1286_v31 = vmul.f32 0.5, %v4606_v29  ;;  %2330 = vmatpush.bf16.msra.mxu1 %v2663_v27  ;;  %2666 = vmatpush.bf16.msra.mxu2 %v2663_v27  ;;  %v2662_v29 = vld [vmem:[%s5064_s3 + $0x30] sm:$0xff]  ;;  %v2895_v9 = vmov 128.0   ;;  %v2659_v12 = vld [vmem:[%s5064_s3 + $0x18] sm:$0xff] }
 0x2f3   : > { %v2021_v13 = vsel %vm1957_vm8, %v1925_v20, %v1989_v49  ;;  %v1734_v25 = vmul.f32 %v4653_v22, %v1702_v18  ;;  %v2115_v22 = vmul.f32 %v4695_v60, %v4695_v60 }
 0x2f4   : > { %v2053_v16 = vadd.f32 1.0, %v2021_v13  ;;  %v2145_v52 = vadd.f32 %v2144_v48, %v2114_v26  ;;  %v2116_v19 = vmul.f32 %v4698_v54, %v4698_v54 }
 0x2f5   : > { %v1894_v36 = vmul.f32 %v2877_v50, %v1734_v25  ;;  %v2660_v25 = vld [vmem:[%s5064_s3 + $0x20] sm:$0xff] }
 0x2f6   : > { %v4705_v28 = vmul.f32 %v2053_v16, %v1285_v17  ;;  %v2146_v44 = vadd.f32 %v2145_v52, %v2115_v22  ;;  %2331 = vmatpush.bf16.msra.mxu1 %v2662_v29  ;;  %2667 = vmatpush.bf16.msra.mxu2 %v2662_v29 }
 0x2f7   : > { %v1926_v47 = vsub.f32 1.0, %v1894_v36  ;;  %v2658_v36 = vld [vmem:[%s5064_s3 + $0x10] sm:$0xff] }
 0x2f8   : > { %v2117_v4 = vmul.f32 %v4705_v28, %v4705_v28  ;;  %v2147_v34 = vadd.f32 %v2146_v44, %v2116_v19 }
 0x2f9   : > { %v1990_v6 = vsub.f32 0.0, %v1926_v47 }
 0x2fa   : > { %v2148_v46 = vadd.f32 %v2147_v34, %v2117_v4  ;;  %2332 = vmatpush.bf16.msra.mxu1 %v2661_v21  ;;  %2668 = vmatpush.bf16.msra.mxu2 %v2661_v21  ;;  %v5176_v34 = vld [vmem:[#allocation8_spill] sm:$0xff] }
 0x2fb   : > { %v2022_v0 = vsel %vm1958_vm9, %v1926_v47, %v1990_v6  ;;  %v2657_v47 = vld [vmem:[%s5064_s3 + $0x8] sm:$0xff]  ;;  %v2656_v6 = vld [vmem:[%s5064_s3] sm:$0xff] }
 0x2fc   : > { %v2054_v10 = vadd.f32 1.0, %v2022_v0  ;;  %v2884_v0 = vld [vmem:[%s5066_s5] sm:$0x7] }
 0x2fe   : > { %v4713_v62 = vmul.f32 %v2054_v10, %v1286_v31  ;;  %2333 = vmatpush.bf16.msra.mxu1 %v2660_v25  ;;  %2669 = vmatpush.bf16.msra.mxu2 %v2660_v25  ;;  %v4746_v10 = vperm.slane %v2884_v0, 2 }
 0x300   : > { %v2118_v35 = vmul.f32 %v4713_v62, %v4713_v62 }
 0x302   : > { %v2149_v53 = vadd.f32 %v2148_v46, %v2118_v35  ;;  %2334 = vmatpush.bf16.msra.mxu1 %v2659_v12  ;;  %2670 = vmatpush.bf16.msra.mxu2 %v2659_v12  ;;  %v5177_v35 = vld [vmem:[#allocation9_spill] sm:$0xff] }
 0x304   : > { %v2150_v58 = vrot.slane %v2149_v53, 4 }
 0x306   : > { %v2151_v2 = vadd.f32 %v2150_v58, %v2149_v53  ;;  %2335 = vmatpush.bf16.msra.mxu1 %v2658_v36  ;;  %2671 = vmatpush.bf16.msra.mxu2 %v2658_v36 }
 0x308   : > { %v2152_v23 = vrot.slane %v2151_v2, 2 }
 0x30a   : > { %v2153_v5 = vadd.f32 %v2152_v23, %v2151_v2  ;;  %2336 = vmatpush.bf16.msra.mxu1 %v2657_v47  ;;  %2672 = vmatpush.bf16.msra.mxu2 %v2657_v47 }
 0x30c   : > { %v2154_v41 = vrot.slane %v2153_v5, 1 }
 0x30e   : > { %v2155_v30 = vadd.f32 %v2154_v41, %v2153_v5  ;;  %2337 = vmatpush.bf16.msra.mxu1 %v2656_v6  ;;  %2673 = vmatpush.bf16.msra.mxu2 %v2656_v6 }
 0x310   : > { %2878 = vrsqrt.f32 %v2155_v30  ;;  %vm2163_vm10 = vcmp.eq.f32.partialorder %v2155_v30, inf  ;;  %v2166_v56 = vand.u32 2147483648, %v2155_v30  ;;  %vm2165_vm11 = vcmp.eq.f32.partialorder %v2155_v30, 0.0 }
 0x311   : > { %2880 = vrcp.f32 %v2895_v9 }
 0x316   : > { %v2879_v20 = vpop.eup %2878 }
 0x317   : > { %v2157_v57 = vmul.f32 %v2879_v20, %v2155_v30  ;;  %v2881_v24 = vpop.eup %2880 }
 0x318   : > { %v2171_v61 = vmul.f32 128.0, %v2881_v24  ;;  %vm2175_vm12 = vweird.f32 %v2881_v24 }
 0x319   : > { %v2158_v3 = vmul.f32 %v2879_v20, %v2157_v57 }
 0x31a   : > { %v2172_v13 = vsub.f32 1.0, %v2171_v61 }
 0x31b   : > { %v2159_v33 = vmul.f32 0.5, %v2158_v3  ;;  %v5179_v3 = vld [vmem:[#allocation11_spill] sm:$0xff] }
 0x31c   : > { %v2173_v50 = vmul.f32 %v2881_v24, %v2172_v13 }
 0x31d   : > { %v2160_v8 = vsub.f32 1.5, %v2159_v33  ;;  %v5180_v33 = vld [vmem:[#allocation6_spill] sm:$0xff] }
 0x31e   : > { %v2174_v16 = vadd.f32 %v2881_v24, %v2173_v50 }
 0x31f   : > { %v2161_v1 = vmul.f32 %v2879_v20, %v2160_v8  ;;  %v5178_v20 = vld [vmem:[#allocation10_spill] sm:$0xff]  ;;  %v5181_v8 = vld [vmem:[#allocation15_spill] sm:$0xff] }
 0x320   : > { %v2176_v48 = vsel %vm2175_vm12, %v2881_v24, %v2174_v16 }
 0x321   : > { %v2162_v49 = vmul.f32 %v2161_v1, %v2155_v30 }
 0x323   : > { %v2164_v14 = vsel %vm2163_vm10, %v2155_v30, %v2162_v49  ;;  %v5182_v49 = vld [vmem:[#allocation7_spill] sm:$0xff] }
 0x324   : > { %v2167_v18 = vsel %vm2165_vm11, %v2166_v56, %v2164_v14 }
 0x325   : > { %2168 = vadd.xlane.f32.xlu1 %v2167_v18 }
 0x398   : > { %v2169_v17 = vpop.xlane.xlu1 %2168 }
 0x399   : > { %v2177_v26 = vmul.f32 %v2176_v48, %v2169_v17 }
 0x39b   : > { %v2178_v22 = vadd.f32 1e-06, %v2177_v26 }
 0x39d   : > { %2882 = vrcp.f32 %v2178_v22 }
 0x3a3   : > { %v2883_v52 = vpop.eup %2882 }
 0x3a4   : > { %v2180_v19 = vmul.f32 %v2883_v52, %v2167_v18  ;;  %v5183_v18 = vld [vmem:[#allocation16_spill] sm:$0xff] }
 0x3a6   : > { %v2181_v44 = vmul.f32 %v2884_v0, %v2180_v19 }
 0x3a8   : > { %v2182_v4 = vadd.f32 1.0, %v2181_v44 }
 0x3aa   : > { %v4744_v31 = vperm.slane %v2182_v4, 1 }
 0x3ac   : > { %v2184_v46 = vmul.f32 %v4744_v31, %v5176_v34  ;;  %v2185_v53 = vmul.f32 %v4744_v31, %v5177_v35  ;;  %v2200_v58 = vmul.f32 %v4744_v31, %v4565_v63  ;;  %v2201_v27 = vmul.f32 %v4744_v31, %v4580_v59 }
 0x3ad   : > { %v2186_v57 = vmul.f32 %v4744_v31, %v5178_v20  ;;  %v2187_v63 = vmul.f32 %v4744_v31, %v5179_v3  ;;  %v2202_v59 = vmul.f32 %v4744_v31, %v5180_v33  ;;  %v2203_v1 = vmul.f32 %v4744_v31, %v5181_v8  ;;  %v5185_v20 = vld [vmem:[#allocation13_spill] sm:$0xff]  ;;  %v5186_v3 = vld [vmem:[#allocation18_spill] sm:$0xff] }
 0x3ae   : > { %v2217_v2 = vadd.f32 %v4746_v10, %v2184_v46  ;;  %v2218_v29 = vadd.f32 %v4746_v10, %v2185_v53  ;;  %v2233_v23 = vadd.f32 %v4746_v10, %v2200_v58  ;;  %v2234_v5 = vadd.f32 %v4746_v10, %v2201_v27 }
 0x3af   : > { %v2192_v56 = vmul.f32 %v4744_v31, %v5182_v49  ;;  %v2219_v14 = vadd.f32 %v4746_v10, %v2186_v57  ;;  %v2193_v9 = vmul.f32 %v4744_v31, %v5183_v18  ;;  %v2220_v24 = vadd.f32 %v4746_v10, %v2187_v63 }
 0x3b0   : > { %v2249_v41 = vpack.c.bf16 %v2218_v29, %v2217_v2  ;;  %v2257_v30 = vpack.c.bf16 %v2234_v5, %v2233_v23  ;;  %v2208_v13 = vmul.f32 %v4744_v31, %v4665_v37  ;;  %v2209_v21 = vmul.f32 %v4744_v31, %v4676_v40 }
 0x3b1   : > { %v4775_v61 = vadd.f32 %v4746_v10, %v2192_v56  ;;  %v2235_v25 = vadd.f32 %v4746_v10, %v2202_v59  ;;  %v4783_v50 = vadd.f32 %v4746_v10, %v2193_v9  ;;  %v2194_v12 = vmul.f32 %v4744_v31, %v4401_v55  ;;  %v5188_v9 = vld [vmem:[#allocation5_spill] sm:$0xff] }
 0x3b2   : > { %2338 = vmatmul.bf16.vlgmr.msra.gmra.mxu1 %v2249_v41  ;;  %2378 = vmatmul.bf16.vlgmr.msra.gmra.mxu2 %v2257_v30  ;;  %v2195_v16 = vmul.f32 %v4744_v31, %v4487_v32  ;;  %v2236_v36 = vadd.f32 %v4746_v10, %v2203_v1  ;;  %v2241_v48 = vadd.f32 %v4746_v10, %v2208_v13 }
 0x3b3   : > { %v2242_v37 = vadd.f32 %v4746_v10, %v2209_v21  ;;  %v2210_v40 = vmul.f32 %v4744_v31, %v4682_v11  ;;  %v2253_v17 = vpack.c.bf16 %v4783_v50, %v4775_v61  ;;  %v2227_v47 = vadd.f32 %v4746_v10, %v2194_v12 }
 0x3b4   : > { %v2228_v26 = vadd.f32 %v4746_v10, %v2195_v16  ;;  %v2211_v55 = vmul.f32 %v4744_v31, %v4693_v43  ;;  %v2196_v6 = vmul.f32 %v4744_v31, %v4525_v45  ;;  %v2197_v52 = vmul.f32 %v4744_v31, %v4542_v38 }
 0x3b5   : > { %v2261_v32 = vpack.c.bf16 %v2242_v37, %v2241_v48  ;;  %v2243_v22 = vadd.f32 %v4746_v10, %v2210_v40  ;;  %v2212_v0 = vmul.f32 %v4744_v31, %v4695_v60  ;;  %v2213_v44 = vmul.f32 %v4744_v31, %v4698_v54  ;;  %v2435_v37 = vld [vmem:[%s4859_s11 + $0x80] sm:$0xff]  ;;  %v2420_v40 = vld [vmem:[%s4859_s11 + $0x8] sm:$0xff] }
 0x3b6   : > { %v2254_v11 = vpack.c.bf16 %v2228_v26, %v2227_v47  ;;  %v2244_v19 = vadd.f32 %v4746_v10, %v2211_v55  ;;  %v2229_v43 = vadd.f32 %v4746_v10, %v2196_v6  ;;  %v2230_v4 = vadd.f32 %v4746_v10, %v2197_v52  ;;  %v2421_v47 = vld [vmem:[%s4859_s11 + $0x10] sm:$0xff]  ;;  %v2422_v55 = vld [vmem:[%s4859_s11 + $0x18] sm:$0xff]  ;;  %v2439_v6 = vld [vmem:[%s4859_s11 + $0xa0] sm:$0xff] }
 0x3b7   : > { %v2198_v34 = vmul.f32 %v4744_v31, %v4550_v51  ;;  %v2199_v45 = vmul.f32 %v4744_v31, %v4558_v7  ;;  %v2245_v46 = vadd.f32 %v4746_v10, %v2212_v0  ;;  %v2246_v35 = vadd.f32 %v4746_v10, %v2213_v44  ;;  %v2437_v26 = vld [vmem:[%s4859_s11 + $0x90] sm:$0xff]  ;;  %v2424_v52 = vld [vmem:[%s4859_s11 + $0x28] sm:$0xff]  ;;  %v4883_v44 = vld [vmem:[%s4859_s11 + $0x38] sm:$0xff] }
 0x3b8   : > { %v2262_v38 = vpack.c.bf16 %v2244_v19, %v2243_v22  ;;  %v2214_v60 = vmul.f32 %v4744_v31, %v4705_v28  ;;  %v2255_v53 = vpack.c.bf16 %v2230_v4, %v2229_v43  ;;  %v2215_v27 = vmul.f32 %v4744_v31, %v4713_v62  ;;  %v5184_v28 = vld [vmem:[#allocation12_spill] sm:$0xff]  ;;  %v2423_v22 = vld [vmem:[%s4859_s11 + $0x20] sm:$0xff]  ;;  %v4886_v43 = vld [vmem:[%s4859_s11 + $0xb8] sm:$0xff] }
 0x3b9   : > { %v2231_v54 = vadd.f32 %v4746_v10, %v2198_v34  ;;  %v2232_v58 = vadd.f32 %v4746_v10, %v2199_v45  ;;  %v2263_v51 = vpack.c.bf16 %v2246_v35, %v2245_v46  ;;  %v2250_v7 = vpack.c.bf16 %v2220_v24, %v2219_v14  ;;  %v5187_v14 = vld [vmem:[#allocation14_spill] sm:$0xff]  ;;  %v4877_v19 = vld [vmem:[%s4859_s11 + $0x30] sm:$0xff]  ;;  %v4895_v45 = vld [vmem:[%s4859_s11 + $0x48] sm:$0xff] }
 0x3ba   : > { %v2247_v2 = vadd.f32 %v4746_v10, %v2214_v60  ;;  %v2258_v29 = vpack.c.bf16 %v2236_v36, %v2235_v25  ;;  %v2248_v5 = vadd.f32 %v4746_v10, %v2215_v27  ;;  %v2188_v30 = vmul.f32 %v4744_v31, %v5184_v28  ;;  %v2419_v36 = vld [vmem:[%s4859_s11] sm:$0xff]  ;;  %v4880_v0 = vld [vmem:[%s4859_s11 + $0xb0] sm:$0xff] }
 0x3bb   : > { %v2256_v23 = vpack.c.bf16 %v2232_v58, %v2231_v54  ;;  %v2189_v57 = vmul.f32 %v4744_v31, %v5185_v20  ;;  %v2204_v62 = vmul.f32 %v4744_v31, %v5186_v3  ;;  %v2205_v63 = vmul.f32 %v4744_v31, %v5166_v15  ;;  %v4889_v4 = vld [vmem:[%s4859_s11 + $0x40] sm:$0xff]  ;;  %v4901_v46 = vld [vmem:[%s4859_s11 + $0x50] sm:$0xff]  ;;  %v4908_v54 = vld [vmem:[%s4859_s11 + $0x58] sm:$0xff] }
 0x3bc   : > { %v2264_v41 = vpack.c.bf16 %v2248_v5, %v2247_v2  ;;  %v2221_v33 = vadd.f32 %v4746_v10, %v2188_v30  ;;  %v2190_v18 = vmul.f32 %v4744_v31, %v5187_v14  ;;  %v2191_v24 = vmul.f32 %v4744_v31, %v5188_v9  ;;  %v4892_v34 = vld [vmem:[%s4859_s11 + $0xc0] sm:$0xff]  ;;  %v4911_v58 = vld [vmem:[%s4859_s11 + $0xd8] sm:$0xff]  ;;  %v4930_v5 = vld [vmem:[%s4859_s11 + $0xe8] sm:$0xff] }
 0x3bd   : > { %v2222_v59 = vadd.f32 %v4746_v10, %v2189_v57  ;;  %v2237_v8 = vadd.f32 %v4746_v10, %v2204_v62  ;;  %v2238_v1 = vadd.f32 %v4746_v10, %v2205_v63  ;;  %v2206_v15 = vmul.f32 %v4744_v31, %v4648_v39  ;;  %v2885_v39 = vld [vmem:[%s5065_s4] sm:$0x7]  ;;  %v4936_v28 = vld [vmem:[%s4859_s11 + $0xf0] sm:$0xff]  ;;  %v4939_v30 = vld [vmem:[%s4859_s11 + $0x78] sm:$0xff] }
 0x3be   : > { %v2207_v61 = vmul.f32 %v4744_v31, %v4661_v42  ;;  %v2223_v13 = vadd.f32 %v4746_v10, %v2190_v18  ;;  %v2224_v21 = vadd.f32 %v4746_v10, %v2191_v24  ;;  %v4853_v42 = vperm.slane %v2885_v39, 2  ;;  %v4923_v2 = vld [vmem:[%s4859_s11 + $0xe0] sm:$0xff]  ;;  %v4942_v20 = vld [vmem:[%s4859_s11 + $0xf8] sm:$0xff] }
 0x3bf   : > { %v2251_v49 = vpack.c.bf16 %v2222_v59, %v2221_v33  ;;  %v2259_v56 = vpack.c.bf16 %v2238_v1, %v2237_v8  ;;  %v2239_v25 = vadd.f32 %v4746_v10, %v2206_v15 }
 0x3c0   : > { %v2240_v50 = vadd.f32 %v4746_v10, %v2207_v61  ;;  %v2252_v12 = vpack.c.bf16 %v2224_v21, %v2223_v13 }
 0x3c2   : > { %2343 = vmatmul.bf16.gmra.mxu1 %v2250_v7  ;;  %2383 = vmatmul.bf16.gmra.mxu2 %v2258_v29  ;;  %v2260_v16 = vpack.c.bf16 %v2240_v50, %v2239_v25  ;;  %v4926_v7 = vld [vmem:[%s4859_s11 + $0x68] sm:$0xff] }
 0x3d2   : > { %2348 = vmatmul.bf16.gmra.mxu1 %v2251_v49  ;;  %2388 = vmatmul.bf16.gmra.mxu2 %v2259_v56 }
 0x3e2   : > { %2353 = vmatmul.bf16.gmra.mxu1 %v2252_v12  ;;  %2393 = vmatmul.bf16.gmra.mxu2 %v2260_v16 }
 0x3f2   : > { %2358 = vmatmul.bf16.gmra.mxu1 %v2253_v17  ;;  %2398 = vmatmul.bf16.gmra.mxu2 %v2261_v32  ;;  %v2436_v17 = vld [vmem:[%s4859_s11 + $0x88] sm:$0xff]  ;;  %v2438_v32 = vld [vmem:[%s4859_s11 + $0x98] sm:$0xff] }
 0x402   : > { %2363 = vmatmul.bf16.gmra.mxu1 %v2254_v11  ;;  %2403 = vmatmul.bf16.gmra.mxu2 %v2262_v38  ;;  %v4874_v11 = vld [vmem:[%s4859_s11 + $0xa8] sm:$0xff] }
 0x403   : > { %v4898_v38 = vld [vmem:[%s4859_s11 + $0xc8] sm:$0xff] }
 0x412   : > { %2368 = vmatmul.bf16.gmra.mxu1 %v2255_v53  ;;  %2408 = vmatmul.bf16.gmra.mxu2 %v2263_v51  ;;  %v4905_v53 = vld [vmem:[%s4859_s11 + $0xd0] sm:$0xff]  ;;  %v4920_v51 = vld [vmem:[%s4859_s11 + $0x60] sm:$0xff] }
 0x422   : > { %2373 = vmatmul.bf16.gmra.mxu1 %v2256_v23  ;;  %2413 = vmatmul.bf16.gmra.mxu2 %v2264_v41  ;;  %v4933_v41 = vld [vmem:[%s4859_s11 + $0x70] sm:$0xff] }
 0x42f   : > { %v2339_v31 = vpop.f32.mrf.mxu1 }
 0x430   : > { %v2340_v10 = vadd.f32 %v2339_v31, %v4853_v42 }
 0x432   : > { %v2451_v35 = vadd.f32 %v2419_v36, %v2340_v10 }
 0x434   : > { %2483 = vst.msk [vmem:[%s4917_s14] sm:$0xff] %vm307_vm0, %v2451_v35 }
 0x435   : > { %v2379_v48 = vpop.f32.mrf.mxu2 }
 0x436   : > { %v2380_v60 = vadd.f32 %v2379_v48, %v4853_v42 }
 0x437   : > { %v2341_v27 = vpop.f32.mrf.mxu1 }
 0x438   : > { %v2467_v29 = vadd.f32 %v2435_v37, %v2380_v60  ;;  %v2342_v23 = vadd.f32 %v2341_v27, %v4853_v42 }
 0x43a   : > { %v2452_v57 = vadd.f32 %v2420_v40, %v2342_v23  ;;  %2499 = vst.msk [vmem:[%s4917_s14 + $0x80] sm:$0xff] %vm307_vm0, %v2467_v29 }
 0x43c   : > { %2484 = vst.msk [vmem:[%s4917_s14 + $0x8] sm:$0xff] %vm307_vm0, %v2452_v57 }
 0x43d   : > { %v2381_v3 = vpop.f32.mrf.mxu2 }
 0x43e   : > { %v2382_v62 = vadd.f32 %v2381_v3, %v4853_v42 }
 0x43f   : > { %v2344_v63 = vpop.f32.mrf.mxu1 }
 0x440   : > { %v2468_v33 = vadd.f32 %v2436_v17, %v2382_v62  ;;  %v2345_v59 = vadd.f32 %v2344_v63, %v4853_v42 }
 0x442   : > { %v2453_v8 = vadd.f32 %v2421_v47, %v2345_v59  ;;  %2500 = vst.msk [vmem:[%s4917_s14 + $0x88] sm:$0xff] %vm307_vm0, %v2468_v33 }
 0x444   : > { %2485 = vst.msk [vmem:[%s4917_s14 + $0x10] sm:$0xff] %vm307_vm0, %v2453_v8 }
 0x445   : > { %v2384_v1 = vpop.f32.mrf.mxu2 }
 0x446   : > { %v2385_v49 = vadd.f32 %v2384_v1, %v4853_v42 }
 0x447   : > { %v2346_v56 = vpop.f32.mrf.mxu1 }
 0x448   : > { %v2469_v14 = vadd.f32 %v2437_v26, %v2385_v49  ;;  %v2347_v18 = vadd.f32 %v2346_v56, %v4853_v42 }
 0x44a   : > { %v2454_v9 = vadd.f32 %v2422_v55, %v2347_v18  ;;  %2501 = vst.msk [vmem:[%s4917_s14 + $0x90] sm:$0xff] %vm307_vm0, %v2469_v14 }
 0x44c   : > { %2486 = vst.msk [vmem:[%s4917_s14 + $0x18] sm:$0xff] %vm307_vm0, %v2454_v9 }
 0x44d   : > { %v2386_v24 = vpop.f32.mrf.mxu2 }
 0x44e   : > { %v2387_v15 = vadd.f32 %v2386_v24, %v4853_v42 }
 0x44f   : > { %v2349_v61 = vpop.f32.mrf.mxu1 }
 0x450   : > { %v2470_v13 = vadd.f32 %v2438_v32, %v2387_v15  ;;  %v2350_v21 = vadd.f32 %v2349_v61, %v4853_v42 }
 0x452   : > { %v2455_v25 = vadd.f32 %v2423_v22, %v2350_v21  ;;  %2502 = vst.msk [vmem:[%s4917_s14 + $0x98] sm:$0xff] %vm307_vm0, %v2470_v13 }
 0x454   : > { %2487 = vst.msk [vmem:[%s4917_s14 + $0x20] sm:$0xff] %vm307_vm0, %v2455_v25 }
 0x455   : > { %v2389_v50 = vpop.f32.mrf.mxu2 }
 0x456   : > { %v2390_v12 = vadd.f32 %v2389_v50, %v4853_v42 }
 0x457   : > { %v2351_v16 = vpop.f32.mrf.mxu1 }
 0x458   : > { %v2471_v39 = vadd.f32 %v2439_v6, %v2390_v12  ;;  %v2352_v31 = vadd.f32 %v2351_v16, %v4853_v42 }
 0x45a   : > { %v2456_v10 = vadd.f32 %v2424_v52, %v2352_v31  ;;  %2503 = vst.msk [vmem:[%s4917_s14 + $0xa0] sm:$0xff] %vm307_vm0, %v2471_v39 }
 0x45c   : > { %2488 = vst.msk [vmem:[%s4917_s14 + $0x28] sm:$0xff] %vm307_vm0, %v2456_v10 }
 0x45d   : > { %v2391_v36 = vpop.f32.mrf.mxu2 }
 0x45e   : > { %v2392_v48 = vadd.f32 %v2391_v36, %v4853_v42 }
 0x45f   : > { %v2354_v37 = vpop.f32.mrf.mxu1 }
 0x460   : > { %v2472_v40 = vadd.f32 %v4874_v11, %v2392_v48  ;;  %v2355_v17 = vadd.f32 %v2354_v37, %v4853_v42 }
 0x462   : > { %v2457_v47 = vadd.f32 %v4877_v19, %v2355_v17  ;;  %2504 = vst.msk [vmem:[%s4917_s14 + $0xa8] sm:$0xff] %vm307_vm0, %v2472_v40 }
 0x464   : > { %2489 = vst.msk [vmem:[%s4917_s14 + $0x30] sm:$0xff] %vm307_vm0, %v2457_v47 }
 0x465   : > { %v2394_v26 = vpop.f32.mrf.mxu2 }
 0x466   : > { %v2395_v55 = vadd.f32 %v2394_v26, %v4853_v42 }
 0x467   : > { %v2356_v32 = vpop.f32.mrf.mxu1 }
 0x468   : > { %v2473_v22 = vadd.f32 %v4880_v0, %v2395_v55  ;;  %v2357_v6 = vadd.f32 %v2356_v32, %v4853_v42 }
 0x46a   : > { %v2458_v52 = vadd.f32 %v4883_v44, %v2357_v6  ;;  %2505 = vst.msk [vmem:[%s4917_s14 + $0xb0] sm:$0xff] %vm307_vm0, %v2473_v22 }
 0x46c   : > { %2490 = vst.msk [vmem:[%s4917_s14 + $0x38] sm:$0xff] %vm307_vm0, %v2458_v52 }
 0x46d   : > { %v2396_v11 = vpop.f32.mrf.mxu2 }
 0x46e   : > { %v2397_v19 = vadd.f32 %v2396_v11, %v4853_v42 }
 0x46f   : > { %v2359_v35 = vpop.f32.mrf.mxu1 }
 0x470   : > { %v2474_v60 = vadd.f32 %v4886_v43, %v2397_v19  ;;  %v2360_v27 = vadd.f32 %v2359_v35, %v4853_v42 }
 0x472   : > { %v2459_v0 = vadd.f32 %v4889_v4, %v2360_v27  ;;  %2506 = vst.msk [vmem:[%s4917_s14 + $0xb8] sm:$0xff] %vm307_vm0, %v2474_v60 }
 0x474   : > { %2491 = vst.msk [vmem:[%s4917_s14 + $0x40] sm:$0xff] %vm307_vm0, %v2459_v0 }
 0x475   : > { %v2399_v44 = vpop.f32.mrf.mxu2 }
 0x476   : > { %v2400_v29 = vadd.f32 %v2399_v44, %v4853_v42 }
 0x477   : > { %v2361_v23 = vpop.f32.mrf.mxu1 }
 0x478   : > { %v2475_v57 = vadd.f32 %v4892_v34, %v2400_v29  ;;  %v2362_v3 = vadd.f32 %v2361_v23, %v4853_v42 }
 0x47a   : > { %v2460_v43 = vadd.f32 %v4895_v45, %v2362_v3  ;;  %2507 = vst.msk [vmem:[%s4917_s14 + $0xc0] sm:$0xff] %vm307_vm0, %v2475_v57 }
 0x47c   : > { %2492 = vst.msk [vmem:[%s4917_s14 + $0x48] sm:$0xff] %vm307_vm0, %v2460_v43 }
 0x47d   : > { %v2401_v4 = vpop.f32.mrf.mxu2 }
 0x47e   : > { %v2402_v62 = vadd.f32 %v2401_v4, %v4853_v42 }
 0x47f   : > { %v2364_v63 = vpop.f32.mrf.mxu1 }
 0x480   : > { %v2476_v33 = vadd.f32 %v4898_v38, %v2402_v62  ;;  %v2365_v59 = vadd.f32 %v2364_v63, %v4853_v42 }
 0x482   : > { %v2461_v34 = vadd.f32 %v4901_v46, %v2365_v59  ;;  %2508 = vst.msk [vmem:[%s4917_s14 + $0xc8] sm:$0xff] %vm307_vm0, %v2476_v33 }
 0x484   : > { %2493 = vst.msk [vmem:[%s4917_s14 + $0x50] sm:$0xff] %vm307_vm0, %v2461_v34 }
 0x485   : > { %v2404_v45 = vpop.f32.mrf.mxu2 }
 0x486   : > { %v2405_v8 = vadd.f32 %v2404_v45, %v4853_v42 }
 0x487   : > { %v2366_v1 = vpop.f32.mrf.mxu1 }
 0x488   : > { %v2477_v49 = vadd.f32 %v4905_v53, %v2405_v8  ;;  %v2367_v56 = vadd.f32 %v2366_v1, %v4853_v42 }
 0x48a   : > { %v2462_v38 = vadd.f32 %v4908_v54, %v2367_v56  ;;  %2509 = vst.msk [vmem:[%s4917_s14 + $0xd0] sm:$0xff] %vm307_vm0, %v2477_v49 }
 0x48c   : > { %2494 = vst.msk [vmem:[%s4917_s14 + $0x58] sm:$0xff] %vm307_vm0, %v2462_v38 }
 0x48d   : > { %v2406_v46 = vpop.f32.mrf.mxu2 }
 0x48e   : > { %v2407_v14 = vadd.f32 %v2406_v46, %v4853_v42 }
 0x48f   : > { %v2369_v18 = vpop.f32.mrf.mxu1 }
 0x490   : > { %v2478_v9 = vadd.f32 %v4911_v58, %v2407_v14  ;;  %v2370_v24 = vadd.f32 %v2369_v18, %v4853_v42 }
 0x492   : > { %v2463_v53 = vadd.f32 %v4920_v51, %v2370_v24  ;;  %2510 = vst.msk [vmem:[%s4917_s14 + $0xd8] sm:$0xff] %vm307_vm0, %v2478_v9 }
 0x494   : > { %2495 = vst.msk [vmem:[%s4917_s14 + $0x60] sm:$0xff] %vm307_vm0, %v2463_v53 }
 0x495   : > { %v2409_v54 = vpop.f32.mrf.mxu2 }
 0x496   : > { %v2410_v15 = vadd.f32 %v2409_v54, %v4853_v42 }
 0x497   : > { %v2371_v61 = vpop.f32.mrf.mxu1 }
 0x498   : > { %v2479_v13 = vadd.f32 %v4923_v2, %v2410_v15  ;;  %v2372_v21 = vadd.f32 %v2371_v61, %v4853_v42 }
 0x49a   : > { %v2464_v58 = vadd.f32 %v4926_v7, %v2372_v21  ;;  %2511 = vst.msk [vmem:[%s4917_s14 + $0xe0] sm:$0xff] %vm307_vm0, %v2479_v13 }
 0x49c   : > { %2496 = vst.msk [vmem:[%s4917_s14 + $0x68] sm:$0xff] %vm307_vm0, %v2464_v58 }
 0x49d   : > { %v2411_v51 = vpop.f32.mrf.mxu2 }
 0x49e   : > { %v2412_v25 = vadd.f32 %v2411_v51, %v4853_v42 }
 0x49f   : > { %v2374_v50 = vpop.f32.mrf.mxu1 }
 0x4a0   : > { %v2480_v12 = vadd.f32 %v4930_v5, %v2412_v25  ;;  %v2375_v16 = vadd.f32 %v2374_v50, %v4853_v42 }
 0x4a2   : > { %v2465_v2 = vadd.f32 %v4933_v41, %v2375_v16  ;;  %2512 = vst.msk [vmem:[%s4917_s14 + $0xe8] sm:$0xff] %vm307_vm0, %v2480_v12 }
 0x4a4   : > { %2497 = vst.msk [vmem:[%s4917_s14 + $0x70] sm:$0xff] %vm307_vm0, %v2465_v2 }
 0x4a5   : > { %v2414_v7 = vpop.f32.mrf.mxu2 }
 0x4a6   : > { %v2415_v39 = vadd.f32 %v2414_v7, %v4853_v42 }
 0x4a7   : > { %v2376_v31 = vpop.f32.mrf.mxu1 }
 0x4a8   : > { %v2481_v10 = vadd.f32 %v4936_v28, %v2415_v39  ;;  %v2377_v36 = vadd.f32 %v2376_v31, %v4853_v42 }
 0x4aa   : > { %v2466_v48 = vadd.f32 %v4939_v30, %v2377_v36  ;;  %2513 = vst.msk [vmem:[%s4917_s14 + $0xf0] sm:$0xff] %vm307_vm0, %v2481_v10 }
 0x4ac   : > { %2498 = vst.msk [vmem:[%s4917_s14 + $0x78] sm:$0xff] %vm307_vm0, %v2466_v48 }
 0x4ad   : > { %v2416_v5 = vpop.f32.mrf.mxu2 }
 0x4ae   : > { %v2417_v41 = vadd.f32 %v2416_v5, %v4853_v42 }
 0x4b0   : > { %v2482_v37 = vadd.f32 %v4942_v20, %v2417_v41 }
 0x4b2   : > { %2514 = vst.msk [vmem:[%s4917_s14 + $0xf8] sm:$0xff] %vm307_vm0, %v2482_v37 }
 0x4b3 PF: > { %s16_s21 = sadd.s32 1, %s2892_s21  }
 0x4b4   : > { %p13_p4 = scmp.ge.s32.totalorder %s16_s21, 4  }
 0x4b6   :  { %15 = sbr.rel (!%p13_p4) target bundleno = 1 (0x1), region = 77 }

</bundles_post_ra>
